<compile_context>
chip_gen: v6e
topology: v6e:2x2x1
jax: 0.10.0
libtpu: 0.0.40
codegen_flags: <defaults>
</compile_context>

<pallas_src>
import functools

import numpy as np
import jax
import jax.numpy as jnp
from jax import lax
from jax.experimental import pallas as pl
from jax.experimental.pallas import tpu as pltpu

LANE = 128                      # feature dims padded to multiples of this
NODE_PAD = 512                  # node-count padding granularity
MIN_DST_TILES = 2               # >=2 parallel dst tiles so v7x's 2 TCs both work
VMEM_LIMIT_BYTES = 32 * 1024 * 1024


def _round_up(x, m):
    return ((x + m - 1) // m) * m


def _pad2d(x, rows, cols):
    return jnp.pad(x, ((0, rows - x.shape[0]), (0, cols - x.shape[1])))


def _pick_dst_tile(n_pad):
    # Largest tile <= 1024 dividing n_pad that still leaves >= 2 dst tiles.
    for t in (1024, 512):
        if n_pad % t == 0 and n_pad // t >= MIN_DST_TILES:
            return t
    return 512


def _pick_src_tile(n_pad):
    for t in (1024, 512):
        if n_pad % t == 0:
            return t
    return 512


# ----------------------------- Pallas kernel ------------------------------ #

def ngcf_layer_kernel(adj_ref, hsrc_ref, hdst_ref, s_ref, w_ref, b_ref,
                      out_ref, acc_ref, *, adj_transposed):
    """One NGCF layer for one destination node type, tiled over (dst, src).

    adj_ref : (TD, TS) or (TS, TD) if adj_transposed -- normalized adjacency tile
              (bf16 for the production path; 0 = no edge)
    hsrc_ref: (TS, Din)      source-node features (streamed dtype, bf16/f32)
    hdst_ref: (TD, Din)      destination-node features, f32 (W2 interaction term)
    s_ref   : (TD, 1)        per-dst sum of edge norms (precomputed, layer-invariant)
    w_ref   : (2*Din, Dout)  [W1 ; W2] stacked, pre-transposed, zero-padded, f32
    b_ref   : (1, Dout)      b1 + b2, zero-padded, f32
    out_ref : (TD, Dout)     updated, L2-normalized destination features, f32
    acc_ref : (TD, 2*Din)    fp32 scratch; left half accumulates M = A @ Hsrc
    """
    d_in = hsrc_ref.shape[1]
    k = pl.program_id(1)

    # Weighted neighbor aggregation on the MXU (bf16 x bf16 -> f32 accumulate).
    if adj_transposed:
        # adj tile is (TS, TD): contract dim 0 of adj with dim 0 of H_src.
        prod = lax.dot_general(adj_ref[...], hsrc_ref[...],
                               dimension_numbers=(((0,), (0,)), ((), ())),
                               preferred_element_type=jnp.float32)
    else:
        prod = jnp.dot(adj_ref[...], hsrc_ref[...],
                       preferred_element_type=jnp.float32)

    @pl.when(k == 0)
    def _first():
        # Write directly: avoids a zero-init store + read of the accumulator.
        acc_ref[:, :d_in] = prod

    @pl.when(k > 0)
    def _accumulate():
        acc_ref[:, :d_in] += prod

    @pl.when(k == pl.num_programs(1) - 1)
    def _finalize():
        m = acc_ref[:, :d_in]
        # Right half <- M * H_dst, so one K=2*Din matmul covers both W1 and W2.
        acc_ref[:, d_in:] = m * hdst_ref[...]
        h = (jnp.dot(acc_ref[...], w_ref[...],
                     preferred_element_type=jnp.float32)
             + s_ref[...] * b_ref[...])
        # LeakyReLU(0.2)
        h = jnp.where(h > 0.0, h, 0.2 * h)
        # TODO(synk): nn.Dropout is identity here (eval mode; example rates are 0.0).
        # F.normalize(h, dim=1, p=2) via rsqrt on the EUP.
        ss = jnp.sum(h * h, axis=1, keepdims=True)
        out_ref[...] = h * jax.lax.rsqrt(jnp.maximum(ss, 1e-24))


def ngcf_layer(adj, h_src, h_dst, s_dst, w_cat, b, *,
               tile_dst, tile_src, adj_transposed):
    if adj_transposed:
        n_src, n_dst = adj.shape
        adj_spec = pl.BlockSpec((tile_src, tile_dst), lambda i, k: (k, i))
    else:
        n_dst, n_src = adj.shape
        adj_spec = pl.BlockSpec((tile_dst, tile_src), lambda i, k: (i, k))
    d_in = h_src.shape[1]
    d_out = w_cat.shape[1]
    grid = (n_dst // tile_dst, n_src // tile_src)
    kernel = functools.partial(ngcf_layer_kernel, adj_transposed=adj_transposed)
    return pl.pallas_call(
        kernel,
        out_shape=jax.ShapeDtypeStruct((n_dst, d_out), jnp.float32),
        grid_spec=pltpu.PrefetchScalarGridSpec(
            num_scalar_prefetch=0,
            grid=grid,
            in_specs=[
                adj_spec,                                                 # A_norm
                pl.BlockSpec((tile_src, d_in), lambda i, k: (k, 0)),      # H_src
                pl.BlockSpec((tile_dst, d_in), lambda i, k: (i, 0)),      # H_dst
                pl.BlockSpec((tile_dst, 1), lambda i, k: (i, 0)),         # s
                pl.BlockSpec((2 * d_in, d_out), lambda i, k: (0, 0)),     # [W1;W2]
                pl.BlockSpec((1, d_out), lambda i, k: (0, 0)),            # b1+b2
            ],
            out_specs=pl.BlockSpec((tile_dst, d_out), lambda i, k: (i, 0)),
            scratch_shapes=[pltpu.VMEM((tile_dst, 2 * d_in), jnp.float32)],
        ),
        compiler_params=pltpu.CompilerParams(
            dimension_semantics=("parallel", "arbitrary"),
            vmem_limit_bytes=VMEM_LIMIT_BYTES),
    )(adj, h_src, h_dst, s_dst, w_cat, b)


# --------------------------- Graph preprocessing ---------------------------- #
# Computed ONCE (graph is static across forwards) and reused by every layer.

def build_norm_adjacency(adj01):
    """A_norm[u,i] = 1/sqrt(deg_u * deg_i) on edges, 0 elsewhere (cornac norm_dict)."""
    du = jnp.sum(adj01, axis=1)            # user degree
    di = jnp.sum(adj01, axis=0)            # item degree
    denom = jnp.sqrt(jnp.maximum(du[:, None] * di[None, :], 1e-12))
    return jnp.where(adj01 > 0, adj01 / denom, 0.0)


def preprocess_graph(adj01, adj_dtype=jnp.bfloat16):
    num_u, num_i = adj01.shape
    u_pad = max(_round_up(num_u, NODE_PAD), MIN_DST_TILES * NODE_PAD)
    i_pad = max(_round_up(num_i, NODE_PAD), MIN_DST_TILES * NODE_PAD)
    a_norm = _pad2d(build_norm_adjacency(adj01), u_pad, i_pad)   # f32 (Up, Ip)
    # Per-dst edge-norm sums (layer-invariant) computed in f32 before any cast.
    s_u = jnp.sum(a_norm, axis=1, keepdims=True)                 # (Up, 1)
    s_i = jnp.sum(a_norm, axis=0, keepdims=True).T               # (Ip, 1)
    return dict(
        adj=a_norm.astype(adj_dtype),        # single copy; transpose never built
        s_u=s_u, s_i=s_i,
        num_u=num_u, num_i=num_i, u_pad=u_pad, i_pad=i_pad,
        tile_u_dst=_pick_dst_tile(u_pad), tile_i_dst=_pick_dst_tile(i_pad),
        tile_u_src=_pick_src_tile(u_pad), tile_i_src=_pick_src_tile(i_pad),
    )


# ------------------------------ Model forward ------------------------------ #

def ngcf_forward(graph, feat_user, feat_item, layer_params,
                 feat_stream_dtype=jnp.bfloat16):
    """Equivalent of Model.forward(g) with users/pos_items/neg_items = None."""
    num_u, num_i = graph["num_u"], graph["num_i"]
    u_pad, i_pad = graph["u_pad"], graph["i_pad"]
    adj = graph["adj"]

    d0 = feat_user.shape[1]
    d0_pad = _round_up(d0, LANE)
    h_u = _pad2d(feat_user, u_pad, d0_pad)
    h_i = _pad2d(feat_item, i_pad, d0_pad)

    user_embeds = [feat_user]
    item_embeds = [feat_item]
    d_in, d_in_pad = d0, d0_pad
    for (w1_t, w2_t, b) in layer_params:
        d_out = w1_t.shape[1]
        d_out_pad = _round_up(d_out, LANE)
        # Stack [W1 ; W2] into one (2*Din_pad, Dout_pad) operand (fused K matmul).
        w_cat = jnp.zeros((2 * d_in_pad, d_out_pad), jnp.float32)
        w_cat = w_cat.at[:d_in, :d_out].set(w1_t)
        w_cat = w_cat.at[d_in_pad:d_in_pad + d_in, :d_out].set(w2_t)
        b_pad = _pad2d(b, 1, d_out_pad)

        # Streamed (src) features in the compact MXU dtype; dst stays f32.
        h_u_src = h_u.astype(feat_stream_dtype)
        h_i_src = h_i.astype(feat_stream_dtype)

        # item->user edges update users; user->item edges update items.
        new_u = ngcf_layer(adj, h_i_src, h_u, graph["s_u"], w_cat, b_pad,
                           tile_dst=graph["tile_u_dst"],
                           tile_src=graph["tile_i_src"], adj_transposed=False)
        new_i = ngcf_layer(adj, h_u_src, h_i, graph["s_i"], w_cat, b_pad,
                           tile_dst=graph["tile_i_dst"],
                           tile_src=graph["tile_u_src"], adj_transposed=True)
        h_u, h_i = new_u, new_i
        user_embeds.append(h_u[:num_u, :d_out])
        item_embeds.append(h_i[:num_i, :d_out])
        d_in, d_in_pad = d_out, d_out_pad

    user_embd = jnp.concatenate(user_embeds, axis=1)
    item_embd = jnp.concatenate(item_embeds, axis=1)
    return user_embd, item_embd, item_embd


# --------------------------- Pure-JAX reference ---------------------------- #
# Edge-based reference that mirrors the DGL per-edge message passing literally.

def reference_forward(adj01_np, feat_user, feat_item, layer_params):
    U, I = adj01_np.shape
    src_u, dst_i = np.nonzero(adj01_np)
    du = adj01_np.sum(axis=1)
    di = adj01_np.sum(axis=0)
    norm = (1.0 / np.sqrt(du[src_u] * di[dst_i])).astype(np.float32)[:, None]
    norm = jnp.asarray(norm)
    su = jnp.asarray(src_u)
    ds = jnp.asarray(dst_i)

    def post(h):
        h = jnp.where(h > 0.0, h, 0.2 * h)
        n = jnp.linalg.norm(h, axis=1, keepdims=True)
        return h / jnp.maximum(n, 1e-12)

    h_u, h_i = feat_user, feat_item
    user_embeds = [h_u]
    item_embeds = [h_i]
    for (w1_t, w2_t, b) in layer_params:
        # user -> item edges (dst = item)
        msg_i = norm * (h_u[su] @ w1_t + (h_u[su] * h_i[ds]) @ w2_t + b)
        agg_i = jax.ops.segment_sum(msg_i, ds, num_segments=I)
        # item -> user edges (dst = user)
        msg_u = norm * (h_i[ds] @ w1_t + (h_i[ds] * h_u[su]) @ w2_t + b)
        agg_u = jax.ops.segment_sum(msg_u, su, num_segments=U)
        h_u, h_i = post(agg_u), post(agg_i)
        user_embeds.append(h_u)
        item_embeds.append(h_i)
    return (jnp.concatenate(user_embeds, axis=1),
            jnp.concatenate(item_embeds, axis=1),
            jnp.concatenate(item_embeds, axis=1))


# ------------------------------- Init / main -------------------------------- #

def xavier_uniform(key, shape, fan_in, fan_out):
    bound = float(np.sqrt(6.0 / (fan_in + fan_out)))
    return jax.random.uniform(key, shape, jnp.float32, -bound, bound)


if __name__ == "__main__":
    key = jax.random.PRNGKey(0)
    num_users, num_items = 32, 48
    in_size = 64
    layer_sizes = [64, 32]
    dropout_rates = [0.0, 0.0]           # eval-mode / zero dropout
    assert len(layer_sizes) == len(dropout_rates)

    k_adj, k_fu, k_fi, k_w = jax.random.split(key, 4)

    # Synthetic bipartite interaction graph (0/1 adjacency).
    adj01_np = (np.asarray(jax.random.uniform(k_adj, (num_users, num_items)))
                < 0.15).astype(np.float32)
    adj01 = jnp.asarray(adj01_np)

    # feature_dict: xavier_uniform over (num_nodes, in_size)
    feat_user = xavier_uniform(k_fu, (num_users, in_size), in_size, num_users)
    feat_item = xavier_uniform(k_fi, (num_items, in_size), in_size, num_items)

    # Layer parameters: W1, W2 xavier_uniform, biases zero (as in NGCFLayer.__init__).
    layer_params = []
    d_in = in_size
    wkeys = jax.random.split(k_w, 2 * len(layer_sizes))
    for li, d_out in enumerate(layer_sizes):
        w1_t = xavier_uniform(wkeys[2 * li], (d_in, d_out), d_in, d_out)
        w2_t = xavier_uniform(wkeys[2 * li + 1], (d_in, d_out), d_in, d_out)
        b = jnp.zeros((1, d_out), jnp.float32)     # b1 + b2 (both zero)
        layer_params.append((w1_t, w2_t, b))
        d_in = d_out

    ref_u, ref_i, _ = reference_forward(adj01_np, feat_user, feat_item, layer_params)

    # Production path: bf16 adjacency / bf16 streamed features (mem-bound win).
    graph_bf16 = preprocess_graph(adj01, adj_dtype=jnp.bfloat16)
    u_emb, pos_i_emb, neg_i_emb = ngcf_forward(
        graph_bf16, feat_user, feat_item, layer_params,
        feat_stream_dtype=jnp.bfloat16)
    jax.block_until_ready(u_emb)
    jax.block_until_ready(pos_i_emb)
    np.testing.assert_allclose(np.asarray(u_emb), np.asarray(ref_u),
                               rtol=5e-2, atol=5e-3)
    np.testing.assert_allclose(np.asarray(pos_i_emb), np.asarray(ref_i),
                               rtol=5e-2, atol=5e-3)
    np.testing.assert_allclose(np.asarray(neg_i_emb), np.asarray(ref_i),
                               rtol=5e-2, atol=5e-3)

    # Exact-semantics validation path: full f32 streams, tight tolerances.
    graph_f32 = preprocess_graph(adj01, adj_dtype=jnp.float32)
    u_f32, i_f32, _ = ngcf_forward(
        graph_f32, feat_user, feat_item, layer_params,
        feat_stream_dtype=jnp.float32)
    jax.block_until_ready(u_f32)
    np.testing.assert_allclose(np.asarray(u_f32), np.asarray(ref_u),
                               rtol=5e-4, atol=1e-4)
    np.testing.assert_allclose(np.asarray(i_f32), np.asarray(ref_i),
                               rtol=5e-4, atol=1e-4)

    print("KERNEL_OK")
</pallas_src>

<mosaic_0001>
module attributes {stable_mosaic.version = 11 : i64} {
  func.func @ngcf_layer_kernel(%arg0: i32, %arg1: i32, %arg2: memref<512x1024xbf16, #tpu.memory_space<vmem>>, %arg3: memref<1024x128xbf16, #tpu.memory_space<vmem>>, %arg4: memref<512x128xf32, #tpu.memory_space<vmem>>, %arg5: memref<512x1xf32, #tpu.memory_space<vmem>>, %arg6: memref<256x128xf32, #tpu.memory_space<vmem>>, %arg7: memref<1x128xf32, #tpu.memory_space<vmem>>, %arg8: memref<512x128xf32, #tpu.memory_space<vmem>>, %arg9: memref<512x256xf32, #tpu.memory_space<vmem>>) attributes {dimension_semantics = [#tpu.dimension_semantics<parallel>, #tpu.dimension_semantics<arbitrary>], iteration_bounds = array<i64: 2, 1>, scalar_prefetch = 0 : i64, scratch_operands = 1 : i64, tpu.core_type = #tpu.core_type<tc>, window_params = [{transform_indices = @transform_0, window_bounds = array<i64: 512, 1024>}, {transform_indices = @transform_1, window_bounds = array<i64: 1024, 128>}, {transform_indices = @transform_2, window_bounds = array<i64: 512, 128>}, {transform_indices = @transform_3, window_bounds = array<i64: 512, 1>}, {pipeline_mode = #tpu.pipeline_mode<synchronous>, transform_indices = @transform_4, window_bounds = array<i64: 256, 128>}, {pipeline_mode = #tpu.pipeline_mode<synchronous>, transform_indices = @transform_5, window_bounds = array<i64: 1, 128>}, {transform_indices = @transform_6, window_bounds = array<i64: 512, 128>}]} {
    %c0 = arith.constant 0 : index
    %c0_0 = arith.constant 0 : index
    %0 = vector.load %arg2[%c0, %c0_0] : memref<512x1024xbf16, #tpu.memory_space<vmem>>, vector<512x1024xbf16>
    %c0_1 = arith.constant 0 : index
    %c0_2 = arith.constant 0 : index
    %1 = vector.load %arg3[%c0_1, %c0_2] : memref<1024x128xbf16, #tpu.memory_space<vmem>>, vector<1024x128xbf16>
    %cst = arith.constant dense<0.000000e+00> : vector<512x128xf32>
    %2 = tpu.matmul %0, %1, %cst {dimension_numbers = #tpu.dot_dimension_numbers<[1], [0], [0], [1], [0, 0, 1, 1], [], []>} : vector<512x1024xbf16>, vector<1024x128xbf16>, vector<512x128xf32> -> vector<512x128xf32>
    %c0_i32 = arith.constant 0 : i32
    %3 = arith.cmpi eq, %arg1, %c0_i32 : i32
    %4 = arith.extui %3 : i1 to i32
    %c0_i32_3 = arith.constant 0 : i32
    %5 = arith.cmpi ne, %4, %c0_i32_3 : i32
    scf.if %5 {
      %c0_8 = arith.constant 0 : index
      %c0_9 = arith.constant 0 : index
      %12 = vector.load %arg9[%c0_8, %c0_9] : memref<512x256xf32, #tpu.memory_space<vmem>>, vector<512x128xf32>
      tpu.vector_store %arg9[%c0_8, %c0_9], %2 {strides = array<i32>} : memref<512x256xf32, #tpu.memory_space<vmem>>, vector<512x128xf32>,
    } else {
    }
    %c0_i32_4 = arith.constant 0 : i32
    %6 = arith.cmpi sgt, %arg1, %c0_i32_4 : i32
    %7 = arith.extui %6 : i1 to i32
    %c0_i32_5 = arith.constant 0 : i32
    %8 = arith.cmpi ne, %7, %c0_i32_5 : i32
    scf.if %8 {
      %c0_8 = arith.constant 0 : index
      %c0_9 = arith.constant 0 : index
      %12 = vector.load %arg9[%c0_8, %c0_9] : memref<512x256xf32, #tpu.memory_space<vmem>>, vector<512x128xf32>
      %13 = arith.addf %12, %2 : vector<512x128xf32>
      %c0_10 = arith.constant 0 : index
      %c0_11 = arith.constant 0 : index
      %14 = vector.load %arg9[%c0_10, %c0_11] : memref<512x256xf32, #tpu.memory_space<vmem>>, vector<512x128xf32>
      tpu.vector_store %arg9[%c0_10, %c0_11], %13 {strides = array<i32>} : memref<512x256xf32, #tpu.memory_space<vmem>>, vector<512x128xf32>,
    } else {
    }
    %c0_i32_6 = arith.constant 0 : i32
    %9 = arith.cmpi eq, %arg1, %c0_i32_6 : i32
    %10 = arith.extui %9 : i1 to i32
    %c0_i32_7 = arith.constant 0 : i32
    %11 = arith.cmpi ne, %10, %c0_i32_7 : i32
    scf.if %11 {
      %c0_8 = arith.constant 0 : index
      %c0_9 = arith.constant 0 : index
      %12 = vector.load %arg9[%c0_8, %c0_9] : memref<512x256xf32, #tpu.memory_space<vmem>>, vector<512x128xf32>
      %c0_10 = arith.constant 0 : index
      %c0_11 = arith.constant 0 : index
      %13 = vector.load %arg4[%c0_10, %c0_11] : memref<512x128xf32, #tpu.memory_space<vmem>>, vector<512x128xf32>
      %14 = arith.mulf %12, %13 : vector<512x128xf32>
      %c0_12 = arith.constant 0 : index
      %c128 = arith.constant 128 : index
      %15 = vector.load %arg9[%c0_12, %c128] : memref<512x256xf32, #tpu.memory_space<vmem>>, vector<512x128xf32>
      tpu.vector_store %arg9[%c0_12, %c128], %14 {strides = array<i32>} : memref<512x256xf32, #tpu.memory_space<vmem>>, vector<512x128xf32>,
      %c0_13 = arith.constant 0 : index
      %c0_14 = arith.constant 0 : index
      %16 = vector.load %arg9[%c0_13, %c0_14] : memref<512x256xf32, #tpu.memory_space<vmem>>, vector<512x256xf32>
      %c0_15 = arith.constant 0 : index
      %c0_16 = arith.constant 0 : index
      %17 = vector.load %arg6[%c0_15, %c0_16] : memref<256x128xf32, #tpu.memory_space<vmem>>, vector<256x128xf32>
      %cst_17 = arith.constant dense<0.000000e+00> : vector<512x128xf32>
      %18 = tpu.matmul %16, %17, %cst_17 {dimension_numbers = #tpu.dot_dimension_numbers<[1], [0], [0], [1], [0, 0, 1, 1], [], []>} : vector<512x256xf32>, vector<256x128xf32>, vector<512x128xf32> -> vector<512x128xf32>
      %c0_18 = arith.constant 0 : index
      %c0_19 = arith.constant 0 : index
      %19 = vector.load %arg5[%c0_18, %c0_19] : memref<512x1xf32, #tpu.memory_space<vmem>>, vector<512x1xf32>
      %c0_20 = arith.constant 0 : index
      %c0_21 = arith.constant 0 : index
      %20 = vector.load %arg7[%c0_20, %c0_21] : memref<1x128xf32, #tpu.memory_space<vmem>>, vector<1x128xf32>
      %21 = vector.broadcast %19 : vector<512x1xf32> to vector<512x128xf32>
      %22 = vector.broadcast %20 : vector<1x128xf32> to vector<512x128xf32>
      %23 = arith.mulf %21, %22 : vector<512x128xf32>
      %24 = arith.addf %18, %23 : vector<512x128xf32>
      %cst_22 = arith.constant 0.000000e+00 : f32
      %25 = vector.broadcast %cst_22 : f32 to vector<512x128xf32>
      %26 = arith.cmpf ogt, %24, %25 : vector<512x128xf32>
      %cst_23 = arith.constant 2.000000e-01 : f32
      %27 = vector.broadcast %cst_23 : f32 to vector<512x128xf32>
      %28 = arith.mulf %27, %24 : vector<512x128xf32>
      %29 = arith.select %26, %24, %28 : vector<512x128xi1>, vector<512x128xf32>
      %30 = arith.mulf %29, %29 : vector<512x128xf32>
      %cst_24 = arith.constant dense<0.000000e+00> : vector<512xf32>
      %31 = vector.multi_reduction <add>, %30, %cst_24 [1] : vector<512x128xf32> to vector<512xf32>
      %32 = vector.shape_cast %31 : vector<512xf32> to vector<512x1xf32>
      %cst_25 = arith.constant 1.000000e-24 : f32
      %33 = vector.broadcast %cst_25 : f32 to vector<512x1xf32>
      %34 = arith.maximumf %32, %33 : vector<512x1xf32>
      %35 = math.rsqrt %34 : vector<512x1xf32>
      %36 = vector.broadcast %35 : vector<512x1xf32> to vector<512x128xf32>
      %37 = arith.mulf %29, %36 : vector<512x128xf32>
      %c0_26 = arith.constant 0 : index
      %c0_27 = arith.constant 0 : index
      %38 = vector.load %arg8[%c0_26, %c0_27] : memref<512x128xf32, #tpu.memory_space<vmem>>, vector<512x128xf32>
      tpu.vector_store %arg8[%c0_26, %c0_27], %37 {strides = array<i32>} : memref<512x128xf32, #tpu.memory_space<vmem>>, vector<512x128xf32>,
    } else {
    }
    return
  }
  func.func @transform_0(%arg0: i32, %arg1: i32) -> (i32, i32) {
    %c0_i32 = arith.constant 0 : i32
    return %arg0, %arg1 : i32, i32
  }
  func.func @transform_1(%arg0: i32, %arg1: i32) -> (i32, i32) {
    %c0_i32 = arith.constant 0 : i32
    %c0_i32_0 = arith.constant 0 : i32
    return %arg1, %c0_i32 : i32, i32
  }
  func.func @transform_2(%arg0: i32, %arg1: i32) -> (i32, i32) {
    %c0_i32 = arith.constant 0 : i32
    %c0_i32_0 = arith.constant 0 : i32
    return %arg0, %c0_i32 : i32, i32
  }
  func.func @transform_3(%arg0: i32, %arg1: i32) -> (i32, i32) {
    %c0_i32 = arith.constant 0 : i32
    %c0_i32_0 = arith.constant 0 : i32
    return %arg0, %c0_i32 : i32, i32
  }
  func.func @transform_4(%arg0: i32, %arg1: i32) -> (i32, i32) {
    %c0_i32 = arith.constant 0 : i32
    %c0_i32_0 = arith.constant 0 : i32
    %c0_i32_1 = arith.constant 0 : i32
    return %c0_i32, %c0_i32_0 : i32, i32
  }
  func.func @transform_5(%arg0: i32, %arg1: i32) -> (i32, i32) {
    %c0_i32 = arith.constant 0 : i32
    %c0_i32_0 = arith.constant 0 : i32
    %c0_i32_1 = arith.constant 0 : i32
    return %c0_i32, %c0_i32_0 : i32, i32
  }
  func.func @transform_6(%arg0: i32, %arg1: i32) -> (i32, i32) {
    %c0_i32 = arith.constant 0 : i32
    %c0_i32_0 = arith.constant 0 : i32
    return %arg0, %c0_i32 : i32, i32
  }
}

</mosaic_0001>

<bundles_post_ra>
// kernel: tpu_custom_call.1
= control target key start
LH: loop header
LB: loop body
LE: loop exit
PB: predicated region body
PF: predicated region fallthrough
CT: control target
= control target key end

     0   :  { %s8705_s0 = inlined_call_operand.hbm [shape: bf16[1024,1024], index: 0, kind: input, shape index: {}]   ;;  %s8706_s1 = inlined_call_operand.hbm [shape: bf16[1024,128], index: 1, kind: input, shape index: {}]   ;;  %s8707_s2 = inlined_call_operand.hbm [shape: f32[1024,128], index: 2, kind: input, shape index: {}]   ;;  %s8708_s3 = inlined_call_operand.vmem [shape: f32[1024,1], index: 3, kind: input, shape index: {}]   ;;  %s8709_s4 = inlined_call_operand.hbm [shape: f32[256,128], index: 4, kind: input, shape index: {}]   ;;  %s8710_s5 = inlined_call_operand.hbm [shape: f32[1,128], index: 5, kind: input, shape index: {}]   ;;  %s8711_s6 = inlined_call_operand.hbm [shape: f32[1024,128], index: 6, kind: output, shape index: {}]  }
   0x1   :  { %8734 = sst [smem:[#allocation46_spill]] %s8705_s0 }
   0x2   :  { %8735 = sst [smem:[#allocation47_spill]] %s8706_s1 }
   0x3   :  { %11 = vsyncpa [#allocation4], 0 }
   0x4   :  { %13 = vsyncpa [#allocation4 + $0x1], 0 }
   0x5   :  { %14 = vsyncpa [#allocation7], 0 }
   0x6   :  { %15 = vsyncpa [#allocation11], 0 }
   0x7   :  { %16 = vsyncpa [#allocation5], 0 }
   0x8   :  { %18 = vsyncpa [#allocation5 + $0x1], 0  ;;  %s6901_s21 = smov 0   ;;  %s6903_s22 = smov 0  }
   0x9   :  { %s6905_s23 = smov 0   ;;  %s6907_s24 = smov 0  }
   0xa   :  { %s6909_s25 = smov 0   ;;  %s6911_s26 = smov 0  }
   0xb LB: > { %8736 = sst [smem:[#allocation19_spill]] %s6828_s21  ;;  %s6932_s27 = sadd.s32 4294967295, %s6848_s26   ;;  %s6848_s26 = sphi %s6911_s26, %s24_s26   ;;  %s6844_s25 = sphi %s6909_s25, %s8880_s25   ;;  %s6840_s24 = sphi %s6907_s24, %s8879_s24   ;;  %s6836_s23 = sphi %s6905_s23, %s8878_s23   ;;  %s6832_s22 = sphi %s6903_s22, %s8877_s22   ;;  %s6828_s21 = sphi %s6901_s21, %s8876_s21  }
   0xc   : > { %s5931_s28 = sadd.s32 4294967294, %s6848_s26   ;;  %p58_p0 = scmp.ne.s32.totalorder %s6832_s22, %s6828_s21 }
   0xd   : > { %p8714_p1 = scmp.eq.s32.totalorder %s6932_s27, 0  ;;  %p208_p3 = scmp.eq.s32.totalorder %s5931_s28, 1 }
   0xe   : > { %p5932_p5 = scmp.ge.s32.totalorder %s6848_s26, 1  ;;  %p215_p7 = scmp.lt.s32.totalorder %s6848_s26, 3 }
   0xf   : > { %p6941_p4 = por %p8714_p1, %p58_p0  ;;  %p6946_p6 = por %p208_p3, %p58_p0 }
  0x10   : > { %p6951_p8 = pnand %p5932_p5, %p215_p7  ;;  %s6850_s8 = smov [#allocation6]  }
  0x11   : > { %s8738_s30 = scalar_select %p6946_p6, 1, 0 }
  0x12   : > { %s230_s9 = sshll.u32 %s6850_s8, 4  ;;  %p6333_p9 = pneg %p6951_p8  ;;  %s231_s9 = int_to_ptr.vmem [resolvable:$true] %s230_s9 }
  0x13   : > { %8739 = sst [smem:[#allocation20_spill]] %s8738_s30  ;;  %s36_s11 = sadd.s32 1, %s6844_s25 }
  0x14   : > { %p6960_p11 = pnand %p6333_p9, %p8714_p1  ;;  %s6629_s12 = scalar_lea.vmem %s231_s9, 8192 }
  0x15   : > { %p6630_p13 = scmp.ne.s32.totalorder %s231_s9, %s6629_s12  ;;  %p6637_p5 = scmp.lt.s32.totalorder %s231_s9, %s231_s9 }
  0x16   : > { %p8715_p12 = pneg %p6960_p11  ;;  %p6638_p7 = scmp.lt.s32.totalorder %s6629_s12, %s6629_s12 }
  0x18   : > { %p6632_p0 = pnand %p6630_p13, %p8715_p12  ;;  %p6639_p2 = por %p6638_p7, %p6637_p5 }
  0x1a   : > { %p6633_p3 = pneg %p6632_p0 }
  0x1c   : > { %p6640_p10 = pnand %p6639_p2, %p6633_p3 }
  0x1e   : > { %6643 = shalt.err (!%p6640_p10)
}
  0x1f   : > { %s6851_s13 = smov 64   ;;  %s6852_s14 = smov 4  }
  0x20   : > { %s8742_s1 = sld [smem:[#allocation47_spill]]  ;;  %p38_p2 = scmp.ge.s32.totalorder %s36_s11, 2 }
  0x21   : > { %s45_s17 = sadd.s32 1, %s6836_s23  ;;  %p52_p9 = scmp.ne.s32.totalorder %s6836_s23, %s6832_s22 }
  0x22   : > { %p53_p10 = scmp.eq.s32.totalorder %s6848_s26, 0  ;;  %s8882_s11 = smov (%p38_p2, %s36_s11), 0 }
  0x23   : > { %8743 = sst [smem:[#allocation21_spill]] %s8882_s11  ;;  %p8745_p0 = scmp.eq.s32.totalorder %s6932_s27, 1 }
  0x24   : > { %p6981_p13 = por %p53_p10, %p52_p9  ;;  %s40_s20 = ssub.s32 %s6844_s25, %s8882_s11 }
  0x25   : > { %p6987_p3 = por %p8745_p0, %p52_p9  ;;  %p6357_p5 = scmp.lt.s32.totalorder %s6848_s26, 2 }
  0x26   : > { %6336 = dma.hbm_to_vmem [thread:$0]  (!%p6960_p11), %s8742_s1, 8192, %s231_s9, [#allocation7], %s6851_s13, %s6851_s13, %s6852_s14  }
  0x27   : > { %p43_p7 = scmp.eq.s32.totalorder %s40_s20, 0  ;;  %s268_s28 = sand.u32 1, %s6848_s26  }
  0x28   : > { %s270_s8 = sand.u32 1, %s6836_s23   ;;  %s6280_s13 = sshll.u32 %s6844_s25, 15 }
  0x29   : > { %s6997_s9 = scalar_select %p43_p7, %s6836_s23, %s45_s17  }
  0x2a   : > { %s5937_s12 = sshll.u32 %s270_s8, 11  ;;  %s8748_s0 = sld [smem:[#allocation46_spill]] }
  0x2b   : > { %8747 = sst [smem:[#allocation22_spill]] %s6997_s9  ;;  %s272_s1 = scalar_lea.vmem [#allocation3], %s5937_s12 }
  0x2c   : > { %s282_s30 = sshll.u32 %s272_s1, 4  ;;  %p7007_p2 = pnand %p6357_p5, %p6981_p13  ;;  %s283_s30 = int_to_ptr.vmem [resolvable:$true] %s282_s30 }
  0x2d   : > { %s7011_s20 = scalar_lea.sflag [#allocation4], %s268_s28  ;;  %s6657_s17 = scalar_lea.vmem %s283_s30, 32768 }
  0x2e   : > { %p8717_p9 = pneg %p7007_p2  ;;  %p6658_p10 = scmp.ne.s32.totalorder %s283_s30, %s6657_s17 }
  0x2f   : > { %s6853_s12 = smov [#allocation3]  }
  0x30   : > { %s281_s16 = scalar_lea.hbm %s8748_s0, %s6280_s13  ;;  %p6660_p0 = pnand %p6658_p10, %p8717_p9 }
  0x31   : > { %s6662_s1 = sshll.u32 %s6853_s12, 4  ;;  %s6663_s1 = int_to_ptr.vmem [resolvable:$false] %s6662_s1 }
  0x32   : > { %p6661_p7 = pneg %p6660_p0  ;;  %s6664_s18 = scalar_lea.vmem %s6663_s1, 65536 }
  0x33   : > { %p6665_p13 = scmp.lt.s32.totalorder %s283_s30, %s6663_s1  ;;  %p6666_p5 = scmp.lt.s32.totalorder %s6664_s18, %s6657_s17 }
  0x35   : > { %p6667_p1 = por %p6666_p5, %p6665_p13 }
  0x37   : > { %p6668_p12 = pnand %p6667_p1, %p6661_p7 }
  0x39   : > { %6671 = shalt.err (!%p6668_p12)
}
  0x3a   : > { %s6854_s13 = smov 512   ;;  %s6855_s28 = smov 32  }
  0x3b   : > { %6346 = dma.hbm_to_vmem [thread:$0]  (!%p7007_p2), %s281_s16, 32768, %s283_s30, %s7011_s20, %s6854_s13, %s6854_s13, %s6855_s28  }
  0x3c   : > { %s5941_s14 = sshll.u32 %s270_s8, 9  ;;  %s6856_s15 = smov [#allocation9]  }
  0x3d   : > { %s243_s0 = sshll.u32 %s6856_s15, 4  ;;  %s296_s12 = scalar_lea.vmem [#allocation8], %s5941_s14  ;;  %s244_s0 = int_to_ptr.vmem [resolvable:$true] %s243_s0 }
  0x3e   : > { %s303_s11 = sshll.u32 %s296_s12, 4  ;;  %s6683_s1 = scalar_lea.vmem %s244_s0, 4096  ;;  %s7040_s11 = int_to_ptr.vmem [resolvable:$true] %s303_s11 }
  0x3f   : > { %p6684_p10 = scmp.ne.s32.totalorder %s244_s0, %s6683_s1  ;;  %p8750_p1 = pneg %p6960_p11 }
  0x40   : > { %p6691_p7 = scmp.lt.s32.totalorder %s244_s0, %s244_s0  ;;  %p6692_p13 = scmp.lt.s32.totalorder %s6683_s1, %s6683_s1 }
  0x41   : > { %p6686_p12 = pnand %p6684_p10, %p8750_p1 }
  0x42   : > { %p6693_p5 = por %p6692_p13, %p6691_p7 }
  0x43   : > { %p6687_p0 = pneg %p6686_p12 }
  0x45   : > { %p6694_p9 = pnand %p6693_p5, %p6687_p0 }
  0x47   : > { %6697 = shalt.err (!%p6694_p9)
}
  0x48   : > { %s6857_s17 = smov 128   ;;  %s6858_s30 = smov 8  }
  0x49   : > { %6339 = dma.hbm_to_vmem [thread:$0]  (!%p6960_p11), %s8709_s4, 4096, %s244_s0, [#allocation7], %s6857_s17, %s6857_s17, %s6858_s30  }
  0x4a   : > { %s6281_s18 = sshll.u32 %s6844_s25, 13  ;;  %s6859_s13 = smov [#allocation10]  }
  0x4b   : > { %s257_s28 = sshll.u32 %s6859_s13, 4  ;;  %s7038_s12 = scalar_lea.hbm %s8707_s2, %s6281_s18  ;;  %s258_s28 = int_to_ptr.vmem [resolvable:$true] %s257_s28 }
  0x4c   : > { %s6709_s1 = scalar_lea.vmem %s258_s28, 16  ;;  %p8751_p10 = pmov %p8750_p1 }
  0x4d   : > { %p6710_p9 = scmp.ne.s32.totalorder %s258_s28, %s6709_s1  ;;  %s6716_s9 = scalar_lea.vmem %s258_s28, 32 }
  0x4e   : > { %p6717_p0 = scmp.lt.s32.totalorder %s258_s28, %s258_s28  ;;  %p6718_p7 = scmp.lt.s32.totalorder %s6716_s9, %s6709_s1 }
  0x4f   : > { %p6712_p1 = pnand %p6710_p9, %p8751_p10 }
  0x50   : > { %p6719_p13 = por %p6718_p7, %p6717_p0 }
  0x51   : > { %p6713_p12 = pneg %p6712_p1 }
  0x53   : > { %p6720_p5 = pnand %p6719_p13, %p6713_p12 }
  0x55   : > { %6723 = shalt.err (!%p6720_p5)
}
  0x56   : > { %6342 = dma.hbm_to_vmem [thread:$0]  (!%p6960_p11), %s8710_s5, 16, %s258_s28, [#allocation11]  }
  0x57   : > { %s6737_s16 = scalar_lea.vmem %s7040_s11, 8192  ;;  %p8752_p9 = pneg %p7007_p2 }
  0x58   : > { %p6738_p6 = scmp.ne.s32.totalorder %s7040_s11, %s6737_s16  ;;  %s6860_s9 = smov [#allocation8]  }
  0x59   : > { %s6742_s18 = sshll.u32 %s6860_s9, 4  ;;  %s6743_s18 = int_to_ptr.vmem [resolvable:$false] %s6742_s18 }
  0x5a   : > { %p6740_p10 = pnand %p6738_p6, %p8752_p9  ;;  %s6744_s13 = scalar_lea.vmem %s6743_s18, 16384 }
  0x5b   : > { %p6745_p12 = scmp.lt.s32.totalorder %s7040_s11, %s6743_s18  ;;  %p6746_p0 = scmp.lt.s32.totalorder %s6744_s13, %s6737_s16 }
  0x5c   : > { %p6741_p1 = pneg %p6740_p10 }
  0x5d   : > { %p6747_p7 = por %p6746_p0, %p6745_p12 }
  0x5f   : > { %p6748_p13 = pnand %p6747_p7, %p6741_p1 }
  0x61   : > { %6751 = shalt.err (!%p6748_p13)
}
  0x62   : > { %6349 = dma.hbm_to_vmem [thread:$0]  (!%p7007_p2), %s7038_s12, 8192, %s7040_s11, %s7011_s20, %s6857_s17, %s6857_s17, %s6858_s30  }
  0x63   : > { %324 = sbr.rel (%p6951_p8) target bundleno = 1390 (0x56e), region = 44 }
  0x68   : > { %s326_s10 = sand.u32 1, %s6932_s27   ;;  %s7068_s28 = sand.u32 1, %s6832_s22  }
  0x69   : > { %s5945_s14 = sshll.u32 %s7068_s28, 11  ;;  %s327_s15 = scalar_lea.sflag [#allocation4], %s326_s10 }
  0x6a   : > { %s7071_s21 = scalar_lea.vmem [#allocation3], %s5945_s14 }
  0x6b   : > { %6803 = dma.done.wait (%p6941_p4), %s327_s15, 32768  }
  0x6c   : > { %6805 = vsyncadd (%p6941_p4), %s327_s15, 4294934528  ;;  %p8753_p6 = scmp.eq.s32.totalorder %s6932_s27, 0 }
  0x6e   : > { %6807 = dma.done.wait (%p8753_p6), [#allocation7], 8192   ;;  %p8754_p8 = pmov %p8753_p6 }
  0x6f   : > { %s5947_s7 = sshll.u32 %s7068_s28, 9 }
  0x70   : > { %6809 = vsyncadd (%p8754_p8), [#allocation7], 4294959104  ;;  %s7084_s11 = scalar_lea.vmem [#allocation8], %s5947_s7 }
  0x71   : > { %6811 = dma.done.wait (%p6941_p4), %s327_s15, 8192  }
  0x72   : > { %6813 = vsyncadd (%p6941_p4), %s327_s15, 4294959104  ;;  %p8755_p11 = pmov %p8753_p6 }
  0x73   : > { %p8756_p2 = pmov %p8753_p6 }
  0x74   : > { %6815 = dma.done.wait (%p8755_p11), [#allocation7], 4096  }
  0x75   : > { %6817 = vsyncadd (%p8756_p2), [#allocation7], 4294963200  ;;  %p8757_p5 = pmov %p8756_p2 }
  0x76   : > { %p8758_p9 = pmov %p8756_p2 }
  0x77   : > { %6819 = dma.done.wait (%p8757_p5), [#allocation11], 16  }
  0x78   : > { %6821 = vsyncadd (%p8758_p9), [#allocation11], 4294967280  ;;  %v6861_v0 = vmov 0   ;;  %v6425_v1 = vld [vmem:[#allocation6 + $0x38] sm:$0xff]   ;;  %v6426_v2 = vld [vmem:[#allocation6 + $0x30] sm:$0xff]   ;;  %s5951_s27 = sshll.u32 %s6840_s24, 6 }
  0x79   : > { %6283 = vmatprep.subr.bf16.mxu1 %v6861_v0  ;;  %2450 = vmatprep.subr.bf16.mxu0 %v6861_v0  ;;  %v6427_v3 = vld [vmem:[#allocation6 + $0x28] sm:$0xff]   ;;  %v6428_v4 = vld [vmem:[#allocation6 + $0x20] sm:$0xff]   ;;  %v6429_v5 = vld [vmem:[#allocation6 + $0x18] sm:$0xff]   ;;  %p395_p4 = scmp.lt.s32.totalorder %s5951_s27, 127  ;;  %s8381_s12 = scalar_lea.vmem [#allocation12], %s5947_s7 }
  0x7a   : > { %6424 = vset.pattern.permute.xlu1 %v6861_v0  ;;  %6423 = vset.pattern.permute.xlu0 %v6861_v0  ;;  %v7111_v6 = vld [vmem:[%s7071_s21 + $0x400] sm:$0xff]  ;;  %v6430_v11 = vld [vmem:[#allocation6 + $0x10] sm:$0xff]   ;;  %v6431_v13 = vld [vmem:[#allocation6 + $0x8] sm:$0xff]   ;;  %s6282_s1 = sshll.u32 %s6840_s24, 13  ;;  %s5783_s0 = sshll.u32 %s8381_s12, 4  ;;  %s8655_s0 = int_to_ptr.vmem [resolvable:$true] %s5783_s0 }
  0x7b   : > { %6299 = vmatpush1.bf16.msra.mxu1 %v6425_v1  ;;  %2451 = vmatpush1.bf16.msra.mxu0 %v6425_v1  ;;  %v7114_v7 = vld [vmem:[%s7071_s21 + $0x420] sm:$0xff]  ;;  %v6433_v15 = vld [vmem:[#allocation6 + $0x78] sm:$0xff]   ;;  %v6434_v16 = vld [vmem:[#allocation6 + $0x70] sm:$0xff]   ;;  %s8884_s27 = smov (!%p395_p4, %s5951_s27), 127  ;;  %s8653_s9 = scalar_lea.hbm %s8711_s6, %s6282_s1 }
  0x7c   : > { %6284 = vmatprep.subr.bf16.mxu1 %v6861_v0  ;;  %2452 = vmatprep.subr.bf16.mxu0 %v6861_v0  ;;  %v7117_v8 = vld [vmem:[%s7071_s21] sm:$0xff]  ;;  %v6082_v9 = vcombine.high %v7111_v6, %v7114_v7  ;;  %v6435_v17 = vld [vmem:[#allocation6 + $0x68] sm:$0xff]   ;;  %v6437_v19 = vld [vmem:[#allocation6 + $0x58] sm:$0xff]   ;;  %v6081_v27 = vcombine.low %v7111_v6, %v7114_v7  ;;  %s5952_s29 = sshll.u32 %s8884_s27, 3  ;;  %s5770_s18 = scalar_lea.sflag [#allocation5], %s7068_s28 }
  0x7d   : > { %v7122_v10 = vld [vmem:[%s7071_s21 + $0x20] sm:$0xff]  ;;  %v6438_v20 = vld [vmem:[#allocation6 + $0x50] sm:$0xff]   ;;  %v6439_v21 = vld [vmem:[#allocation6 + $0x48] sm:$0xff]   ;;  %s7716_s30 = scalar_lea.vmem %s8708_s3, %s5952_s29  ;;  %s6752_s13 = scalar_lea.vmem %s8655_s0, 8192 }
  0x7e   : > { %v5954_v12 = vcombine.high %v7117_v8, %v7122_v10  ;;  %2610 = vmatprep.mubr.bf16.mxu1 %v6082_v9  ;;  %v6432_v14 = vld [vmem:[#allocation6] sm:$0xff]   ;;  %v5953_v28 = vcombine.low %v7117_v8, %v7122_v10  ;;  %v6441_v29 = vld [vmem:[#allocation6 + $0xb8] sm:$0xff]   ;;  %v6442_v32 = vld [vmem:[#allocation6 + $0xb0] sm:$0xff]   ;;  %p6753_p10 = scmp.ne.s32.totalorder %s8655_s0, %s6752_s13  ;;  %s6863_s24 = smov [#allocation12]  }
  0x7f   : > { %6300 = vmatpush1.bf16.msra.mxu1 %v6426_v2  ;;  %2453 = vmatpush1.bf16.msra.mxu0 %v6426_v2  ;;  %v6436_v18 = vld [vmem:[#allocation6 + $0x60] sm:$0xff]   ;;  %v6450_v33 = vld [vmem:[#allocation6 + $0x138] sm:$0xff]   ;;  %v6451_v38 = vld [vmem:[#allocation6 + $0x130] sm:$0xff]   ;;  %s6756_s10 = sshll.u32 %s6863_s24, 4  ;;  %s6757_s10 = int_to_ptr.vmem [resolvable:$false] %s6756_s10 }
  0x80   : > { %6285 = vmatprep.subr.bf16.mxu1 %v6861_v0  ;;  %2454 = vmatprep.subr.bf16.mxu0 %v6861_v0  ;;  %v6440_v22 = vld [vmem:[#allocation6 + $0x40] sm:$0xff]   ;;  %v6443_v43 = vld [vmem:[#allocation6 + $0xa8] sm:$0xff]   ;;  %v6445_v55 = vld [vmem:[#allocation6 + $0x98] sm:$0xff]   ;;  %p6754_p1 = pnand %p6753_p10, %p6987_p3  ;;  %s6758_s14 = scalar_lea.vmem %s6757_s10, 16384 }
  0x81   : > { %2482 = vmatprep.mubr.bf16.mxu0 %v5954_v12  ;;  %v538_v23 = vld [vmem:[%s7071_s21 + $0x440] sm:$0xff]  ;;  %v6453_v44 = vld [vmem:[#allocation6 + $0x128] sm:$0xff]   ;;  %v6456_v56 = vld [vmem:[#allocation6 + $0x118] sm:$0xff]   ;;  %p6759_p0 = scmp.lt.s32.totalorder %s8655_s0, %s6757_s10  ;;  %p6760_p7 = scmp.lt.s32.totalorder %s6758_s14, %s6752_s13 }
  0x82   : > { %v542_v24 = vld [vmem:[%s7071_s21 + $0x460] sm:$0xff]  ;;  %v6446_v61 = vld [vmem:[#allocation6 + $0x90] sm:$0xff]   ;;  %p6755_p12 = pneg %p6754_p1 }
  0x83   : > { %6301 = vmatpush1.bf16.msra.mxu1 %v6427_v3  ;;  %2455 = vmatpush1.bf16.msra.mxu0 %v6427_v3  ;;  %v410_v25 = vld [vmem:[%s7071_s21 + $0x40] sm:$0xff]  ;;  %v6090_v30 = vcombine.high %v538_v23, %v542_v24  ;;  %v6089_v39 = vcombine.low %v538_v23, %v542_v24  ;;  %v6457_v62 = vld [vmem:[#allocation6 + $0x110] sm:$0xff]   ;;  %p6761_p13 = por %p6760_p7, %p6759_p0 }
  0x84   : > { %6286 = vmatprep.subr.bf16.mxu1 %v6861_v0  ;;  %2456 = vmatprep.subr.bf16.mxu0 %v6861_v0  ;;  %v414_v26 = vld [vmem:[%s7071_s21 + $0x60] sm:$0xff]  ;;  %v6463_v23 = vld [vmem:[#allocation6 + $0x170] sm:$0xff]  }
  0x85   : > { %v5962_v31 = vcombine.high %v410_v25, %v414_v26  ;;  %v546_v34 = vld [vmem:[%s7071_s21 + $0x480] sm:$0xff]  ;;  %v5961_v40 = vcombine.low %v410_v25, %v414_v26  ;;  %p6762_p6 = pnand %p6761_p13, %p6755_p12 }
  0x86   : > { %v550_v35 = vld [vmem:[%s7071_s21 + $0x4a0] sm:$0xff] }
  0x87   : > { %6302 = vmatpush1.bf16.msra.mxu1 %v6428_v4  ;;  %2457 = vmatpush1.bf16.msra.mxu0 %v6428_v4  ;;  %v418_v36 = vld [vmem:[%s7071_s21 + $0x80] sm:$0xff]  ;;  %v6098_v41 = vcombine.high %v546_v34, %v550_v35  ;;  %v6097_v51 = vcombine.low %v546_v34, %v550_v35  ;;  %v6447_v4 = vld [vmem:[#allocation6 + $0x88] sm:$0xff]  }
  0x88   : > { %6287 = vmatprep.subr.bf16.mxu1 %v6861_v0  ;;  %2458 = vmatprep.subr.bf16.mxu0 %v6861_v0  ;;  %v422_v37 = vld [vmem:[%s7071_s21 + $0xa0] sm:$0xff] }
  0x89   : > { %v5970_v42 = vcombine.high %v418_v36, %v422_v37  ;;  %v554_v45 = vld [vmem:[%s7071_s21 + $0x4c0] sm:$0xff]  ;;  %v5969_v52 = vcombine.low %v418_v36, %v422_v37 }
  0x8a   : > { %v558_v46 = vld [vmem:[%s7071_s21 + $0x4e0] sm:$0xff] }
  0x8b   : > { %6303 = vmatpush1.bf16.msra.mxu1 %v6429_v5  ;;  %2459 = vmatpush1.bf16.msra.mxu0 %v6429_v5  ;;  %v426_v47 = vld [vmem:[%s7071_s21 + $0xc0] sm:$0xff]  ;;  %v6106_v53 = vcombine.high %v554_v45, %v558_v46  ;;  %v6105_v63 = vcombine.low %v554_v45, %v558_v46  ;;  %v6459_v5 = vld [vmem:[#allocation6 + $0x108] sm:$0xff]   ;;  %v6464_v46 = vld [vmem:[#allocation6 + $0xd0] sm:$0xff]  }
  0x8c   : > { %6288 = vmatprep.subr.bf16.mxu1 %v6861_v0  ;;  %2460 = vmatprep.subr.bf16.mxu0 %v6861_v0  ;;  %v430_v48 = vld [vmem:[%s7071_s21 + $0xe0] sm:$0xff] }
  0x8d   : > { %v6444_v49 = vld [vmem:[#allocation6 + $0xa0] sm:$0xff]   ;;  %v5978_v54 = vcombine.high %v426_v47, %v430_v48  ;;  %v5977_v1 = vcombine.low %v426_v47, %v430_v48  ;;  %v6469_v47 = vld [vmem:[#allocation6 + $0x150] sm:$0xff]  }
  0x8e   : > { %v6454_v50 = vld [vmem:[#allocation6 + $0x120] sm:$0xff]  }
  0x8f   : > { %6304 = vmatpush1.bf16.msra.mxu1 %v6430_v11  ;;  %2461 = vmatpush1.bf16.msra.mxu0 %v6430_v11  ;;  %v562_v57 = vld [vmem:[%s7071_s21 + $0x500] sm:$0xff] }
  0x90   : > { %6289 = vmatprep.subr.bf16.mxu1 %v6861_v0  ;;  %2462 = vmatprep.subr.bf16.mxu0 %v6861_v0  ;;  %v566_v58 = vld [vmem:[%s7071_s21 + $0x520] sm:$0xff] }
  0x91   : > { %v434_v59 = vld [vmem:[%s7071_s21 + $0x100] sm:$0xff]  ;;  %v6114_v2 = vcombine.high %v562_v57, %v566_v58  ;;  %v6113_v12 = vcombine.low %v562_v57, %v566_v58 }
  0x92   : > { %v438_v60 = vld [vmem:[%s7071_s21 + $0x120] sm:$0xff] }
  0x93   : > { %6305 = vmatpush1.bf16.msra.mxu1 %v6431_v13  ;;  %2463 = vmatpush1.bf16.msra.mxu0 %v6431_v13  ;;  %v5986_v3 = vcombine.high %v434_v59, %v438_v60  ;;  %v570_v6 = vld [vmem:[%s7071_s21 + $0x540] sm:$0xff]  ;;  %v5985_v13 = vcombine.low %v434_v59, %v438_v60 }
  0x94   : > { %6290 = vmatprep.subr.bf16.mxu1 %v6861_v0  ;;  %2464 = vmatprep.subr.bf16.mxu0 %v6861_v0  ;;  %v574_v7 = vld [vmem:[%s7071_s21 + $0x560] sm:$0xff] }
  0x95   : > { %v442_v8 = vld [vmem:[%s7071_s21 + $0x140] sm:$0xff]  ;;  %v6121_v24 = vcombine.low %v570_v6, %v574_v7 }
  0x96   : > { %v446_v9 = vld [vmem:[%s7071_s21 + $0x160] sm:$0xff] }
  0x97   : > { %6306 = vmatpush1.bf16.msra.mxu1 %v6432_v14  ;;  %2465 = vmatpush1.bf16.msra.mxu0 %v6432_v14  ;;  %v6448_v10 = vld [vmem:[#allocation6 + $0x80] sm:$0xff]   ;;  %v6122_v14 = vcombine.high %v570_v6, %v574_v7  ;;  %v5993_v25 = vcombine.low %v442_v8, %v446_v9 }
  0x98   : > { %6291 = vmatprep.subr.bf16.mxu1 %v6861_v0  ;;  %2466 = vmatprep.subr.bf16.mxu0 %v6861_v0  ;;  %v6460_v11 = vld [vmem:[#allocation6 + $0x100] sm:$0xff]  }
  0x99   : > { %v6458_v34 = vld [vmem:[#allocation6 + $0xe0] sm:$0xff]  }
  0x9a   : > { %v6466_v35 = vld [vmem:[#allocation6 + $0x160] sm:$0xff]  }
  0x9b   : > { %6307 = vmatpush2.bf16.msra.mxu1 %v6433_v15  ;;  %2467 = vmatpush2.bf16.msra.mxu0 %v6433_v15  ;;  %v5994_v15 = vcombine.high %v442_v8, %v446_v9  ;;  %v470_v45 = vld [vmem:[%s7071_s21 + $0x220] sm:$0xff] }
  0x9c   : > { %6292 = vmatprep.subr.bf16.mxu1 %v6861_v0  ;;  %2468 = vmatprep.subr.bf16.mxu0 %v6861_v0  ;;  %v478_v57 = vld [vmem:[%s7071_s21 + $0x260] sm:$0xff] }
  0x9d   : > { %v6470_v58 = vld [vmem:[#allocation6 + $0xc0] sm:$0xff]  }
  0x9e   : > { %v6472_v59 = vld [vmem:[#allocation6 + $0x140] sm:$0xff]  }
  0x9f   : > { %6308 = vmatpush2.bf16.msra.mxu1 %v6434_v16  ;;  %2469 = vmatpush2.bf16.msra.mxu0 %v6434_v16  ;;  %v6449_v16 = vld [vmem:[#allocation6 + $0xf8] sm:$0xff]   ;;  %v618_v9 = vld [vmem:[%s7071_s21 + $0x6c0] sm:$0xff] }
  0xa0   : > { %6293 = vmatprep.subr.bf16.mxu1 %v6861_v0  ;;  %2470 = vmatprep.subr.bf16.mxu0 %v6861_v0 }
  0xa3   : > { %6309 = vmatpush2.bf16.msra.mxu1 %v6435_v17  ;;  %2471 = vmatpush2.bf16.msra.mxu0 %v6435_v17  ;;  %v6462_v17 = vld [vmem:[#allocation6 + $0x178] sm:$0xff]  }
  0xa4   : > { %6294 = vmatprep.subr.bf16.mxu1 %v6861_v0  ;;  %2472 = vmatprep.subr.bf16.mxu0 %v6861_v0 }
  0xa7   : > { %6310 = vmatpush2.bf16.msra.mxu1 %v6436_v18  ;;  %2473 = vmatpush2.bf16.msra.mxu0 %v6436_v18  ;;  %v578_v18 = vld [vmem:[%s7071_s21 + $0x580] sm:$0xff] }
  0xa8   : > { %6295 = vmatprep.subr.bf16.mxu1 %v6861_v0  ;;  %2474 = vmatprep.subr.bf16.mxu0 %v6861_v0 }
  0xab   : > { %6311 = vmatpush2.bf16.msra.mxu1 %v6437_v19  ;;  %2475 = vmatpush2.bf16.msra.mxu0 %v6437_v19  ;;  %v582_v19 = vld [vmem:[%s7071_s21 + $0x5a0] sm:$0xff] }
  0xac   : > { %6296 = vmatprep.subr.bf16.mxu1 %v6861_v0  ;;  %2476 = vmatprep.subr.bf16.mxu0 %v6861_v0  ;;  %v6130_v26 = vcombine.high %v578_v18, %v582_v19  ;;  %v6129_v36 = vcombine.low %v578_v18, %v582_v19  ;;  %v630_v18 = vld [vmem:[%s7071_s21 + $0x720] sm:$0xff] }
  0xad   : > { %v498_v19 = vld [vmem:[%s7071_s21 + $0x300] sm:$0xff] }
  0xaf   : > { %6312 = vmatpush2.bf16.msra.mxu1 %v6438_v20  ;;  %2477 = vmatpush2.bf16.msra.mxu0 %v6438_v20  ;;  %v450_v20 = vld [vmem:[%s7071_s21 + $0x180] sm:$0xff] }
  0xb0   : > { %6297 = vmatprep.subr.bf16.mxu1 %v6861_v0  ;;  %2478 = vmatprep.subr.bf16.mxu0 %v6861_v0 }
  0xb3   : > { %6313 = vmatpush2.bf16.msra.mxu1 %v6439_v21  ;;  %2479 = vmatpush2.bf16.msra.mxu0 %v6439_v21  ;;  %v454_v21 = vld [vmem:[%s7071_s21 + $0x1a0] sm:$0xff] }
  0xb4   : > { %6298 = vmatprep.subr.bf16.mxu1 %v6861_v0  ;;  %2480 = vmatprep.subr.bf16.mxu0 %v6861_v0  ;;  %v6001_v37 = vcombine.low %v450_v20, %v454_v21 }
  0xb7   : > { %6314 = vmatpush2.bf16.msra.mxu1 %v6440_v22  ;;  %2481 = vmatpush2.bf16.msra.mxu0 %v6440_v22  ;;  %v6452_v22 = vld [vmem:[#allocation6 + $0xf0] sm:$0xff]  }
  0xb8   : > { %2739 = vmatprep.subr.bf16.mxu1 %v6861_v0  ;;  %3028 = vmatprep.subr.bf16.mxu0 %v6861_v0 }
  0xba   : > { %2611 = vmatmul.mubr.bf16.vlgmr.msra.gmra.mxu1 %v6081_v27  ;;  %2483 = vmatmul.mubr.bf16.vlgmr.msra.gmra.mxu0 %v5953_v28  ;;  %v6002_v27 = vcombine.high %v450_v20, %v454_v21  ;;  %v6455_v28 = vld [vmem:[#allocation6 + $0xe8] sm:$0xff]   ;;  %v502_v20 = vld [vmem:[%s7071_s21 + $0x320] sm:$0xff] }
  0xbb   : > { %2740 = vmatpush1.bf16.msra.mxu1 %v6441_v29  ;;  %2618 = vmatprep.mubr.bf16.mxu1 %v6090_v30  ;;  %v6465_v29 = vld [vmem:[#allocation6 + $0x168] sm:$0xff]   ;;  %v586_v30 = vld [vmem:[%s7071_s21 + $0x5c0] sm:$0xff] }
  0xbc   : > { %2741 = vmatprep.subr.bf16.mxu1 %v6861_v0  ;;  %2490 = vmatprep.mubr.bf16.mxu0 %v5962_v31  ;;  %v590_v31 = vld [vmem:[%s7071_s21 + $0x5e0] sm:$0xff] }
  0xbd   : > { %3029 = vmatpush1.bf16.msra.mxu0 %v6450_v33  ;;  %v462_v33 = vld [vmem:[%s7071_s21 + $0x1e0] sm:$0xff]  ;;  %v6137_v48 = vcombine.low %v586_v30, %v590_v31 }
  0xbe   : > { %3030 = vmatprep.subr.bf16.mxu0 %v6861_v0 }
  0xbf   : > { %2742 = vmatpush1.bf16.msra.mxu1 %v6442_v32  ;;  %v458_v32 = vld [vmem:[%s7071_s21 + $0x1c0] sm:$0xff] }
  0xc0   : > { %2743 = vmatprep.subr.bf16.mxu1 %v6861_v0 }
  0xc1   : > { %3031 = vmatpush1.bf16.msra.mxu0 %v6451_v38  ;;  %v6138_v38 = vcombine.high %v586_v30, %v590_v31  ;;  %v6049_v30 = vcombine.low %v498_v19, %v502_v20 }
  0xc2   : > { %2619 = vmatmul.mubr.bf16.gmra.mxu1 %v6089_v39  ;;  %2491 = vmatmul.mubr.bf16.gmra.mxu0 %v5961_v40  ;;  %v6010_v39 = vcombine.high %v458_v32, %v462_v33  ;;  %v6461_v40 = vld [vmem:[#allocation6 + $0xd8] sm:$0xff]  }
  0xc3   : > { %2626 = vmatprep.mubr.bf16.mxu1 %v6098_v41  ;;  %2498 = vmatprep.mubr.bf16.mxu0 %v5970_v42  ;;  %v6468_v41 = vld [vmem:[#allocation6 + $0x158] sm:$0xff]   ;;  %v594_v42 = vld [vmem:[%s7071_s21 + $0x600] sm:$0xff] }
  0xc4   : > { %2744 = vmatpush1.bf16.msra.mxu1 %v6443_v43  ;;  %3032 = vmatprep.subr.bf16.mxu0 %v6861_v0  ;;  %v598_v43 = vld [vmem:[%s7071_s21 + $0x620] sm:$0xff] }
  0xc5   : > { %2745 = vmatprep.subr.bf16.mxu1 %v6861_v0  ;;  %3033 = vmatpush1.bf16.msra.mxu0 %v6453_v44  ;;  %v466_v44 = vld [vmem:[%s7071_s21 + $0x200] sm:$0xff]  ;;  %v6145_v60 = vcombine.low %v594_v42, %v598_v43 }
  0xc6   : > { %3034 = vmatprep.subr.bf16.mxu0 %v6861_v0 }
  0xc8   : > { %2746 = vmatpush1.bf16.msra.mxu1 %v6444_v49  ;;  %v6009_v49 = vcombine.low %v458_v32, %v462_v33  ;;  %v642_v33 = vld [vmem:[%s7071_s21 + $0x780] sm:$0xff] }
  0xc9   : > { %2747 = vmatprep.subr.bf16.mxu1 %v6861_v0  ;;  %3035 = vmatpush1.bf16.msra.mxu0 %v6454_v50  ;;  %v6146_v50 = vcombine.high %v594_v42, %v598_v43  ;;  %v654_v42 = vld [vmem:[%s7071_s21 + $0x7e0] sm:$0xff] }
  0xca   : > { %2627 = vmatmul.mubr.bf16.gmra.mxu1 %v6097_v51  ;;  %2499 = vmatmul.mubr.bf16.gmra.mxu0 %v5969_v52  ;;  %v6018_v51 = vcombine.high %v466_v44, %v470_v45  ;;  %v6467_v52 = vld [vmem:[#allocation6 + $0xc8] sm:$0xff]   ;;  %v522_v43 = vld [vmem:[%s7071_s21 + $0x3c0] sm:$0xff] }
  0xcb   : > { %2634 = vmatprep.mubr.bf16.mxu1 %v6106_v53  ;;  %2506 = vmatprep.mubr.bf16.mxu0 %v5978_v54  ;;  %v6471_v53 = vld [vmem:[#allocation6 + $0x148] sm:$0xff]   ;;  %v602_v54 = vld [vmem:[%s7071_s21 + $0x640] sm:$0xff] }
  0xcc   : > { %2748 = vmatpush1.bf16.msra.mxu1 %v6445_v55  ;;  %3036 = vmatprep.subr.bf16.mxu0 %v6861_v0  ;;  %v606_v55 = vld [vmem:[%s7071_s21 + $0x660] sm:$0xff] }
  0xcd   : > { %2749 = vmatprep.subr.bf16.mxu1 %v6861_v0  ;;  %3037 = vmatpush1.bf16.msra.mxu0 %v6456_v56  ;;  %v474_v56 = vld [vmem:[%s7071_s21 + $0x240] sm:$0xff] }
  0xce   : > { %3038 = vmatprep.subr.bf16.mxu0 %v6861_v0  ;;  %v6025_v6 = vcombine.low %v474_v56, %v478_v57 }
  0xd0   : > { %2750 = vmatpush1.bf16.msra.mxu1 %v6446_v61  ;;  %v6017_v61 = vcombine.low %v466_v44, %v470_v45  ;;  %v526_v44 = vld [vmem:[%s7071_s21 + $0x3e0] sm:$0xff] }
  0xd1   : > { %2751 = vmatprep.subr.bf16.mxu1 %v6861_v0  ;;  %3039 = vmatpush1.bf16.msra.mxu0 %v6457_v62  ;;  %v6154_v62 = vcombine.high %v602_v54, %v606_v55 }
  0xd2   : > { %2635 = vmatmul.mubr.bf16.gmra.mxu1 %v6105_v63  ;;  %2507 = vmatmul.mubr.bf16.gmra.mxu0 %v5977_v1  ;;  %v6026_v63 = vcombine.high %v474_v56, %v478_v57  ;;  %v610_v1 = vld [vmem:[%s7071_s21 + $0x680] sm:$0xff]  ;;  %v411_v57 = vld [vmem:[%s7071_s21 + $0x48] sm:$0xff] }
  0xd3   : > { %2642 = vmatprep.mubr.bf16.mxu1 %v6114_v2  ;;  %2514 = vmatprep.mubr.bf16.mxu0 %v5986_v3  ;;  %v614_v2 = vld [vmem:[%s7071_s21 + $0x6a0] sm:$0xff] }
  0xd4   : > { %2752 = vmatpush1.bf16.msra.mxu1 %v6447_v4  ;;  %3040 = vmatprep.subr.bf16.mxu0 %v6861_v0  ;;  %v482_v3 = vld [vmem:[%s7071_s21 + $0x280] sm:$0xff]  ;;  %v6162_v7 = vcombine.high %v610_v1, %v614_v2 }
  0xd5   : > { %2753 = vmatprep.subr.bf16.mxu1 %v6861_v0  ;;  %3041 = vmatpush1.bf16.msra.mxu0 %v6459_v5  ;;  %v486_v4 = vld [vmem:[%s7071_s21 + $0x2a0] sm:$0xff]  ;;  %v6153_v5 = vcombine.low %v602_v54, %v606_v55  ;;  %v6073_v54 = vcombine.low %v522_v43, %v526_v44 }
  0xd6   : > { %3042 = vmatprep.subr.bf16.mxu0 %v6861_v0  ;;  %v6034_v8 = vcombine.high %v482_v3, %v486_v4 }
  0xd8   : > { %2754 = vmatpush1.bf16.msra.mxu1 %v6448_v10  ;;  %v622_v10 = vld [vmem:[%s7071_s21 + $0x6e0] sm:$0xff] }
  0xd9   : > { %2755 = vmatprep.subr.bf16.mxu1 %v6861_v0  ;;  %3043 = vmatpush1.bf16.msra.mxu0 %v6460_v11  ;;  %v490_v11 = vld [vmem:[%s7071_s21 + $0x2c0] sm:$0xff]  ;;  %v6169_v21 = vcombine.low %v618_v9, %v622_v10 }
  0xda   : > { %2643 = vmatmul.mubr.bf16.gmra.mxu1 %v6113_v12  ;;  %2515 = vmatmul.mubr.bf16.gmra.mxu0 %v5985_v13  ;;  %v494_v12 = vld [vmem:[%s7071_s21 + $0x2e0] sm:$0xff]  ;;  %v6161_v13 = vcombine.low %v610_v1, %v614_v2 }
  0xdb   : > { %2650 = vmatprep.mubr.bf16.mxu1 %v6122_v14  ;;  %2522 = vmatprep.mubr.bf16.mxu0 %v5994_v15  ;;  %v6033_v14 = vcombine.low %v482_v3, %v486_v4  ;;  %v6170_v15 = vcombine.high %v618_v9, %v622_v10  ;;  %v419_v3 = vld [vmem:[%s7071_s21 + $0x88] sm:$0xff]  ;;  %v6474_v4 = vld [vmem:[#allocation6 + $0x1b0] sm:$0xff]  }
  0xdc   : > { %2756 = vmatpush2.bf16.msra.mxu1 %v6449_v16  ;;  %3044 = vmatprep.subr.bf16.mxu0 %v6861_v0  ;;  %v6042_v16 = vcombine.high %v490_v11, %v494_v12 }
  0xdd   : > { %2757 = vmatprep.subr.bf16.mxu1 %v6861_v0  ;;  %3045 = vmatpush2.bf16.msra.mxu0 %v6462_v17  ;;  %v626_v17 = vld [vmem:[%s7071_s21 + $0x700] sm:$0xff] }
  0xde   : > { %3046 = vmatprep.subr.bf16.mxu0 %v6861_v0 }
  0xe0   : > { %2758 = vmatpush2.bf16.msra.mxu1 %v6452_v22  ;;  %v6041_v22 = vcombine.low %v490_v11, %v494_v12  ;;  %v6475_v12 = vld [vmem:[#allocation6 + $0x1a8] sm:$0xff]  }
  0xe1   : > { %2759 = vmatprep.subr.bf16.mxu1 %v6861_v0  ;;  %3047 = vmatpush2.bf16.msra.mxu0 %v6463_v23  ;;  %v6178_v23 = vcombine.high %v626_v17, %v630_v18 }
  0xe2   : > { %2651 = vmatmul.mubr.bf16.gmra.mxu1 %v6121_v24  ;;  %2523 = vmatmul.mubr.bf16.gmra.mxu0 %v5993_v25  ;;  %v6050_v24 = vcombine.high %v498_v19, %v502_v20  ;;  %v634_v25 = vld [vmem:[%s7071_s21 + $0x740] sm:$0xff] }
  0xe3   : > { %2658 = vmatprep.mubr.bf16.mxu1 %v6130_v26  ;;  %2530 = vmatprep.mubr.bf16.mxu0 %v6002_v27  ;;  %v638_v26 = vld [vmem:[%s7071_s21 + $0x760] sm:$0xff] }
  0xe4   : > { %2760 = vmatpush2.bf16.msra.mxu1 %v6455_v28  ;;  %3048 = vmatprep.subr.bf16.mxu0 %v6861_v0  ;;  %v506_v27 = vld [vmem:[%s7071_s21 + $0x340] sm:$0xff]  ;;  %v6186_v31 = vcombine.high %v634_v25, %v638_v26 }
  0xe5   : > { %2761 = vmatprep.subr.bf16.mxu1 %v6861_v0  ;;  %3049 = vmatpush2.bf16.msra.mxu0 %v6465_v29  ;;  %v510_v28 = vld [vmem:[%s7071_s21 + $0x360] sm:$0xff]  ;;  %v6177_v29 = vcombine.low %v626_v17, %v630_v18 }
  0xe6   : > { %3050 = vmatprep.subr.bf16.mxu0 %v6861_v0  ;;  %v6058_v32 = vcombine.high %v506_v27, %v510_v28  ;;  %v6476_v17 = vld [vmem:[#allocation6 + $0x1a0] sm:$0xff]  }
  0xe8   : > { %2762 = vmatpush2.bf16.msra.mxu1 %v6458_v34  ;;  %v646_v34 = vld [vmem:[%s7071_s21 + $0x7a0] sm:$0xff] }
  0xe9   : > { %2763 = vmatprep.subr.bf16.mxu1 %v6861_v0  ;;  %3051 = vmatpush2.bf16.msra.mxu0 %v6466_v35  ;;  %v514_v35 = vld [vmem:[%s7071_s21 + $0x380] sm:$0xff]  ;;  %v6193_v45 = vcombine.low %v642_v33, %v646_v34 }
  0xea   : > { %2659 = vmatmul.mubr.bf16.gmra.mxu1 %v6129_v36  ;;  %2531 = vmatmul.mubr.bf16.gmra.mxu0 %v6001_v37  ;;  %v518_v36 = vld [vmem:[%s7071_s21 + $0x3a0] sm:$0xff]  ;;  %v6185_v37 = vcombine.low %v634_v25, %v638_v26  ;;  %v436_v25 = vld [vmem:[%s7071_s21 + $0x110] sm:$0xff] }
  0xeb   : > { %2666 = vmatprep.mubr.bf16.mxu1 %v6138_v38  ;;  %2538 = vmatprep.mubr.bf16.mxu0 %v6010_v39  ;;  %v6057_v38 = vcombine.low %v506_v27, %v510_v28  ;;  %v6194_v39 = vcombine.high %v642_v33, %v646_v34  ;;  %v440_v26 = vld [vmem:[%s7071_s21 + $0x130] sm:$0xff]  ;;  %v443_v33 = vld [vmem:[%s7071_s21 + $0x148] sm:$0xff] }
  0xec   : > { %2764 = vmatpush2.bf16.msra.mxu1 %v6461_v40  ;;  %3052 = vmatprep.subr.bf16.mxu0 %v6861_v0  ;;  %v6066_v40 = vcombine.high %v514_v35, %v518_v36  ;;  %v6478_v27 = vld [vmem:[#allocation6 + $0x190] sm:$0xff]   ;;  %v447_v34 = vld [vmem:[%s7071_s21 + $0x168] sm:$0xff] }
  0xed   : > { %2765 = vmatprep.subr.bf16.mxu1 %v6861_v0  ;;  %3053 = vmatpush2.bf16.msra.mxu0 %v6468_v41  ;;  %v650_v41 = vld [vmem:[%s7071_s21 + $0x7c0] sm:$0xff] }
  0xee   : > { %3054 = vmatprep.subr.bf16.mxu0 %v6861_v0 }
  0xf0   : > { %2766 = vmatpush2.bf16.msra.mxu1 %v6464_v46  ;;  %v6065_v46 = vcombine.low %v514_v35, %v518_v36  ;;  %v444_v35 = vld [vmem:[%s7071_s21 + $0x150] sm:$0xff] }
  0xf1   : > { %2767 = vmatprep.subr.bf16.mxu1 %v6861_v0  ;;  %3055 = vmatpush2.bf16.msra.mxu0 %v6469_v47  ;;  %v6202_v47 = vcombine.high %v650_v41, %v654_v42  ;;  %v448_v36 = vld [vmem:[%s7071_s21 + $0x170] sm:$0xff] }
  0xf2   : > { %2667 = vmatmul.mubr.bf16.gmra.mxu1 %v6137_v48  ;;  %2539 = vmatmul.mubr.bf16.gmra.mxu0 %v6009_v49  ;;  %v6074_v48 = vcombine.high %v522_v43, %v526_v44  ;;  %v403_v49 = vld [vmem:[%s7071_s21 + $0x8] sm:$0xff] }
  0xf3   : > { %2674 = vmatprep.mubr.bf16.mxu1 %v6146_v50  ;;  %2546 = vmatprep.mubr.bf16.mxu0 %v6018_v51  ;;  %v407_v50 = vld [vmem:[%s7071_s21 + $0x28] sm:$0xff]  ;;  %v404_v51 = vld [vmem:[%s7071_s21 + $0x10] sm:$0xff] }
  0xf4   : > { %2768 = vmatpush2.bf16.msra.mxu1 %v6467_v52  ;;  %3056 = vmatprep.subr.bf16.mxu0 %v6861_v0  ;;  %v408_v52 = vld [vmem:[%s7071_s21 + $0x30] sm:$0xff]  ;;  %v5956_v55 = vcombine.high %v403_v49, %v407_v50  ;;  %v451_v43 = vld [vmem:[%s7071_s21 + $0x188] sm:$0xff] }
  0xf5   : > { %2769 = vmatprep.subr.bf16.mxu1 %v6861_v0  ;;  %3057 = vmatpush2.bf16.msra.mxu0 %v6471_v53  ;;  %v6201_v53 = vcombine.low %v650_v41, %v654_v42  ;;  %v5958_v56 = vcombine.high %v404_v51, %v408_v52  ;;  %v5998_v41 = vcombine.high %v444_v35, %v448_v36  ;;  %v6481_v42 = vld [vmem:[#allocation6 + $0x1f8] sm:$0xff]   ;;  %v455_v44 = vld [vmem:[%s7071_s21 + $0x1a8] sm:$0xff] }
  0xf6   : > { %3058 = vmatprep.subr.bf16.mxu0 %v6861_v0 }
  0xf8   : > { %2770 = vmatpush2.bf16.msra.mxu1 %v6470_v58  ;;  %v415_v58 = vld [vmem:[%s7071_s21 + $0x68] sm:$0xff] }
  0xf9   : > { %3059 = vmatpush2.bf16.msra.mxu0 %v6472_v59  ;;  %3317 = vmatprep.subr.bf16.mxu1 %v6861_v0  ;;  %v412_v59 = vld [vmem:[%s7071_s21 + $0x50] sm:$0xff]  ;;  %v5964_v1 = vcombine.high %v411_v57, %v415_v58 }
  0xfa   : > { %2675 = vmatmul.mubr.bf16.gmra.mxu1 %v6145_v60  ;;  %2547 = vmatmul.mubr.bf16.gmra.mxu0 %v6017_v61  ;;  %v416_v60 = vld [vmem:[%s7071_s21 + $0x70] sm:$0xff]  ;;  %v5955_v61 = vcombine.low %v403_v49, %v407_v50  ;;  %v5997_v49 = vcombine.low %v444_v35, %v448_v36  ;;  %v6004_v50 = vcombine.high %v451_v43, %v455_v44  ;;  %v491_v35 = vld [vmem:[%s7071_s21 + $0x2c8] sm:$0xff] }
  0xfb   : > { %2682 = vmatprep.mubr.bf16.mxu1 %v6154_v62  ;;  %2554 = vmatprep.mubr.bf16.mxu0 %v6026_v63  ;;  %v5957_v62 = vcombine.low %v404_v51, %v408_v52  ;;  %v6473_v63 = vld [vmem:[#allocation6 + $0x1b8] sm:$0xff]   ;;  %v5966_v2 = vcombine.high %v412_v59, %v416_v60  ;;  %v5965_v9 = vcombine.low %v412_v59, %v416_v60  ;;  %v6483_v52 = vld [vmem:[#allocation6 + $0x1e8] sm:$0xff]  }
 0x102   : > { %2683 = vmatmul.mubr.bf16.gmra.mxu1 %v6153_v5  ;;  %2555 = vmatmul.mubr.bf16.gmra.mxu0 %v6025_v6  ;;  %v423_v5 = vld [vmem:[%s7071_s21 + $0xa8] sm:$0xff]  ;;  %v420_v6 = vld [vmem:[%s7071_s21 + $0x90] sm:$0xff] }
 0x103   : > { %2690 = vmatprep.mubr.bf16.mxu1 %v6162_v7  ;;  %2562 = vmatprep.mubr.bf16.mxu0 %v6034_v8  ;;  %v424_v7 = vld [vmem:[%s7071_s21 + $0xb0] sm:$0xff]  ;;  %v5963_v8 = vcombine.low %v411_v57, %v415_v58  ;;  %v5972_v10 = vcombine.high %v419_v3, %v423_v5  ;;  %v5971_v18 = vcombine.low %v419_v3, %v423_v5 }
 0x104   : > { %v5974_v11 = vcombine.high %v420_v6, %v424_v7  ;;  %v5973_v19 = vcombine.low %v420_v6, %v424_v7  ;;  %v6003_v57 = vcombine.low %v451_v43, %v455_v44  ;;  %v475_v7 = vld [vmem:[%s7071_s21 + $0x248] sm:$0xff] }
 0x10a   : > { %2691 = vmatmul.mubr.bf16.gmra.mxu1 %v6161_v13  ;;  %2563 = vmatmul.mubr.bf16.gmra.mxu0 %v6033_v14  ;;  %v427_v13 = vld [vmem:[%s7071_s21 + $0xc8] sm:$0xff] }
 0x10b   : > { %2698 = vmatprep.mubr.bf16.mxu1 %v6170_v15  ;;  %2570 = vmatprep.mubr.bf16.mxu0 %v6042_v16  ;;  %v431_v14 = vld [vmem:[%s7071_s21 + $0xe8] sm:$0xff]  ;;  %v428_v15 = vld [vmem:[%s7071_s21 + $0xd0] sm:$0xff] }
 0x10c   : > { %v432_v16 = vld [vmem:[%s7071_s21 + $0xf0] sm:$0xff]  ;;  %v5980_v20 = vcombine.high %v427_v13, %v431_v14  ;;  %v5979_v28 = vcombine.low %v427_v13, %v431_v14 }
 0x112   : > { %2699 = vmatmul.mubr.bf16.gmra.mxu1 %v6169_v21  ;;  %2571 = vmatmul.mubr.bf16.gmra.mxu0 %v6041_v22  ;;  %v5982_v21 = vcombine.high %v428_v15, %v432_v16  ;;  %v6477_v22 = vld [vmem:[#allocation6 + $0x198] sm:$0xff]  }
 0x113   : > { %2706 = vmatprep.mubr.bf16.mxu1 %v6178_v23  ;;  %2578 = vmatprep.mubr.bf16.mxu0 %v6050_v24  ;;  %v435_v23 = vld [vmem:[%s7071_s21 + $0x108] sm:$0xff] }
 0x114   : > { %v439_v24 = vld [vmem:[%s7071_s21 + $0x128] sm:$0xff] }
 0x11a   : > { %2707 = vmatmul.mubr.bf16.gmra.mxu1 %v6177_v29  ;;  %2579 = vmatmul.mubr.bf16.gmra.mxu0 %v6049_v30  ;;  %v5981_v29 = vcombine.low %v428_v15, %v432_v16  ;;  %v5988_v30 = vcombine.high %v435_v23, %v439_v24 }
 0x11b   : > { %2714 = vmatprep.mubr.bf16.mxu1 %v6186_v31  ;;  %2586 = vmatprep.mubr.bf16.mxu0 %v6058_v32  ;;  %v5990_v31 = vcombine.high %v436_v25, %v440_v26  ;;  %v6479_v32 = vld [vmem:[#allocation6 + $0x188] sm:$0xff]  }
 0x122   : > { %2715 = vmatmul.mubr.bf16.gmra.mxu1 %v6185_v37  ;;  %2587 = vmatmul.mubr.bf16.gmra.mxu0 %v6057_v38  ;;  %v6480_v37 = vld [vmem:[#allocation6 + $0x180] sm:$0xff]   ;;  %v5987_v38 = vcombine.low %v435_v23, %v439_v24  ;;  %v488_v23 = vld [vmem:[%s7071_s21 + $0x2b0] sm:$0xff] }
 0x123   : > { %2722 = vmatprep.mubr.bf16.mxu1 %v6194_v39  ;;  %2594 = vmatprep.mubr.bf16.mxu0 %v6066_v40  ;;  %v5989_v39 = vcombine.low %v436_v25, %v440_v26  ;;  %v5996_v40 = vcombine.high %v443_v33, %v447_v34 }
 0x12a   : > { %2723 = vmatmul.mubr.bf16.gmra.mxu1 %v6193_v45  ;;  %2595 = vmatmul.mubr.bf16.gmra.mxu0 %v6065_v46  ;;  %v452_v45 = vld [vmem:[%s7071_s21 + $0x190] sm:$0xff] }
 0x12b   : > { %2730 = vmatprep.mubr.bf16.mxu1 %v6202_v47  ;;  %2602 = vmatprep.mubr.bf16.mxu0 %v6074_v48  ;;  %v456_v46 = vld [vmem:[%s7071_s21 + $0x1b0] sm:$0xff]  ;;  %v5995_v48 = vcombine.low %v443_v33, %v447_v34  ;;  %v4272_v34 = vld [vmem:[#allocation9 + $0x78] sm:$0xff] }
 0x12c   : > { %v6482_v47 = vld [vmem:[#allocation6 + $0x1f0] sm:$0xff]   ;;  %v6006_v51 = vcombine.high %v452_v45, %v456_v46  ;;  %v6005_v58 = vcombine.low %v452_v45, %v456_v46 }
 0x132   : > { %2731 = vmatmul.mubr.bf16.gmra.mxu1 %v6201_v53  ;;  %2603 = vmatmul.mubr.bf16.gmra.mxu0 %v6073_v54  ;;  %v459_v53 = vld [vmem:[%s7071_s21 + $0x1c8] sm:$0xff] }
 0x133   : > { %2771 = vmatprep.mubr.bf16.mxu1 %v5956_v55  ;;  %3060 = vmatprep.mubr.bf16.mxu0 %v5958_v56  ;;  %v463_v54 = vld [vmem:[%s7071_s21 + $0x1e8] sm:$0xff]  ;;  %v460_v55 = vld [vmem:[%s7071_s21 + $0x1d0] sm:$0xff] }
 0x134   : > { %v464_v56 = vld [vmem:[%s7071_s21 + $0x1f0] sm:$0xff]  ;;  %v6012_v59 = vcombine.high %v459_v53, %v463_v54  ;;  %v6011_v3 = vcombine.low %v459_v53, %v463_v54  ;;  %v499_v53 = vld [vmem:[%s7071_s21 + $0x308] sm:$0xff] }
 0x135   : > { %v6014_v60 = vcombine.high %v460_v55, %v464_v56  ;;  %v6486_v54 = vld [vmem:[#allocation6 + $0x1d0] sm:$0xff]  }
 0x13a   : > { %2772 = vmatmul.mubr.bf16.vlgmr.msra.gmra.mxu1 %v5955_v61  ;;  %3061 = vmatmul.mubr.bf16.vlgmr.msra.gmra.mxu0 %v5957_v62  ;;  %v6484_v61 = vld [vmem:[#allocation6 + $0x1e0] sm:$0xff]   ;;  %v467_v62 = vld [vmem:[%s7071_s21 + $0x208] sm:$0xff] }
 0x13b   : > { %3318 = vmatpush1.bf16.msra.mxu1 %v6473_v63  ;;  %2779 = vmatprep.mubr.bf16.mxu1 %v5964_v1  ;;  %v471_v63 = vld [vmem:[%s7071_s21 + $0x228] sm:$0xff]  ;;  %v468_v1 = vld [vmem:[%s7071_s21 + $0x210] sm:$0xff] }
 0x13c   : > { %3068 = vmatprep.mubr.bf16.mxu0 %v5966_v2  ;;  %3319 = vmatprep.subr.bf16.mxu1 %v6861_v0  ;;  %v472_v2 = vld [vmem:[%s7071_s21 + $0x230] sm:$0xff]  ;;  %v6020_v5 = vcombine.high %v467_v62, %v471_v63 }
 0x13d   : > { %v6022_v6 = vcombine.high %v468_v1, %v472_v2 }
 0x13f   : > { %3320 = vmatpush1.bf16.msra.mxu1 %v6474_v4  ;;  %v6013_v4 = vcombine.low %v460_v55, %v464_v56 }
 0x140   : > { %3321 = vmatprep.subr.bf16.mxu1 %v6861_v0 }
 0x142   : > { %2780 = vmatmul.mubr.bf16.gmra.mxu1 %v5963_v8  ;;  %3069 = vmatmul.mubr.bf16.gmra.mxu0 %v5965_v9  ;;  %v479_v8 = vld [vmem:[%s7071_s21 + $0x268] sm:$0xff]  ;;  %v476_v9 = vld [vmem:[%s7071_s21 + $0x250] sm:$0xff] }
 0x143   : > { %2787 = vmatprep.mubr.bf16.mxu1 %v5972_v10  ;;  %3076 = vmatprep.mubr.bf16.mxu0 %v5974_v11  ;;  %v480_v10 = vld [vmem:[%s7071_s21 + $0x270] sm:$0xff]  ;;  %v6019_v11 = vcombine.low %v467_v62, %v471_v63  ;;  %v6028_v13 = vcombine.high %v475_v7, %v479_v8  ;;  %v6027_v26 = vcombine.low %v475_v7, %v479_v8  ;;  %v507_v8 = vld [vmem:[%s7071_s21 + $0x348] sm:$0xff] }
 0x144   : > { %3322 = vmatpush1.bf16.msra.mxu1 %v6475_v12  ;;  %v6021_v12 = vcombine.low %v468_v1, %v472_v2  ;;  %v6030_v14 = vcombine.high %v476_v9, %v480_v10 }
 0x145   : > { %3323 = vmatprep.subr.bf16.mxu1 %v6861_v0 }
 0x148   : > { %3324 = vmatpush1.bf16.msra.mxu1 %v6476_v17  ;;  %v483_v17 = vld [vmem:[%s7071_s21 + $0x288] sm:$0xff] }
 0x149   : > { %3325 = vmatprep.subr.bf16.mxu1 %v6861_v0 }
 0x14a   : > { %2788 = vmatmul.mubr.bf16.gmra.mxu1 %v5971_v18  ;;  %3077 = vmatmul.mubr.bf16.gmra.mxu0 %v5973_v19  ;;  %v6485_v18 = vld [vmem:[#allocation6 + $0x1d8] sm:$0xff]  }
 0x14b   : > { %2795 = vmatprep.mubr.bf16.mxu1 %v5980_v20  ;;  %3084 = vmatprep.mubr.bf16.mxu0 %v5982_v21  ;;  %v487_v21 = vld [vmem:[%s7071_s21 + $0x2a8] sm:$0xff] }
 0x14c   : > { %3326 = vmatpush1.bf16.msra.mxu1 %v6477_v22  ;;  %v484_v22 = vld [vmem:[%s7071_s21 + $0x290] sm:$0xff]  ;;  %v6035_v44 = vcombine.low %v483_v17, %v487_v21 }
 0x14d   : > { %3327 = vmatprep.subr.bf16.mxu1 %v6861_v0  ;;  %v6037_v45 = vcombine.low %v484_v22, %v488_v23 }
 0x150   : > { %3328 = vmatpush1.bf16.msra.mxu1 %v6478_v27  ;;  %v6029_v27 = vcombine.low %v476_v9, %v480_v10 }
 0x151   : > { %3329 = vmatprep.subr.bf16.mxu1 %v6861_v0 }
 0x152   : > { %2796 = vmatmul.mubr.bf16.gmra.mxu1 %v5979_v28  ;;  %3085 = vmatmul.mubr.bf16.gmra.mxu0 %v5981_v29  ;;  %v6036_v28 = vcombine.high %v483_v17, %v487_v21  ;;  %v6038_v29 = vcombine.high %v484_v22, %v488_v23 }
 0x153   : > { %2803 = vmatprep.mubr.bf16.mxu1 %v5988_v30  ;;  %3092 = vmatprep.mubr.bf16.mxu0 %v5990_v31 }
 0x154   : > { %3330 = vmatpush1.bf16.msra.mxu1 %v6479_v32 }
 0x155   : > { %3331 = vmatprep.subr.bf16.mxu1 %v6861_v0 }
 0x158   : > { %3332 = vmatpush1.bf16.msra.mxu1 %v6480_v37 }
 0x159   : > { %3333 = vmatprep.subr.bf16.mxu1 %v6861_v0 }
 0x15a   : > { %2804 = vmatmul.mubr.bf16.gmra.mxu1 %v5987_v38  ;;  %3093 = vmatmul.mubr.bf16.gmra.mxu0 %v5989_v39  ;;  %v495_v38 = vld [vmem:[%s7071_s21 + $0x2e8] sm:$0xff]  ;;  %v492_v39 = vld [vmem:[%s7071_s21 + $0x2d0] sm:$0xff] }
 0x15b   : > { %2811 = vmatprep.mubr.bf16.mxu1 %v5996_v40  ;;  %3100 = vmatprep.mubr.bf16.mxu0 %v5998_v41  ;;  %v496_v40 = vld [vmem:[%s7071_s21 + $0x2f0] sm:$0xff]  ;;  %v8718_v41 = vmov 0.0   ;;  %v6044_v46 = vcombine.high %v491_v35, %v495_v38  ;;  %v6043_v62 = vcombine.low %v491_v35, %v495_v38  ;;  %v519_v35 = vld [vmem:[%s7071_s21 + $0x3a8] sm:$0xff] }
 0x15c   : > { %3334 = vmatpush2.bf16.msra.mxu1 %v6481_v42  ;;  %4744 = vmatprep.subr.mxu0 %v8718_v41  ;;  %v6045_v63 = vcombine.low %v492_v39, %v496_v40 }
 0x15d   : > { %3335 = vmatprep.subr.bf16.mxu1 %v6861_v0  ;;  %4745 = vmatpush1.msra.mxu0 %v4272_v34 }
 0x15e   : > { %4746 = vmatprep.subr.mxu0 %v8718_v41 }
 0x160   : > { %3336 = vmatpush2.bf16.msra.mxu1 %v6482_v47  ;;  %v6046_v47 = vcombine.high %v492_v39, %v496_v40 }
 0x161   : > { %3337 = vmatprep.subr.bf16.mxu1 %v6861_v0 }
 0x162   : > { %2812 = vmatmul.mubr.bf16.gmra.mxu1 %v5995_v48  ;;  %3101 = vmatmul.mubr.bf16.gmra.mxu0 %v5997_v49 }
 0x163   : > { %2819 = vmatprep.mubr.bf16.mxu1 %v6004_v50  ;;  %3108 = vmatprep.mubr.bf16.mxu0 %v6006_v51  ;;  %v4271_v50 = vld [vmem:[#allocation9 + $0x70] sm:$0xff] }
 0x164   : > { %3338 = vmatpush2.bf16.msra.mxu1 %v6483_v52  ;;  %4747 = vmatpush1.msra.mxu0 %v4271_v50 }
 0x165   : > { %3339 = vmatprep.subr.bf16.mxu1 %v6861_v0  ;;  %4748 = vmatprep.subr.mxu0 %v8718_v41 }
 0x168   : > { %3340 = vmatpush2.bf16.msra.mxu1 %v6484_v61 }
 0x169   : > { %3341 = vmatprep.subr.bf16.mxu1 %v6861_v0 }
 0x16a   : > { %2820 = vmatmul.mubr.bf16.gmra.mxu1 %v6003_v57  ;;  %3109 = vmatmul.mubr.bf16.gmra.mxu0 %v6005_v58  ;;  %v503_v57 = vld [vmem:[%s7071_s21 + $0x328] sm:$0xff]  ;;  %v500_v58 = vld [vmem:[%s7071_s21 + $0x310] sm:$0xff] }
 0x16b   : > { %2827 = vmatprep.mubr.bf16.mxu1 %v6012_v59  ;;  %3116 = vmatprep.mubr.bf16.mxu0 %v6014_v60  ;;  %v504_v59 = vld [vmem:[%s7071_s21 + $0x330] sm:$0xff]  ;;  %v6052_v1 = vcombine.high %v499_v53, %v503_v57 }
 0x16c   : > { %3342 = vmatpush2.bf16.msra.mxu1 %v6485_v18  ;;  %v6054_v2 = vcombine.high %v500_v58, %v504_v59  ;;  %v6051_v18 = vcombine.low %v499_v53, %v503_v57  ;;  %v527_v57 = vld [vmem:[%s7071_s21 + $0x3e8] sm:$0xff] }
 0x16d   : > { %3343 = vmatprep.subr.bf16.mxu1 %v6861_v0 }
 0x170   : > { %3344 = vmatpush2.bf16.msra.mxu1 %v6486_v54  ;;  %v523_v54 = vld [vmem:[%s7071_s21 + $0x3c8] sm:$0xff] }
 0x171   : > { %3345 = vmatprep.subr.bf16.mxu1 %v6861_v0 }
 0x172   : > { %2828 = vmatmul.mubr.bf16.gmra.mxu1 %v6011_v3  ;;  %3117 = vmatmul.mubr.bf16.gmra.mxu0 %v6013_v4 }
 0x173   : > { %2835 = vmatprep.mubr.bf16.mxu1 %v6020_v5  ;;  %3124 = vmatprep.mubr.bf16.mxu0 %v6022_v6  ;;  %v4270_v5 = vld [vmem:[#allocation9 + $0x68] sm:$0xff] }
 0x174   : > { %4749 = vmatpush1.msra.mxu0 %v4270_v5 }
 0x175   : > { %4750 = vmatprep.subr.mxu0 %v8718_v41 }
 0x17a   : > { %v7297_v15 = vpop.f32.mrf.mxu1  ;;  %2836 = vmatmul.mubr.bf16.gmra.mxu1 %v6019_v11  ;;  %v7299_v16 = vpop.f32.mrf.mxu0  ;;  %3125 = vmatmul.mubr.bf16.gmra.mxu0 %v6021_v12  ;;  %v511_v11 = vld [vmem:[%s7071_s21 + $0x368] sm:$0xff]  ;;  %v508_v12 = vld [vmem:[%s7071_s21 + $0x350] sm:$0xff] }
 0x17b   : > { %2843 = vmatprep.mubr.bf16.mxu1 %v6028_v13  ;;  %3132 = vmatprep.mubr.bf16.mxu0 %v6030_v14  ;;  %v512_v13 = vld [vmem:[%s7071_s21 + $0x370] sm:$0xff]  ;;  %v6059_v40 = vcombine.low %v507_v8, %v511_v11 }
 0x17c   : > { %v2614_v19 = vpop.f32.mrf.mxu1  ;;  %v2486_v20 = vpop.f32.mrf.mxu0  ;;  %v6062_v21 = vcombine.high %v508_v12, %v512_v13 }
 0x17d   : > { %v6053_v19 = vcombine.low %v500_v58, %v504_v59  ;;  %v6060_v20 = vcombine.high %v507_v8, %v511_v11  ;;  %v528_v58 = vld [vmem:[%s7071_s21 + $0x3f0] sm:$0xff]  ;;  %v531_v11 = vld [vmem:[%s7071_s21 + $0x408] sm:$0xff] }
 0x17e   : > { %v7305_v24 = vpop.f32.mrf.mxu1  ;;  %v7307_v25 = vpop.f32.mrf.mxu0  ;;  %v4267_v8 = vld [vmem:[#allocation9 + $0x50] sm:$0xff] }
 0x180   : > { %v2617_v30 = vpop.f32.mrf.mxu1  ;;  %v2489_v31 = vpop.f32.mrf.mxu0 }
 0x181   : > { %v6487_v30 = vld [vmem:[#allocation6 + $0x1c8] sm:$0xff]  }
 0x182   : > { %v7310_v32 = vpop.f32.mrf.mxu1  ;;  %2844 = vmatmul.mubr.bf16.gmra.mxu1 %v6027_v26  ;;  %v7312_v33 = vpop.f32.mrf.mxu0  ;;  %3133 = vmatmul.mubr.bf16.gmra.mxu0 %v6029_v27  ;;  %v4269_v26 = vld [vmem:[#allocation9 + $0x60] sm:$0xff] }
 0x183   : > { %2851 = vmatprep.mubr.bf16.mxu1 %v6036_v28  ;;  %3140 = vmatprep.mubr.bf16.mxu0 %v6038_v29  ;;  %v515_v29 = vld [vmem:[%s7071_s21 + $0x388] sm:$0xff] }
 0x184   : > { %v2622_v36 = vpop.f32.mrf.mxu1  ;;  %v2494_v37 = vpop.f32.mrf.mxu0  ;;  %4751 = vmatpush1.msra.mxu0 %v4269_v26  ;;  %3346 = vmatpush2.bf16.msra.mxu1 %v6487_v30  ;;  %v6075_v26 = vcombine.low %v523_v54, %v527_v57 }
 0x185   : > { %v516_v36 = vld [vmem:[%s7071_s21 + $0x390] sm:$0xff]  ;;  %4752 = vmatprep.subr.mxu0 %v8718_v41  ;;  %3347 = vmatprep.subr.bf16.mxu1 %v6861_v0 }
 0x186   : > { %v7319_v42 = vpop.f32.mrf.mxu1  ;;  %v7321_v43 = vpop.f32.mrf.mxu0  ;;  %v520_v37 = vld [vmem:[%s7071_s21 + $0x3b0] sm:$0xff] }
 0x187   : > { %v524_v0 = vld [vmem:[%s7071_s21 + $0x3d0] sm:$0xff] }
 0x188   : > { %v2625_v48 = vpop.f32.mrf.mxu1  ;;  %v2497_v49 = vpop.f32.mrf.mxu0 }
 0x189   : > { %v4268_v49 = vld [vmem:[#allocation9 + $0x58] sm:$0xff] }
 0x18a   : > { %v7324_v51 = vpop.f32.mrf.mxu1  ;;  %2852 = vmatmul.mubr.bf16.gmra.mxu1 %v6035_v44  ;;  %v7326_v52 = vpop.f32.mrf.mxu0  ;;  %3141 = vmatmul.mubr.bf16.gmra.mxu0 %v6037_v45  ;;  %v6061_v44 = vcombine.low %v508_v12, %v512_v13  ;;  %v6068_v45 = vcombine.high %v515_v29, %v519_v35  ;;  %v6488_v12 = vld [vmem:[#allocation6 + $0x1c0] sm:$0xff]  }
 0x18b   : > { %2859 = vmatprep.mubr.bf16.mxu1 %v6044_v46  ;;  %3148 = vmatprep.mubr.bf16.mxu0 %v6046_v47  ;;  %v6070_v46 = vcombine.high %v516_v36, %v520_v37 }
 0x18c   : > { %v2630_v55 = vpop.f32.mrf.mxu1  ;;  %v2502_v56 = vpop.f32.mrf.mxu0  ;;  %4753 = vmatpush1.msra.mxu0 %v4268_v49  ;;  %3348 = vmatpush2.bf16.msra.mxu1 %v6488_v12  ;;  %v544_v49 = vld [vmem:[%s7071_s21 + $0x470] sm:$0xff]  ;;  %v551_v12 = vld [vmem:[%s7071_s21 + $0x4a8] sm:$0xff] }
 0x18d   : > { %4754 = vmatprep.subr.mxu0 %v8718_v41 }
 0x18e   : > { %v7333_v60 = vpop.f32.mrf.mxu1  ;;  %v7335_v61 = vpop.f32.mrf.mxu0  ;;  %4755 = vmatpush1.msra.mxu0 %v4267_v8 }
 0x18f   : > { %4756 = vmatprep.subr.mxu0 %v8718_v41 }
 0x190   : > { %v2633_v3 = vpop.f32.mrf.mxu1  ;;  %v2505_v4 = vpop.f32.mrf.mxu0 }
 0x191   : > { %v6078_v3 = vcombine.high %v524_v0, %v528_v58 }
 0x192   : > { %v7338_v6 = vpop.f32.mrf.mxu1  ;;  %2860 = vmatmul.mubr.bf16.gmra.mxu1 %v6043_v62  ;;  %v7340_v7 = vpop.f32.mrf.mxu0  ;;  %3149 = vmatmul.mubr.bf16.gmra.mxu0 %v6045_v63  ;;  %v6067_v63 = vcombine.low %v515_v29, %v519_v35  ;;  %v6077_v29 = vcombine.low %v524_v0, %v528_v58 }
 0x193   : > { %2867 = vmatprep.mubr.bf16.mxu1 %v6052_v1  ;;  %3156 = vmatprep.mubr.bf16.mxu0 %v6054_v2  ;;  %v6069_v1 = vcombine.low %v516_v36, %v520_v37  ;;  %v6076_v2 = vcombine.high %v523_v54, %v527_v57  ;;  %v4266_v36 = vld [vmem:[#allocation9 + $0x48] sm:$0xff] }
 0x194   : > { %v2638_v9 = vpop.f32.mrf.mxu1  ;;  %v2510_v10 = vpop.f32.mrf.mxu0  ;;  %4757 = vmatpush1.msra.mxu0 %v4266_v36 }
 0x195   : > { %4758 = vmatprep.subr.mxu0 %v8718_v41 }
 0x196   : > { %v7347_v14 = vpop.f32.mrf.mxu1  ;;  %v7349_v17 = vpop.f32.mrf.mxu0 }
 0x198   : > { %v2641_v22 = vpop.f32.mrf.mxu1  ;;  %v2513_v23 = vpop.f32.mrf.mxu0 }
 0x19a   : > { %v7351_v27 = vpop.f32.mrf.mxu1  ;;  %2868 = vmatmul.mubr.bf16.gmra.mxu1 %v6051_v18  ;;  %v7353_v28 = vpop.f32.mrf.mxu0  ;;  %3157 = vmatmul.mubr.bf16.gmra.mxu0 %v6053_v19  ;;  %v535_v19 = vld [vmem:[%s7071_s21 + $0x428] sm:$0xff] }
 0x19b   : > { %2875 = vmatprep.mubr.bf16.mxu1 %v6060_v20  ;;  %3164 = vmatprep.mubr.bf16.mxu0 %v6062_v21  ;;  %v532_v20 = vld [vmem:[%s7071_s21 + $0x410] sm:$0xff]  ;;  %v6084_v30 = vcombine.high %v531_v11, %v535_v19 }
 0x19c   : > { %v2646_v31 = vpop.f32.mrf.mxu1  ;;  %v2518_v34 = vpop.f32.mrf.mxu0  ;;  %v536_v21 = vld [vmem:[%s7071_s21 + $0x430] sm:$0xff] }
 0x19d   : > { %v6086_v31 = vcombine.high %v532_v20, %v536_v21  ;;  %v6085_v57 = vcombine.low %v532_v20, %v536_v21 }
 0x19e   : > { %v7360_v38 = vpop.f32.mrf.mxu1  ;;  %v7362_v39 = vpop.f32.mrf.mxu0 }
 0x1a0   : > { %v2649_v47 = vpop.f32.mrf.mxu1  ;;  %v2521_v48 = vpop.f32.mrf.mxu0 }
 0x1a1   : > { %v543_v47 = vld [vmem:[%s7071_s21 + $0x468] sm:$0xff]  ;;  %v540_v48 = vld [vmem:[%s7071_s21 + $0x450] sm:$0xff] }
 0x1a2   : > { %v7365_v50 = vpop.f32.mrf.mxu1  ;;  %2876 = vmatmul.mubr.bf16.gmra.mxu1 %v6059_v40  ;;  %v7367_v53 = vpop.f32.mrf.mxu0  ;;  %3165 = vmatmul.mubr.bf16.gmra.mxu0 %v6061_v44  ;;  %v539_v44 = vld [vmem:[%s7071_s21 + $0x448] sm:$0xff]  ;;  %v6094_v58 = vcombine.high %v540_v48, %v544_v49 }
 0x1a3   : > { %8759 = vst [vmem:[#allocation23_spill] sm:$0xff] %v7365_v50  ;;  %2883 = vmatprep.mubr.bf16.mxu1 %v6068_v45  ;;  %3172 = vmatprep.mubr.bf16.mxu0 %v6070_v46  ;;  %v6092_v0 = vcombine.high %v539_v44, %v543_v47  ;;  %v6091_v21 = vcombine.low %v539_v44, %v543_v47  ;;  %v559_v47 = vld [vmem:[%s7071_s21 + $0x4e8] sm:$0xff] }
 0x1a4   : > { %v2654_v55 = vpop.f32.mrf.mxu1  ;;  %v2526_v56 = vpop.f32.mrf.mxu0 }
 0x1a5   : > { %v6083_v56 = vcombine.low %v531_v11, %v535_v19 }
 0x1a6   : > { %v7374_v59 = vpop.f32.mrf.mxu1  ;;  %v7376_v62 = vpop.f32.mrf.mxu0 }
 0x1a7   : > { %8760 = vst [vmem:[#allocation24_spill] sm:$0xff] %v7374_v59 }
 0x1a8   : > { %v2657_v4 = vpop.f32.mrf.mxu1  ;;  %v2529_v5 = vpop.f32.mrf.mxu0 }
 0x1a9   : > { %v547_v5 = vld [vmem:[%s7071_s21 + $0x488] sm:$0xff] }
 0x1aa   : > { %v7378_v9 = vpop.f32.mrf.mxu1  ;;  %2884 = vmatmul.mubr.bf16.gmra.mxu1 %v6067_v63  ;;  %v7380_v10 = vpop.f32.mrf.mxu0  ;;  %3173 = vmatmul.mubr.bf16.gmra.mxu0 %v6069_v1 }
 0x1ab   : > { %8761 = vst [vmem:[#allocation25_spill] sm:$0xff] %v7378_v9  ;;  %2891 = vmatprep.mubr.bf16.mxu1 %v6076_v2  ;;  %3180 = vmatprep.mubr.bf16.mxu0 %v6078_v3  ;;  %v4265_v2 = vld [vmem:[#allocation9 + $0x40] sm:$0xff] }
 0x1ac   : > { %v2662_v13 = vpop.f32.mrf.mxu1  ;;  %v2534_v18 = vpop.f32.mrf.mxu0  ;;  %4759 = vmatpush1.msra.mxu0 %v4265_v2 }
 0x1ad   : > { %v548_v13 = vld [vmem:[%s7071_s21 + $0x490] sm:$0xff]  ;;  %4760 = vmatprep.subr.mxu0 %v8718_v41 }
 0x1ae   : > { %v7387_v22 = vpop.f32.mrf.mxu1  ;;  %v7389_v23 = vpop.f32.mrf.mxu0  ;;  %v552_v18 = vld [vmem:[%s7071_s21 + $0x4b0] sm:$0xff] }
 0x1af   : > { %8762 = vst [vmem:[#allocation26_spill] sm:$0xff] %v7387_v22 }
 0x1b0   : > { %v2665_v34 = vpop.f32.mrf.mxu1  ;;  %v2537_v35 = vpop.f32.mrf.mxu0 }
 0x1b1   : > { %v4264_v35 = vld [vmem:[#allocation9 + $0x38] sm:$0xff] }
 0x1b2   : > { %v7391_v37 = vpop.f32.mrf.mxu1  ;;  %2892 = vmatmul.mubr.bf16.gmra.mxu1 %v6075_v26  ;;  %v7393_v40 = vpop.f32.mrf.mxu0  ;;  %3181 = vmatmul.mubr.bf16.gmra.mxu0 %v6077_v29  ;;  %v6093_v26 = vcombine.low %v540_v48, %v544_v49  ;;  %v6100_v29 = vcombine.high %v547_v5, %v551_v12  ;;  %v556_v48 = vld [vmem:[%s7071_s21 + $0x4d0] sm:$0xff] }
 0x1b3   : > { %8763 = vst [vmem:[#allocation27_spill] sm:$0xff] %v7391_v37  ;;  %2899 = vmatprep.mubr.bf16.mxu1 %v6084_v30  ;;  %3188 = vmatprep.mubr.bf16.mxu0 %v6086_v31  ;;  %v6102_v30 = vcombine.high %v548_v13, %v552_v18  ;;  %v560_v49 = vld [vmem:[%s7071_s21 + $0x4f0] sm:$0xff] }
 0x1b4   : > { %v2670_v45 = vpop.f32.mrf.mxu1  ;;  %v2542_v46 = vpop.f32.mrf.mxu0  ;;  %4761 = vmatpush1.msra.mxu0 %v4264_v35  ;;  %v6110_v2 = vcombine.high %v556_v48, %v560_v49 }
 0x1b5   : > { %v555_v46 = vld [vmem:[%s7071_s21 + $0x4c8] sm:$0xff]  ;;  %4762 = vmatprep.subr.mxu0 %v8718_v41 }
 0x1b6   : > { %v7400_v54 = vpop.f32.mrf.mxu1  ;;  %v7402_v55 = vpop.f32.mrf.mxu0 }
 0x1b7   : > { %8764 = vst [vmem:[#allocation28_spill] sm:$0xff] %v7400_v54 }
 0x1b8   : > { %v2673_v63 = vpop.f32.mrf.mxu1  ;;  %v2545_v1 = vpop.f32.mrf.mxu0 }
 0x1b9   : > { %v6101_v63 = vcombine.low %v548_v13, %v552_v18  ;;  %v6108_v1 = vcombine.high %v555_v46, %v559_v47  ;;  %v564_v13 = vld [vmem:[%s7071_s21 + $0x510] sm:$0xff] }
 0x1ba   : > { %v7404_v3 = vpop.f32.mrf.mxu1  ;;  %2900 = vmatmul.mubr.bf16.gmra.mxu1 %v6083_v56  ;;  %v7406_v4 = vpop.f32.mrf.mxu0  ;;  %3189 = vmatmul.mubr.bf16.gmra.mxu0 %v6085_v57  ;;  %v568_v18 = vld [vmem:[%s7071_s21 + $0x530] sm:$0xff] }
 0x1bb   : > { %8765 = vst [vmem:[#allocation29_spill] sm:$0xff] %v7404_v3  ;;  %2907 = vmatprep.mubr.bf16.mxu1 %v6092_v0  ;;  %3196 = vmatprep.mubr.bf16.mxu0 %v6094_v58  ;;  %v6099_v58 = vcombine.low %v547_v5, %v551_v12  ;;  %v567_v12 = vld [vmem:[%s7071_s21 + $0x528] sm:$0xff] }
 0x1bc   : > { %v2678_v8 = vpop.f32.mrf.mxu1  ;;  %v2550_v11 = vpop.f32.mrf.mxu0 }
 0x1be   : > { %v7413_v19 = vpop.f32.mrf.mxu1  ;;  %v7415_v20 = vpop.f32.mrf.mxu0 }
 0x1bf   : > { %8766 = vst [vmem:[#allocation30_spill] sm:$0xff] %v7413_v19 }
 0x1c0   : > { %v2681_v31 = vpop.f32.mrf.mxu1  ;;  %v2553_v34 = vpop.f32.mrf.mxu0 }
 0x1c2   : > { %v7417_v36 = vpop.f32.mrf.mxu1  ;;  %2908 = vmatmul.mubr.bf16.gmra.mxu1 %v6091_v21  ;;  %v7419_v45 = vpop.f32.mrf.mxu0  ;;  %3197 = vmatmul.mubr.bf16.gmra.mxu0 %v6093_v26  ;;  %v4263_v21 = vld [vmem:[#allocation9 + $0x30] sm:$0xff] }
 0x1c3   : > { %8767 = vst [vmem:[#allocation31_spill] sm:$0xff] %v7417_v36  ;;  %2915 = vmatprep.mubr.bf16.mxu1 %v6100_v29  ;;  %3204 = vmatprep.mubr.bf16.mxu0 %v6102_v30  ;;  %v563_v30 = vld [vmem:[%s7071_s21 + $0x508] sm:$0xff] }
 0x1c4   : > { %v2686_v56 = vpop.f32.mrf.mxu1  ;;  %v2558_v44 = vpop.f32.mrf.mxu0  ;;  %4763 = vmatpush1.msra.mxu0 %v4263_v21 }
 0x1c5   : > { %4764 = vmatprep.subr.mxu0 %v8718_v41  ;;  %v6107_v56 = vcombine.low %v555_v46, %v559_v47  ;;  %v6109_v44 = vcombine.low %v556_v48, %v560_v49  ;;  %v575_v47 = vld [vmem:[%s7071_s21 + $0x568] sm:$0xff]  ;;  %v572_v48 = vld [vmem:[%s7071_s21 + $0x550] sm:$0xff] }
 0x1c6   : > { %v7426_v57 = vpop.f32.mrf.mxu1  ;;  %v7428_v0 = vpop.f32.mrf.mxu0  ;;  %v576_v49 = vld [vmem:[%s7071_s21 + $0x570] sm:$0xff] }
 0x1c7   : > { %8768 = vst [vmem:[#allocation32_spill] sm:$0xff] %v7426_v57 }
 0x1c8   : > { %v2689_v8 = vpop.f32.mrf.mxu1  ;;  %v2561_v11 = vpop.f32.mrf.mxu0 }
 0x1c9   : > { %v4262_v8 = vld [vmem:[#allocation9 + $0x28] sm:$0xff] }
 0x1ca   : > { %v7430_v26 = vpop.f32.mrf.mxu1  ;;  %2916 = vmatmul.mubr.bf16.gmra.mxu1 %v6099_v58  ;;  %v7432_v29 = vpop.f32.mrf.mxu0  ;;  %3205 = vmatmul.mubr.bf16.gmra.mxu0 %v6101_v63  ;;  %v6116_v58 = vcombine.high %v563_v30, %v567_v12  ;;  %v6118_v63 = vcombine.high %v564_v13, %v568_v18 }
 0x1cb   : > { %8769 = vst [vmem:[#allocation33_spill] sm:$0xff] %v7430_v26  ;;  %2923 = vmatprep.mubr.bf16.mxu1 %v6108_v1  ;;  %3212 = vmatprep.mubr.bf16.mxu0 %v6110_v2  ;;  %v8774_v26 = vmov 0.0  }
 0x1cc   : > { %v2694_v31 = vpop.f32.mrf.mxu1  ;;  %v2566_v5 = vpop.f32.mrf.mxu0  ;;  %4765 = vmatpush1.msra.mxu0 %v4262_v8 }
 0x1cd   : > { %v571_v31 = vld [vmem:[%s7071_s21 + $0x548] sm:$0xff]  ;;  %4766 = vmatprep.subr.mxu0 %v8718_v41 }
 0x1ce   : > { %v7439_v34 = vpop.f32.mrf.mxu1  ;;  %v7441_v35 = vpop.f32.mrf.mxu0  ;;  %v579_v41 = vld [vmem:[%s7071_s21 + $0x588] sm:$0xff] }
 0x1cf   : > { %8770 = vst [vmem:[#allocation34_spill] sm:$0xff] %v7439_v34 }
 0x1d0   : > { %v2697_v1 = vpop.f32.mrf.mxu1  ;;  %v2569_v2 = vpop.f32.mrf.mxu0 }
 0x1d2   : > { %v7443_v11 = vpop.f32.mrf.mxu1  ;;  %2924 = vmatmul.mubr.bf16.gmra.mxu1 %v6107_v56  ;;  %v7445_v21 = vpop.f32.mrf.mxu0  ;;  %3213 = vmatmul.mubr.bf16.gmra.mxu0 %v6109_v44  ;;  %v6115_v56 = vcombine.low %v563_v30, %v567_v12  ;;  %v6124_v44 = vcombine.high %v571_v31, %v575_v47  ;;  %v583_v12 = vld [vmem:[%s7071_s21 + $0x5a8] sm:$0xff] }
 0x1d3   : > { %8771 = vst [vmem:[#allocation35_spill] sm:$0xff] %v7443_v11  ;;  %2931 = vmatprep.mubr.bf16.mxu1 %v6116_v58  ;;  %3220 = vmatprep.mubr.bf16.mxu0 %v6118_v63  ;;  %v6117_v11 = vcombine.low %v564_v13, %v568_v18  ;;  %v6126_v58 = vcombine.high %v572_v48, %v576_v49  ;;  %v580_v13 = vld [vmem:[%s7071_s21 + $0x590] sm:$0xff] }
 0x1d4   : > { %v2702_v5 = vpop.f32.mrf.mxu1  ;;  %v2574_v46 = vpop.f32.mrf.mxu0  ;;  %v584_v18 = vld [vmem:[%s7071_s21 + $0x5b0] sm:$0xff] }
 0x1d5   : > { %v4261_v46 = vld [vmem:[#allocation9 + $0x20] sm:$0xff] }
 0x1d6   : > { %v7452_v1 = vpop.f32.mrf.mxu1  ;;  %v7454_v2 = vpop.f32.mrf.mxu0  ;;  %4767 = vmatpush1.msra.mxu0 %v4261_v46 }
 0x1d7   : > { %8772 = vst [vmem:[#allocation36_spill] sm:$0xff] %v7452_v1  ;;  %4768 = vmatprep.subr.mxu0 %v8774_v26 }
 0x1d8   : > { %v2705_v63 = vpop.f32.mrf.mxu1  ;;  %v2577_v5 = vpop.f32.mrf.mxu0 }
 0x1da   : > { %v7456_v34 = vpop.f32.mrf.mxu1  ;;  %2932 = vmatmul.mubr.bf16.gmra.mxu1 %v6115_v56  ;;  %v7458_v8 = vpop.f32.mrf.mxu0  ;;  %3221 = vmatmul.mubr.bf16.gmra.mxu0 %v6117_v11  ;;  %v6123_v56 = vcombine.low %v571_v31, %v575_v47  ;;  %v6132_v11 = vcombine.high %v579_v41, %v583_v12  ;;  %v591_v47 = vld [vmem:[%s7071_s21 + $0x5e8] sm:$0xff] }
 0x1db   : > { %8773 = vst [vmem:[#allocation37_spill] sm:$0xff] %v7456_v34  ;;  %2939 = vmatprep.mubr.bf16.mxu1 %v6124_v44  ;;  %3228 = vmatprep.mubr.bf16.mxu0 %v6126_v58  ;;  %v6125_v34 = vcombine.low %v572_v48, %v576_v49  ;;  %v6134_v44 = vcombine.high %v580_v13, %v584_v18  ;;  %v588_v48 = vld [vmem:[%s7071_s21 + $0x5d0] sm:$0xff] }
 0x1dc   : > { %v2710_v1 = vpop.f32.mrf.mxu1  ;;  %v2582_v30 = vpop.f32.mrf.mxu0  ;;  %v592_v49 = vld [vmem:[%s7071_s21 + $0x5f0] sm:$0xff] }
 0x1dd   : > { %v4260_v30 = vld [vmem:[#allocation9 + $0x18] sm:$0xff] }
 0x1de   : > { %v7465_v63 = vpop.f32.mrf.mxu1  ;;  %v7467_v5 = vpop.f32.mrf.mxu0  ;;  %4769 = vmatpush1.msra.mxu0 %v4260_v30 }
 0x1df   : > { %8775 = vst [vmem:[#allocation38_spill] sm:$0xff] %v7465_v63  ;;  %v587_v63 = vld [vmem:[%s7071_s21 + $0x5c8] sm:$0xff]  ;;  %4770 = vmatprep.subr.mxu0 %v8774_v26 }
 0x1e0   : > { %v2713_v1 = vpop.f32.mrf.mxu1  ;;  %v2585_v58 = vpop.f32.mrf.mxu0 }
 0x1e2   : > { %v7469_v57 = vpop.f32.mrf.mxu1  ;;  %2940 = vmatmul.mubr.bf16.gmra.mxu1 %v6123_v56  ;;  %v7471_v46 = vpop.f32.mrf.mxu0  ;;  %3229 = vmatmul.mubr.bf16.gmra.mxu0 %v6125_v34  ;;  %v6131_v56 = vcombine.low %v579_v41, %v583_v12  ;;  %v6140_v34 = vcombine.high %v587_v63, %v591_v47  ;;  %v599_v12 = vld [vmem:[%s7071_s21 + $0x628] sm:$0xff] }
 0x1e3   : > { %8776 = vst [vmem:[#allocation39_spill] sm:$0xff] %v7469_v57  ;;  %2947 = vmatprep.mubr.bf16.mxu1 %v6132_v11  ;;  %3236 = vmatprep.mubr.bf16.mxu0 %v6134_v44  ;;  %v6133_v57 = vcombine.low %v580_v13, %v584_v18  ;;  %v6142_v11 = vcombine.high %v588_v48, %v592_v49  ;;  %v596_v13 = vld [vmem:[%s7071_s21 + $0x610] sm:$0xff] }
 0x1e4   : > { %v2718_v36 = vpop.f32.mrf.mxu1  ;;  %v2590_v31 = vpop.f32.mrf.mxu0  ;;  %v600_v18 = vld [vmem:[%s7071_s21 + $0x630] sm:$0xff] }
 0x1e5   : > { %v4259_v31 = vld [vmem:[#allocation9 + $0x10] sm:$0xff] }
 0x1e6   : > { %v7478_v1 = vpop.f32.mrf.mxu1  ;;  %v7480_v58 = vpop.f32.mrf.mxu0  ;;  %4771 = vmatpush1.msra.mxu0 %v4259_v31 }
 0x1e7   : > { %8777 = vst [vmem:[#allocation40_spill] sm:$0xff] %v7478_v1  ;;  %v595_v1 = vld [vmem:[%s7071_s21 + $0x608] sm:$0xff]  ;;  %4772 = vmatprep.subr.mxu0 %v8774_v26 }
 0x1e8   : > { %v2721_v36 = vpop.f32.mrf.mxu1  ;;  %v2593_v44 = vpop.f32.mrf.mxu0 }
 0x1ea   : > { %v7482_v19 = vpop.f32.mrf.mxu1  ;;  %2948 = vmatmul.mubr.bf16.gmra.mxu1 %v6131_v56  ;;  %v7484_v30 = vpop.f32.mrf.mxu0  ;;  %3237 = vmatmul.mubr.bf16.gmra.mxu0 %v6133_v57  ;;  %v6139_v56 = vcombine.low %v587_v63, %v591_v47  ;;  %v6148_v57 = vcombine.high %v595_v1, %v599_v12  ;;  %v607_v47 = vld [vmem:[%s7071_s21 + $0x668] sm:$0xff] }
 0x1eb   : > { %8778 = vst [vmem:[#allocation41_spill] sm:$0xff] %v7482_v19  ;;  %2955 = vmatprep.mubr.bf16.mxu1 %v6140_v34  ;;  %3244 = vmatprep.mubr.bf16.mxu0 %v6142_v11  ;;  %v6141_v19 = vcombine.low %v588_v48, %v592_v49  ;;  %v6150_v34 = vcombine.high %v596_v13, %v600_v18  ;;  %v604_v48 = vld [vmem:[%s7071_s21 + $0x650] sm:$0xff] }
 0x1ec   : > { %v2726_v3 = vpop.f32.mrf.mxu1  ;;  %v2598_v41 = vpop.f32.mrf.mxu0  ;;  %v608_v49 = vld [vmem:[%s7071_s21 + $0x670] sm:$0xff] }
 0x1ed   : > { %v4258_v41 = vld [vmem:[#allocation9 + $0x8] sm:$0xff] }
 0x1ee   : > { %v7491_v36 = vpop.f32.mrf.mxu1  ;;  %v7493_v44 = vpop.f32.mrf.mxu0  ;;  %4773 = vmatpush1.msra.mxu0 %v4258_v41 }
 0x1ef   : > { %8779 = vst [vmem:[#allocation42_spill] sm:$0xff] %v7491_v36  ;;  %v603_v36 = vld [vmem:[%s7071_s21 + $0x648] sm:$0xff]  ;;  %4774 = vmatprep.subr.mxu0 %v8774_v26 }
 0x1f0   : > { %v2729_v3 = vpop.f32.mrf.mxu1  ;;  %v2601_v11 = vpop.f32.mrf.mxu0 }
 0x1f2   : > { %v7495_v54 = vpop.f32.mrf.mxu1  ;;  %2956 = vmatmul.mubr.bf16.gmra.mxu1 %v6139_v56  ;;  %v7497_v31 = vpop.f32.mrf.mxu0  ;;  %3245 = vmatmul.mubr.bf16.gmra.mxu0 %v6141_v19  ;;  %v6147_v56 = vcombine.low %v595_v1, %v599_v12  ;;  %v6156_v19 = vcombine.high %v603_v36, %v607_v47  ;;  %v615_v12 = vld [vmem:[%s7071_s21 + $0x6a8] sm:$0xff] }
 0x1f3   : > { %8780 = vst [vmem:[#allocation43_spill] sm:$0xff] %v7495_v54  ;;  %2963 = vmatprep.mubr.bf16.mxu1 %v6148_v57  ;;  %3252 = vmatprep.mubr.bf16.mxu0 %v6150_v34  ;;  %v6149_v54 = vcombine.low %v596_v13, %v600_v18  ;;  %v6158_v57 = vcombine.high %v604_v48, %v608_v49  ;;  %v612_v13 = vld [vmem:[%s7071_s21 + $0x690] sm:$0xff] }
 0x1f4   : > { %v2734_v37 = vpop.f32.mrf.mxu1  ;;  %v2606_v63 = vpop.f32.mrf.mxu0  ;;  %v616_v18 = vld [vmem:[%s7071_s21 + $0x6b0] sm:$0xff] }
 0x1f5   : > { %v4257_v63 = vld [vmem:[#allocation9] sm:$0xff] }
 0x1f6   : > { %v7504_v3 = vpop.f32.mrf.mxu1  ;;  %v7506_v11 = vpop.f32.mrf.mxu0  ;;  %4775 = vmatpush1.msra.mxu0 %v4257_v63 }
 0x1f7   : > { %8781 = vst [vmem:[#allocation44_spill] sm:$0xff] %v7504_v3  ;;  %v611_v3 = vld [vmem:[%s7071_s21 + $0x688] sm:$0xff]  ;;  %4776 = vmatprep.subr.mxu0 %v8774_v26 }
 0x1f8   : > { %v2737_v37 = vpop.f32.mrf.mxu1  ;;  %v2609_v34 = vpop.f32.mrf.mxu0 }
 0x1fa   : > { %v2773_v22 = vpop.f32.mrf.mxu1  ;;  %2964 = vmatmul.mubr.bf16.gmra.mxu1 %v6147_v56  ;;  %v3062_v41 = vpop.f32.mrf.mxu0  ;;  %3253 = vmatmul.mubr.bf16.gmra.mxu0 %v6149_v54  ;;  %v6155_v56 = vcombine.low %v603_v36, %v607_v47  ;;  %v6157_v54 = vcombine.low %v604_v48, %v608_v49  ;;  %v619_v47 = vld [vmem:[%s7071_s21 + $0x6c8] sm:$0xff] }
 0x1fb   : > { %v2774_v9 = vadd.f32 %v2773_v22, %v7299_v16  ;;  %2971 = vmatprep.mubr.bf16.mxu1 %v6156_v19  ;;  %3260 = vmatprep.mubr.bf16.mxu0 %v6158_v57  ;;  %v6164_v22 = vcombine.high %v611_v3, %v615_v12  ;;  %v6166_v19 = vcombine.high %v612_v13, %v616_v18  ;;  %v623_v49 = vld [vmem:[%s7071_s21 + $0x6e8] sm:$0xff] }
 0x1fc   : > { %v2775_v59 = vpop.f32.mrf.mxu1  ;;  %v3064_v1 = vpop.f32.mrf.mxu0 }
 0x1fd   : > { %v7513_v50 = vadd.f32 %v3062_v41, %v2774_v9  ;;  %v4288_v9 = vld [vmem:[#allocation9 + $0xf8] sm:$0xff] }
 0x1fe   : > { %v2776_v37 = vpop.f32.mrf.mxu1  ;;  %v3065_v34 = vpop.f32.mrf.mxu0  ;;  %4777 = vmatpush2.msra.mxu0 %v4288_v9  ;;  %v4287_v9 = vld [vmem:[#allocation9 + $0xf0] sm:$0xff] }
 0x1ff   : > { %8782 = vst [vmem:[#allocation45_spill] sm:$0xff] %v7513_v50  ;;  %v2777_v16 = vadd.f32 %v2776_v37, %v7307_v25  ;;  %v620_v37 = vld [vmem:[%s7071_s21 + $0x6d0] sm:$0xff]  ;;  %4778 = vmatprep.subr.mxu0 %v8774_v26 }
 0x200   : > { %v2778_v59 = vpop.f32.mrf.mxu1  ;;  %v3067_v57 = vpop.f32.mrf.mxu0  ;;  %v624_v50 = vld [vmem:[%s7071_s21 + $0x6f0] sm:$0xff]  ;;  %4779 = vmatpush2.msra.mxu0 %v4287_v9  ;;  %v4286_v9 = vld [vmem:[#allocation9 + $0xe8] sm:$0xff] }
 0x201   : > { %v7517_v1 = vadd.f32 %v3065_v34, %v2777_v16  ;;  %4780 = vmatprep.subr.mxu0 %v8774_v26 }
 0x202   : > { %v2781_v63 = vpop.f32.mrf.mxu1  ;;  %2972 = vmatmul.mubr.bf16.gmra.mxu1 %v6155_v56  ;;  %v3070_v41 = vpop.f32.mrf.mxu0  ;;  %3261 = vmatmul.mubr.bf16.gmra.mxu0 %v6157_v54  ;;  %v6163_v56 = vcombine.low %v611_v3, %v615_v12  ;;  %v6165_v54 = vcombine.low %v612_v13, %v616_v18  ;;  %v627_v12 = vld [vmem:[%s7071_s21 + $0x708] sm:$0xff] }
 0x203   : > { %v2782_v36 = vadd.f32 %v2781_v63, %v7312_v33  ;;  %2979 = vmatprep.mubr.bf16.mxu1 %v6164_v22  ;;  %3268 = vmatprep.mubr.bf16.mxu0 %v6166_v19  ;;  %v6172_v22 = vcombine.high %v619_v47, %v623_v49  ;;  %v6174_v19 = vcombine.high %v620_v37, %v624_v50  ;;  %v631_v18 = vld [vmem:[%s7071_s21 + $0x728] sm:$0xff] }
 0x204   : > { %v2783_v25 = vpop.f32.mrf.mxu1  ;;  %v3072_v48 = vpop.f32.mrf.mxu0  ;;  %4781 = vmatpush2.msra.mxu0 %v4286_v9  ;;  %v4285_v9 = vld [vmem:[#allocation9 + $0xe0] sm:$0xff] }
 0x205   : > { %v7524_v59 = vadd.f32 %v3070_v41, %v2782_v36  ;;  %v628_v48 = vld [vmem:[%s7071_s21 + $0x710] sm:$0xff]  ;;  %4782 = vmatprep.subr.mxu0 %v8774_v26 }
 0x206   : > { %v2784_v34 = vpop.f32.mrf.mxu1  ;;  %v3073_v16 = vpop.f32.mrf.mxu0  ;;  %4783 = vmatpush2.msra.mxu0 %v4285_v9  ;;  %v4284_v9 = vld [vmem:[#allocation9 + $0xd8] sm:$0xff] }
 0x207   : > { %v2785_v33 = vadd.f32 %v2784_v34, %v7321_v43  ;;  %v632_v34 = vld [vmem:[%s7071_s21 + $0x730] sm:$0xff]  ;;  %4784 = vmatprep.subr.mxu0 %v8774_v26 }
 0x208   : > { %v2786_v57 = vpop.f32.mrf.mxu1  ;;  %v3075_v63 = vpop.f32.mrf.mxu0  ;;  %4785 = vmatpush2.msra.mxu0 %v4284_v9 }
 0x209   : > { %v7528_v25 = vadd.f32 %v3073_v16, %v2785_v33  ;;  %4786 = vmatprep.subr.mxu0 %v8774_v26 }
 0x20a   : > { %v2789_v41 = vpop.f32.mrf.mxu1  ;;  %2980 = vmatmul.mubr.bf16.gmra.mxu1 %v6163_v56  ;;  %v3078_v36 = vpop.f32.mrf.mxu0  ;;  %3269 = vmatmul.mubr.bf16.gmra.mxu0 %v6165_v54  ;;  %v6171_v56 = vcombine.low %v619_v47, %v623_v49  ;;  %v6173_v54 = vcombine.low %v620_v37, %v624_v50  ;;  %v635_v50 = vld [vmem:[%s7071_s21 + $0x748] sm:$0xff] }
 0x20b   : > { %v2790_v3 = vadd.f32 %v2789_v41, %v7326_v52  ;;  %2987 = vmatprep.mubr.bf16.mxu1 %v6172_v22  ;;  %3276 = vmatprep.mubr.bf16.mxu0 %v6174_v19  ;;  %v6180_v22 = vcombine.high %v627_v12, %v631_v18  ;;  %v6182_v19 = vcombine.high %v628_v48, %v632_v34  ;;  %v639_v37 = vld [vmem:[%s7071_s21 + $0x768] sm:$0xff] }
 0x20c   : > { %v2791_v43 = vpop.f32.mrf.mxu1  ;;  %v3080_v13 = vpop.f32.mrf.mxu0 }
 0x20d   : > { %v7535_v57 = vadd.f32 %v3078_v36, %v2790_v3  ;;  %v636_v13 = vld [vmem:[%s7071_s21 + $0x750] sm:$0xff] }
 0x20e   : > { %v2792_v16 = vpop.f32.mrf.mxu1  ;;  %v3081_v33 = vpop.f32.mrf.mxu0 }
 0x20f   : > { %v2793_v52 = vadd.f32 %v2792_v16, %v7335_v61  ;;  %v640_v16 = vld [vmem:[%s7071_s21 + $0x770] sm:$0xff] }
 0x210   : > { %v2794_v63 = vpop.f32.mrf.mxu1  ;;  %v3083_v41 = vpop.f32.mrf.mxu0 }
 0x211   : > { %v7539_v43 = vadd.f32 %v3081_v33, %v2793_v52 }
 0x212   : > { %v2797_v36 = vpop.f32.mrf.mxu1  ;;  %2988 = vmatmul.mubr.bf16.gmra.mxu1 %v6171_v56  ;;  %v3086_v3 = vpop.f32.mrf.mxu0  ;;  %3277 = vmatmul.mubr.bf16.gmra.mxu0 %v6173_v54  ;;  %v6179_v56 = vcombine.low %v627_v12, %v631_v18  ;;  %v6181_v54 = vcombine.low %v628_v48, %v632_v34  ;;  %v643_v18 = vld [vmem:[%s7071_s21 + $0x788] sm:$0xff] }
 0x213   : > { %v2798_v47 = vadd.f32 %v2797_v36, %v7340_v7  ;;  %2995 = vmatprep.mubr.bf16.mxu1 %v6180_v22  ;;  %3284 = vmatprep.mubr.bf16.mxu0 %v6182_v19  ;;  %v6188_v22 = vcombine.high %v635_v50, %v639_v37  ;;  %v6190_v19 = vcombine.high %v636_v13, %v640_v16  ;;  %v647_v34 = vld [vmem:[%s7071_s21 + $0x7a8] sm:$0xff] }
 0x214   : > { %v2799_v61 = vpop.f32.mrf.mxu1  ;;  %v3088_v49 = vpop.f32.mrf.mxu0 }
 0x215   : > { %v7546_v63 = vadd.f32 %v3086_v3, %v2798_v47  ;;  %v644_v49 = vld [vmem:[%s7071_s21 + $0x790] sm:$0xff] }
 0x216   : > { %v2800_v33 = vpop.f32.mrf.mxu1  ;;  %v3089_v52 = vpop.f32.mrf.mxu0 }
 0x217   : > { %v2801_v7 = vadd.f32 %v2800_v33, %v7349_v17  ;;  %v648_v33 = vld [vmem:[%s7071_s21 + $0x7b0] sm:$0xff] }
 0x218   : > { %v2802_v41 = vpop.f32.mrf.mxu1  ;;  %v3091_v36 = vpop.f32.mrf.mxu0 }
 0x219   : > { %v7550_v61 = vadd.f32 %v3089_v52, %v2801_v7 }
 0x21a   : > { %v2805_v3 = vpop.f32.mrf.mxu1  ;;  %2996 = vmatmul.mubr.bf16.gmra.mxu1 %v6179_v56  ;;  %v3094_v47 = vpop.f32.mrf.mxu0  ;;  %3285 = vmatmul.mubr.bf16.gmra.mxu0 %v6181_v54  ;;  %v6187_v56 = vcombine.low %v635_v50, %v639_v37  ;;  %v6189_v54 = vcombine.low %v636_v13, %v640_v16  ;;  %v651_v37 = vld [vmem:[%s7071_s21 + $0x7c8] sm:$0xff] }
 0x21b   : > { %v2806_v12 = vadd.f32 %v2805_v3, %v7353_v28  ;;  %3003 = vmatprep.mubr.bf16.mxu1 %v6188_v22  ;;  %3292 = vmatprep.mubr.bf16.mxu0 %v6190_v19  ;;  %v6196_v22 = vcombine.high %v643_v18, %v647_v34  ;;  %v6198_v19 = vcombine.high %v644_v49, %v648_v33  ;;  %v655_v16 = vld [vmem:[%s7071_s21 + $0x7e8] sm:$0xff] }
 0x21c   : > { %v2807_v17 = vpop.f32.mrf.mxu1  ;;  %v3096_v48 = vpop.f32.mrf.mxu0 }
 0x21d   : > { %v7557_v41 = vadd.f32 %v3094_v47, %v2806_v12  ;;  %v652_v48 = vld [vmem:[%s7071_s21 + $0x7d0] sm:$0xff] }
 0x21e   : > { %v2808_v52 = vpop.f32.mrf.mxu1  ;;  %v3097_v7 = vpop.f32.mrf.mxu0 }
 0x21f   : > { %v2809_v28 = vadd.f32 %v2808_v52, %v7362_v39  ;;  %v656_v52 = vld [vmem:[%s7071_s21 + $0x7f0] sm:$0xff] }
 0x220   : > { %v2810_v36 = vpop.f32.mrf.mxu1  ;;  %v3099_v3 = vpop.f32.mrf.mxu0 }
 0x221   : > { %v7561_v17 = vadd.f32 %v3097_v7, %v2809_v28  ;;  %v6197_v3 = vcombine.low %v644_v49, %v648_v33  ;;  %v409_v49 = vld [vmem:[%s7071_s21 + $0x38] sm:$0xff] }
 0x222   : > { %v2813_v47 = vpop.f32.mrf.mxu1  ;;  %3004 = vmatmul.mubr.bf16.gmra.mxu1 %v6187_v56  ;;  %v3102_v12 = vpop.f32.mrf.mxu0  ;;  %3293 = vmatmul.mubr.bf16.gmra.mxu0 %v6189_v54  ;;  %v6195_v56 = vcombine.low %v643_v18, %v647_v34 }
 0x223   : > { %v2814_v50 = vadd.f32 %v2813_v47, %v7367_v53  ;;  %3011 = vmatprep.mubr.bf16.mxu1 %v6196_v22  ;;  %3300 = vmatprep.mubr.bf16.mxu0 %v6198_v19  ;;  %v6204_v53 = vcombine.high %v651_v37, %v655_v16  ;;  %v6206_v22 = vcombine.high %v652_v48, %v656_v52 }
 0x224   : > { %v2815_v39 = vpop.f32.mrf.mxu1  ;;  %v3104_v13 = vpop.f32.mrf.mxu0 }
 0x225   : > { %v7568_v36 = vadd.f32 %v3102_v12, %v2814_v50  ;;  %v4283_v13 = vld [vmem:[#allocation9 + $0xd0] sm:$0xff] }
 0x226   : > { %v2816_v7 = vpop.f32.mrf.mxu1  ;;  %v3105_v28 = vpop.f32.mrf.mxu0  ;;  %4787 = vmatpush2.msra.mxu0 %v4283_v13 }
 0x227   : > { %v2817_v54 = vadd.f32 %v2816_v7, %v7376_v62  ;;  %v405_v62 = vld [vmem:[%s7071_s21 + $0x18] sm:$0xff]  ;;  %4788 = vmatprep.subr.mxu0 %v8774_v26 }
 0x228   : > { %v2818_v19 = vpop.f32.mrf.mxu1  ;;  %v3107_v47 = vpop.f32.mrf.mxu0 }
 0x229   : > { %v7572_v39 = vadd.f32 %v3105_v28, %v2817_v54  ;;  %v6203_v54 = vcombine.low %v651_v37, %v655_v16  ;;  %v6205_v19 = vcombine.low %v652_v48, %v656_v52  ;;  %v4282_v47 = vld [vmem:[#allocation9 + $0xc8] sm:$0xff]  ;;  %v413_v48 = vld [vmem:[%s7071_s21 + $0x58] sm:$0xff] }
 0x22a   : > { %v2821_v9 = vpop.f32.mrf.mxu1  ;;  %3012 = vmatmul.mubr.bf16.gmra.mxu1 %v6195_v56  ;;  %v3110_v12 = vpop.f32.mrf.mxu0  ;;  %3301 = vmatmul.mubr.bf16.gmra.mxu0 %v6197_v3  ;;  %v417_v52 = vld [vmem:[%s7071_s21 + $0x78] sm:$0xff] }
 0x22b   : > { %v2822_v50 = vadd.f32 %v2821_v9, %v7380_v10  ;;  %3019 = vmatprep.mubr.bf16.mxu1 %v6204_v53  ;;  %3308 = vmatprep.mubr.bf16.mxu0 %v6206_v22  ;;  %v5960_v10 = vcombine.high %v405_v62, %v409_v49 }
 0x22c   : > { %v2823_v18 = vpop.f32.mrf.mxu1  ;;  %v3112_v34 = vpop.f32.mrf.mxu0  ;;  %4789 = vmatpush2.msra.mxu0 %v4282_v47  ;;  %v421_v47 = vld [vmem:[%s7071_s21 + $0x98] sm:$0xff] }
 0x22d   : > { %v7577_v33 = vadd.f32 %v3110_v12, %v2822_v50  ;;  %4790 = vmatprep.subr.mxu0 %v8774_v26  ;;  %v5959_v34 = vcombine.low %v405_v62, %v409_v49 }
 0x22e   : > { %v2824_v7 = vpop.f32.mrf.mxu1  ;;  %v3113_v28 = vpop.f32.mrf.mxu0 }
 0x22f   : > { %v2825_v56 = vadd.f32 %v2824_v7, %v7389_v23 }
 0x230   : > { %v2826_v3 = vpop.f32.mrf.mxu1  ;;  %v3115_v53 = vpop.f32.mrf.mxu0 }
 0x231   : > { %v7581_v22 = vadd.f32 %v3113_v28, %v2825_v56  ;;  %v5968_v28 = vcombine.high %v413_v48, %v417_v52  ;;  %v4281_v56 = vld [vmem:[#allocation9 + $0xc0] sm:$0xff] }
 0x232   : > { %v2829_v9 = vpop.f32.mrf.mxu1  ;;  %3020 = vmatmul.mubr.bf16.gmra.mxu1 %v6203_v54  ;;  %v3118_v13 = vpop.f32.mrf.mxu0  ;;  %3309 = vmatmul.mubr.bf16.gmra.mxu0 %v6205_v19 }
 0x233   : > { %v2830_v12 = vadd.f32 %v2829_v9, %v7393_v40  ;;  %3349 = vmatprep.mubr.bf16.mxu1 %v5960_v10  ;;  %4791 = vmatpush2.msra.mxu0 %v4281_v56  ;;  %v429_v56 = vld [vmem:[%s7071_s21 + $0xd8] sm:$0xff] }
 0x234   : > { %v2831_v37 = vpop.f32.mrf.mxu1  ;;  %v3120_v16 = vpop.f32.mrf.mxu0  ;;  %4792 = vmatprep.subr.mxu0 %v8774_v26 }
 0x235   : > { %v7587_v23 = vadd.f32 %v3118_v13, %v2830_v12  ;;  %v5967_v37 = vcombine.low %v413_v48, %v417_v52 }
 0x236   : > { %v2832_v50 = vpop.f32.mrf.mxu1  ;;  %v3121_v18 = vpop.f32.mrf.mxu0 }
 0x237   : > { %v2833_v7 = vadd.f32 %v2832_v50, %v7402_v55  ;;  %v425_v55 = vld [vmem:[%s7071_s21 + $0xb8] sm:$0xff] }
 0x238   : > { %v2834_v54 = vpop.f32.mrf.mxu1  ;;  %v3123_v40 = vpop.f32.mrf.mxu0  ;;  %v5976_v50 = vcombine.high %v421_v47, %v425_v55 }
 0x239   : > { %v7590_v19 = vadd.f32 %v3121_v18, %v2833_v7  ;;  %v4280_v7 = vld [vmem:[#allocation9 + $0xb8] sm:$0xff] }
 0x23a   : > { %v2837_v10 = vpop.f32.mrf.mxu1  ;;  %3350 = vmatmul.mubr.bf16.vlgmr.msra.gmra.mxu1 %v5959_v34  ;;  %v3126_v3 = vpop.f32.mrf.mxu0  ;;  %4793 = vmatpush2.msra.mxu0 %v4280_v7  ;;  %v437_v7 = vld [vmem:[%s7071_s21 + $0x118] sm:$0xff] }
 0x23b   : > { %v2838_v53 = vadd.f32 %v2837_v10, %v7406_v4  ;;  %3357 = vmatprep.mubr.bf16.mxu1 %v5968_v28  ;;  %4794 = vmatprep.subr.mxu0 %v8774_v26 }
 0x23c   : > { %v2839_v62 = vpop.f32.mrf.mxu1  ;;  %v3128_v49 = vpop.f32.mrf.mxu0 }
 0x23d   : > { %v7596_v9 = vadd.f32 %v3126_v3, %v2838_v53  ;;  %v5975_v62 = vcombine.low %v421_v47, %v425_v55 }
 0x23e   : > { %v2840_v13 = vpop.f32.mrf.mxu1  ;;  %v3129_v12 = vpop.f32.mrf.mxu0 }
 0x23f   : > { %v2841_v16 = vadd.f32 %v2840_v13, %v7415_v20  ;;  %v433_v20 = vld [vmem:[%s7071_s21 + $0xf8] sm:$0xff] }
 0x240   : > { %v2842_v18 = vpop.f32.mrf.mxu1  ;;  %v3131_v34 = vpop.f32.mrf.mxu0  ;;  %v5984_v13 = vcombine.high %v429_v56, %v433_v20 }
 0x241   : > { %v7599_v4 = vadd.f32 %v3129_v12, %v2841_v16  ;;  %v4279_v16 = vld [vmem:[#allocation9 + $0xb0] sm:$0xff] }
 0x242   : > { %v2845_v28 = vpop.f32.mrf.mxu1  ;;  %3358 = vmatmul.mubr.bf16.gmra.mxu1 %v5967_v37  ;;  %v3134_v54 = vpop.f32.mrf.mxu0  ;;  %4795 = vmatpush2.msra.mxu0 %v4279_v16  ;;  %v445_v16 = vld [vmem:[%s7071_s21 + $0x158] sm:$0xff] }
 0x243   : > { %v2846_v40 = vadd.f32 %v2845_v28, %v7419_v45  ;;  %3365 = vmatprep.mubr.bf16.mxu1 %v5976_v50  ;;  %4796 = vmatprep.subr.mxu0 %v8774_v26 }
 0x244   : > { %v2847_v48 = vpop.f32.mrf.mxu1  ;;  %v3136_v52 = vpop.f32.mrf.mxu0 }
 0x245   : > { %v7605_v10 = vadd.f32 %v3134_v54, %v2846_v40  ;;  %v5983_v48 = vcombine.low %v429_v56, %v433_v20 }
 0x246   : > { %v2848_v3 = vpop.f32.mrf.mxu1  ;;  %v3137_v53 = vpop.f32.mrf.mxu0 }
 0x247   : > { %v2849_v49 = vadd.f32 %v2848_v3, %v7428_v0  ;;  %v441_v0 = vld [vmem:[%s7071_s21 + $0x138] sm:$0xff] }
 0x248   : > { %v2850_v12 = vpop.f32.mrf.mxu1  ;;  %v3139_v37 = vpop.f32.mrf.mxu0  ;;  %v5992_v3 = vcombine.high %v437_v7, %v441_v0 }
 0x249   : > { %v7608_v45 = vadd.f32 %v3137_v53, %v2849_v49  ;;  %v4278_v49 = vld [vmem:[#allocation9 + $0xa8] sm:$0xff] }
 0x24a   : > { %v2853_v50 = vpop.f32.mrf.mxu1  ;;  %3366 = vmatmul.mubr.bf16.gmra.mxu1 %v5975_v62  ;;  %v3142_v18 = vpop.f32.mrf.mxu0  ;;  %4797 = vmatpush2.msra.mxu0 %v4278_v49  ;;  %v453_v49 = vld [vmem:[%s7071_s21 + $0x198] sm:$0xff] }
 0x24b   : > { %v2854_v34 = vadd.f32 %v2853_v50, %v7432_v29  ;;  %3373 = vmatprep.mubr.bf16.mxu1 %v5984_v13  ;;  %4798 = vmatprep.subr.mxu0 %v8774_v26 }
 0x24c   : > { %v2855_v47 = vpop.f32.mrf.mxu1  ;;  %v3144_v55 = vpop.f32.mrf.mxu0 }
 0x24d   : > { %v7614_v28 = vadd.f32 %v3142_v18, %v2854_v34  ;;  %v5991_v47 = vcombine.low %v437_v7, %v441_v0 }
 0x24e   : > { %v2856_v54 = vpop.f32.mrf.mxu1  ;;  %v3145_v40 = vpop.f32.mrf.mxu0 }
 0x24f   : > { %v2857_v52 = vadd.f32 %v2856_v54, %v7441_v35  ;;  %v449_v35 = vld [vmem:[%s7071_s21 + $0x178] sm:$0xff] }
 0x250   : > { %v2858_v53 = vpop.f32.mrf.mxu1  ;;  %v3147_v62 = vpop.f32.mrf.mxu0  ;;  %v6000_v54 = vcombine.high %v445_v16, %v449_v35 }
 0x251   : > { %v7617_v29 = vadd.f32 %v3145_v40, %v2857_v52  ;;  %v4277_v52 = vld [vmem:[#allocation9 + $0xa0] sm:$0xff] }
 0x252   : > { %v2861_v13 = vpop.f32.mrf.mxu1  ;;  %3374 = vmatmul.mubr.bf16.gmra.mxu1 %v5983_v48  ;;  %v3150_v12 = vpop.f32.mrf.mxu0  ;;  %4799 = vmatpush2.msra.mxu0 %v4277_v52  ;;  %v461_v52 = vld [vmem:[%s7071_s21 + $0x1d8] sm:$0xff] }
 0x253   : > { %v2862_v37 = vadd.f32 %v2861_v13, %v7445_v21  ;;  %3381 = vmatprep.mubr.bf16.mxu1 %v5992_v3  ;;  %4800 = vmatprep.subr.mxu0 %v8774_v26 }
 0x254   : > { %v2863_v56 = vpop.f32.mrf.mxu1  ;;  %v3152_v20 = vpop.f32.mrf.mxu0 }
 0x255   : > { %v7623_v50 = vadd.f32 %v3150_v12, %v2862_v37  ;;  %v5999_v56 = vcombine.low %v445_v16, %v449_v35 }
 0x256   : > { %v2864_v18 = vpop.f32.mrf.mxu1  ;;  %v3153_v34 = vpop.f32.mrf.mxu0 }
 0x257   : > { %v2865_v55 = vadd.f32 %v2864_v18, %v7454_v2  ;;  %v457_v2 = vld [vmem:[%s7071_s21 + $0x1b8] sm:$0xff] }
 0x258   : > { %v2866_v40 = vpop.f32.mrf.mxu1  ;;  %v3155_v48 = vpop.f32.mrf.mxu0  ;;  %v6008_v18 = vcombine.high %v453_v49, %v457_v2 }
 0x259   : > { %v7626_v21 = vadd.f32 %v3153_v34, %v2865_v55  ;;  %v4276_v55 = vld [vmem:[#allocation9 + $0x98] sm:$0xff] }
 0x25a   : > { %v2869_v3 = vpop.f32.mrf.mxu1  ;;  %3382 = vmatmul.mubr.bf16.gmra.mxu1 %v5991_v47  ;;  %v3158_v53 = vpop.f32.mrf.mxu0  ;;  %4801 = vmatpush2.msra.mxu0 %v4276_v55  ;;  %v469_v55 = vld [vmem:[%s7071_s21 + $0x218] sm:$0xff] }
 0x25b   : > { %v2870_v62 = vadd.f32 %v2869_v3, %v7458_v8  ;;  %3389 = vmatprep.mubr.bf16.mxu1 %v6000_v54  ;;  %4802 = vmatprep.subr.mxu0 %v8774_v26 }
 0x25c   : > { %v2871_v7 = vpop.f32.mrf.mxu1  ;;  %v3160_v0 = vpop.f32.mrf.mxu0 }
 0x25d   : > { %v7632_v13 = vadd.f32 %v3158_v53, %v2870_v62  ;;  %v6007_v7 = vcombine.low %v453_v49, %v457_v2 }
 0x25e   : > { %v2872_v12 = vpop.f32.mrf.mxu1  ;;  %v3161_v37 = vpop.f32.mrf.mxu0 }
 0x25f   : > { %v2873_v20 = vadd.f32 %v2872_v12, %v7467_v5  ;;  %v465_v5 = vld [vmem:[%s7071_s21 + $0x1f8] sm:$0xff] }
 0x260   : > { %v2874_v34 = vpop.f32.mrf.mxu1  ;;  %v3163_v47 = vpop.f32.mrf.mxu0  ;;  %v6016_v12 = vcombine.high %v461_v52, %v465_v5 }
 0x261   : > { %v7635_v8 = vadd.f32 %v3161_v37, %v2873_v20  ;;  %v4275_v20 = vld [vmem:[#allocation9 + $0x90] sm:$0xff] }
 0x262   : > { %v2877_v54 = vpop.f32.mrf.mxu1  ;;  %3390 = vmatmul.mubr.bf16.gmra.mxu1 %v5999_v56  ;;  %v3166_v40 = vpop.f32.mrf.mxu0  ;;  %4803 = vmatpush2.msra.mxu0 %v4275_v20  ;;  %v477_v20 = vld [vmem:[%s7071_s21 + $0x258] sm:$0xff] }
 0x263   : > { %v2878_v48 = vadd.f32 %v2877_v54, %v7471_v46  ;;  %3397 = vmatprep.mubr.bf16.mxu1 %v6008_v18  ;;  %4804 = vmatprep.subr.mxu0 %v8774_v26 }
 0x264   : > { %v2879_v16 = vpop.f32.mrf.mxu1  ;;  %v3168_v35 = vpop.f32.mrf.mxu0 }
 0x265   : > { %v7641_v3 = vadd.f32 %v3166_v40, %v2878_v48  ;;  %v6015_v16 = vcombine.low %v461_v52, %v465_v5 }
 0x266   : > { %v2880_v53 = vpop.f32.mrf.mxu1  ;;  %v3169_v62 = vpop.f32.mrf.mxu0 }
 0x267   : > { %v2881_v0 = vadd.f32 %v2880_v53, %v7480_v58  ;;  %v473_v58 = vld [vmem:[%s7071_s21 + $0x238] sm:$0xff] }
 0x268   : > { %v2882_v37 = vpop.f32.mrf.mxu1  ;;  %v3171_v56 = vpop.f32.mrf.mxu0  ;;  %v6024_v53 = vcombine.high %v469_v55, %v473_v58 }
 0x269   : > { %v7644_v46 = vadd.f32 %v3169_v62, %v2881_v0  ;;  %v4274_v0 = vld [vmem:[#allocation9 + $0x88] sm:$0xff] }
 0x26a   : > { %v2885_v18 = vpop.f32.mrf.mxu1  ;;  %3398 = vmatmul.mubr.bf16.gmra.mxu1 %v6007_v7  ;;  %v3174_v34 = vpop.f32.mrf.mxu0  ;;  %4805 = vmatpush2.msra.mxu0 %v4274_v0 }
 0x26b   : > { %v2886_v47 = vadd.f32 %v2885_v18, %v7484_v30  ;;  %3405 = vmatprep.mubr.bf16.mxu1 %v6016_v12  ;;  %4806 = vmatprep.subr.mxu0 %v8774_v26 }
 0x26c   : > { %v2887_v49 = vpop.f32.mrf.mxu1  ;;  %v3176_v2 = vpop.f32.mrf.mxu0 }
 0x26d   : > { %v7650_v54 = vadd.f32 %v3174_v34, %v2886_v47  ;;  %v6023_v49 = vcombine.low %v469_v55, %v473_v58  ;;  %v489_v55 = vld [vmem:[%s7071_s21 + $0x2b8] sm:$0xff] }
 0x26e   : > { %v2888_v40 = vpop.f32.mrf.mxu1  ;;  %v3177_v48 = vpop.f32.mrf.mxu0 }
 0x26f   : > { %v2889_v35 = vadd.f32 %v2888_v40, %v7493_v44  ;;  %v481_v44 = vld [vmem:[%s7071_s21 + $0x278] sm:$0xff] }
 0x270   : > { %v2890_v62 = vpop.f32.mrf.mxu1  ;;  %v3179_v7 = vpop.f32.mrf.mxu0  ;;  %v6032_v40 = vcombine.high %v477_v20, %v481_v44 }
 0x271   : > { %v7653_v30 = vadd.f32 %v3177_v48, %v2889_v35  ;;  %v4273_v35 = vld [vmem:[#allocation9 + $0x80] sm:$0xff] }
 0x272   : > { %v2893_v12 = vpop.f32.mrf.mxu1  ;;  %3406 = vmatmul.mubr.bf16.gmra.mxu1 %v6015_v16  ;;  %v3182_v37 = vpop.f32.mrf.mxu0  ;;  %4807 = vmatpush2.msra.mxu0 %v4273_v35  ;;  %v493_v35 = vld [vmem:[%s7071_s21 + $0x2d8] sm:$0xff] }
 0x273   : > { %v2894_v56 = vadd.f32 %v2893_v12, %v7497_v31  ;;  %3413 = vmatprep.mubr.bf16.mxu1 %v6024_v53  ;;  %v485_v12 = vld [vmem:[%s7071_s21 + $0x298] sm:$0xff] }
 0x274   : > { %v2895_v52 = vpop.f32.mrf.mxu1  ;;  %v3184_v5 = vpop.f32.mrf.mxu0 }
 0x275   : > { %v7659_v18 = vadd.f32 %v3182_v37, %v2894_v56  ;;  %v6031_v56 = vcombine.low %v477_v20, %v481_v44  ;;  %v6040_v5 = vcombine.high %v485_v12, %v489_v55  ;;  %v6039_v44 = vcombine.low %v485_v12, %v489_v55 }
 0x276   : > { %v2896_v34 = vpop.f32.mrf.mxu1  ;;  %v3185_v47 = vpop.f32.mrf.mxu0 }
 0x277   : > { %v2897_v2 = vadd.f32 %v2896_v34, %v7506_v11 }
 0x278   : > { %v2898_v48 = vpop.f32.mrf.mxu1  ;;  %v3187_v16 = vpop.f32.mrf.mxu0 }
 0x279   : > { %v7662_v31 = vadd.f32 %v3185_v47, %v2897_v2 }
 0x27a   : > { %v2901_v26 = vpop.f32.mrf.mxu1  ;;  %3414 = vmatmul.mubr.bf16.gmra.mxu1 %v6023_v49  ;;  %v3190_v53 = vpop.f32.mrf.mxu0 }
 0x27b   : > { %v2902_v62 = vadd.f32 %v2901_v26, %v7297_v15  ;;  %3421 = vmatprep.mubr.bf16.mxu1 %v6032_v40  ;;  %v497_v26 = vld [vmem:[%s7071_s21 + $0x2f8] sm:$0xff] }
 0x27c   : > { %v2903_v7 = vpop.f32.mrf.mxu1  ;;  %v3192_v0 = vpop.f32.mrf.mxu0  ;;  %v6047_v55 = vcombine.low %v493_v35, %v497_v26 }
 0x27d   : > { %v7667_v58 = vadd.f32 %v3190_v53, %v2902_v62  ;;  %v6048_v7 = vcombine.high %v493_v35, %v497_v26 }
 0x27e   : > { %v2904_v11 = vpop.f32.mrf.mxu1  ;;  %v3193_v37 = vpop.f32.mrf.mxu0 }
 0x27f   : > { %v2905_v52 = vadd.f32 %v2904_v11, %v7305_v24 }
 0x280   : > { %v2906_v34 = vpop.f32.mrf.mxu1  ;;  %v3195_v47 = vpop.f32.mrf.mxu0 }
 0x281   : > { %v7670_v49 = vadd.f32 %v3193_v37, %v2905_v52  ;;  %v501_v47 = vld [vmem:[%s7071_s21 + $0x318] sm:$0xff] }
 0x282   : > { %v2909_v15 = vpop.f32.mrf.mxu1  ;;  %3422 = vmatmul.mubr.bf16.gmra.mxu1 %v6031_v56  ;;  %v3198_v2 = vpop.f32.mrf.mxu0 }
 0x283   : > { %v2910_v40 = vadd.f32 %v2909_v15, %v7310_v32  ;;  %3429 = vmatprep.mubr.bf16.mxu1 %v6040_v5  ;;  %v505_v15 = vld [vmem:[%s7071_s21 + $0x338] sm:$0xff] }
 0x284   : > { %v2911_v48 = vpop.f32.mrf.mxu1  ;;  %v3200_v16 = vpop.f32.mrf.mxu0  ;;  %v6055_v26 = vcombine.low %v501_v47, %v505_v15 }
 0x285   : > { %v7675_v53 = vadd.f32 %v3198_v2, %v2910_v40  ;;  %v6056_v48 = vcombine.high %v501_v47, %v505_v15 }
 0x286   : > { %v2912_v20 = vpop.f32.mrf.mxu1  ;;  %v3201_v24 = vpop.f32.mrf.mxu0 }
 0x287   : > { %v2913_v62 = vadd.f32 %v2912_v20, %v7319_v42 }
 0x288   : > { %v2914_v0 = vpop.f32.mrf.mxu1  ;;  %v3203_v11 = vpop.f32.mrf.mxu0 }
 0x289   : > { %v7678_v37 = vadd.f32 %v3201_v24, %v2913_v62  ;;  %v509_v11 = vld [vmem:[%s7071_s21 + $0x358] sm:$0xff] }
 0x28a   : > { %v2917_v32 = vpop.f32.mrf.mxu1  ;;  %3430 = vmatmul.mubr.bf16.gmra.mxu1 %v6039_v44  ;;  %v3206_v56 = vpop.f32.mrf.mxu0 }
 0x28b   : > { %v2918_v52 = vadd.f32 %v2917_v32, %v7324_v51  ;;  %3437 = vmatprep.mubr.bf16.mxu1 %v6048_v7  ;;  %v513_v32 = vld [vmem:[%s7071_s21 + $0x378] sm:$0xff] }
 0x28c   : > { %v2919_v5 = vpop.f32.mrf.mxu1  ;;  %v3208_v34 = vpop.f32.mrf.mxu0  ;;  %v6063_v15 = vcombine.low %v509_v11, %v513_v32 }
 0x28d   : > { %v7683_v2 = vadd.f32 %v3206_v56, %v2918_v52  ;;  %v6064_v5 = vcombine.high %v509_v11, %v513_v32 }
 0x28e   : > { %v2920_v12 = vpop.f32.mrf.mxu1  ;;  %v3209_v42 = vpop.f32.mrf.mxu0 }
 0x28f   : > { %v2921_v40 = vadd.f32 %v2920_v12, %v7333_v60 }
 0x290   : > { %v2922_v16 = vpop.f32.mrf.mxu1  ;;  %v3211_v20 = vpop.f32.mrf.mxu0 }
 0x291   : > { %v7686_v24 = vadd.f32 %v3209_v42, %v2921_v40  ;;  %v517_v20 = vld [vmem:[%s7071_s21 + $0x398] sm:$0xff] }
 0x292   : > { %v2925_v51 = vpop.f32.mrf.mxu1  ;;  %3438 = vmatmul.mubr.bf16.gmra.mxu1 %v6047_v55  ;;  %v3214_v44 = vpop.f32.mrf.mxu0 }
 0x293   : > { %v2926_v62 = vadd.f32 %v2925_v51, %v7338_v6  ;;  %3445 = vmatprep.mubr.bf16.mxu1 %v6056_v48  ;;  %v521_v51 = vld [vmem:[%s7071_s21 + $0x3b8] sm:$0xff] }
 0x294   : > { %v2927_v7 = vpop.f32.mrf.mxu1  ;;  %v3216_v0 = vpop.f32.mrf.mxu0  ;;  %v6071_v32 = vcombine.low %v517_v20, %v521_v51 }
 0x295   : > { %v7691_v56 = vadd.f32 %v3214_v44, %v2926_v62  ;;  %v6072_v7 = vcombine.high %v517_v20, %v521_v51  ;;  %v8785_v20 = vld [vmem:[#allocation25_spill] sm:$0xff] }
 0x296   : > { %v2928_v35 = vpop.f32.mrf.mxu1  ;;  %v3217_v60 = vpop.f32.mrf.mxu0 }
 0x297   : > { %v2929_v52 = vadd.f32 %v2928_v35, %v7347_v14 }
 0x298   : > { %v2930_v34 = vpop.f32.mrf.mxu1  ;;  %v3219_v12 = vpop.f32.mrf.mxu0 }
 0x299   : > { %v7694_v42 = vadd.f32 %v3217_v60, %v2929_v52  ;;  %v8783_v52 = vld [vmem:[#allocation23_spill] sm:$0xff] }
 0x29a   : > { %v2933_v6 = vpop.f32.mrf.mxu1  ;;  %3446 = vmatmul.mubr.bf16.gmra.mxu1 %v6055_v26  ;;  %v3222_v55 = vpop.f32.mrf.mxu0 }
 0x29b   : > { %v2934_v40 = vadd.f32 %v2933_v6, %v7351_v27  ;;  %3453 = vmatprep.mubr.bf16.mxu1 %v6064_v5  ;;  %v525_v6 = vld [vmem:[%s7071_s21 + $0x3d8] sm:$0xff] }
 0x29c   : > { %v2935_v48 = vpop.f32.mrf.mxu1  ;;  %v3224_v16 = vpop.f32.mrf.mxu0 }
 0x29d   : > { %v7699_v44 = vadd.f32 %v3222_v55, %v2934_v40  ;;  %v529_v55 = vld [vmem:[%s7071_s21 + $0x3f8] sm:$0xff]  ;;  %v8784_v48 = vld [vmem:[#allocation24_spill] sm:$0xff] }
 0x29e   : > { %v2936_v47 = vpop.f32.mrf.mxu1  ;;  %v3225_v14 = vpop.f32.mrf.mxu0 }
 0x29f   : > { %v2937_v62 = vadd.f32 %v2936_v47, %v7360_v38  ;;  %v6080_v47 = vcombine.high %v525_v6, %v529_v55 }
 0x2a0   : > { %v2938_v0 = vpop.f32.mrf.mxu1  ;;  %v3227_v35 = vpop.f32.mrf.mxu0 }
 0x2a1   : > { %v7702_v60 = vadd.f32 %v3225_v14, %v2937_v62  ;;  %v4291_v35 = vld [vmem:[%s7716_s30 + $0x10] sm:$0xff] }
 0x2a2   : > { %v2941_v27 = vpop.f32.mrf.mxu1  ;;  %3454 = vmatmul.mubr.bf16.gmra.mxu1 %v6063_v15  ;;  %v3230_v26 = vpop.f32.mrf.mxu0  ;;  %4366 = vperm.xlu1 %6424, %v4291_v35  }
 0x2a3   : > { %v2942_v5 = vadd.f32 %v2941_v27, %v8783_v52  ;;  %3461 = vmatprep.mubr.bf16.mxu1 %v6072_v7  ;;  %v533_v52 = vld [vmem:[%s7071_s21 + $0x418] sm:$0xff] }
 0x2a4   : > { %v2943_v34 = vpop.f32.mrf.mxu1  ;;  %v3232_v12 = vpop.f32.mrf.mxu0 }
 0x2a5   : > { %v7708_v40 = vadd.f32 %v3230_v26, %v2942_v5  ;;  %v537_v5 = vld [vmem:[%s7071_s21 + $0x438] sm:$0xff]  ;;  %v4289_v34 = vld [vmem:[%s7716_s30] sm:$0xff] }
 0x2a6   : > { %v2944_v38 = vpop.f32.mrf.mxu1  ;;  %v3233_v11 = vpop.f32.mrf.mxu0  ;;  %4356 = vperm.xlu0 %6423, %v4289_v34  }
 0x2a7   : > { %v2945_v16 = vadd.f32 %v2944_v38, %v8784_v48  ;;  %v8786_v48 = vld [vmem:[#allocation26_spill] sm:$0xff] }
 0x2a8   : > { %v2946_v14 = vpop.f32.mrf.mxu1  ;;  %v3235_v15 = vpop.f32.mrf.mxu0 }
 0x2a9   : > { %v7711_v62 = vadd.f32 %v3233_v11, %v2945_v16  ;;  %v6088_v14 = vcombine.high %v533_v52, %v537_v5 }
 0x2aa   : > { %v2949_v7 = vpop.f32.mrf.mxu1  ;;  %3462 = vmatmul.mubr.bf16.gmra.mxu1 %v6071_v32  ;;  %v3238_v0 = vpop.f32.mrf.mxu0  ;;  %v6079_v32 = vcombine.low %v525_v6, %v529_v55  ;;  %v4294_v6 = vld [vmem:[%s7716_s30 + $0x28] sm:$0xff] }
 0x2ab   : > { %v2950_v51 = vadd.f32 %v2949_v7, %v8785_v20  ;;  %3469 = vmatprep.mubr.bf16.mxu1 %v6080_v47  ;;  %v4292_v47 = vld [vmem:[%s7716_s30 + $0x18] sm:$0xff]  ;;  %v4290_v20 = vld [vmem:[%s7716_s30 + $0x8] sm:$0xff] }
 0x2ac   : > { %v2951_v27 = vpop.f32.mrf.mxu1  ;;  %v3240_v26 = vpop.f32.mrf.mxu0  ;;  %4371 = vperm.xlu1 %6424, %v4292_v47   ;;  %4361 = vperm.xlu0 %6423, %v4290_v20  }
 0x2ad   : > { %v7723_v12 = vadd.f32 %v3238_v0, %v2950_v51  ;;  %v8787_v27 = vld [vmem:[#allocation27_spill] sm:$0xff] }
 0x2ae   : > { %v2952_v38 = vpop.f32.mrf.mxu1  ;;  %v3241_v11 = vpop.f32.mrf.mxu0 }
 0x2af   : > { %v2953_v16 = vadd.f32 %v2952_v38, %v8786_v48  ;;  %v541_v38 = vld [vmem:[%s7071_s21 + $0x458] sm:$0xff] }
 0x2b0   : > { %v2954_v15 = vpop.f32.mrf.mxu1  ;;  %v3243_v7 = vpop.f32.mrf.mxu0  ;;  %v545_v48 = vld [vmem:[%s7071_s21 + $0x478] sm:$0xff]  ;;  %4381 = vperm.xlu1 %6424, %v4294_v6  }
 0x2b1   : > { %v7728_v35 = vadd.f32 %v3241_v11, %v2953_v16  ;;  %v4293_v15 = vld [vmem:[%s7716_s30 + $0x20] sm:$0xff]  ;;  %v8789_v7 = vld [vmem:[#allocation28_spill] sm:$0xff] }
 0x2b2   : > { %v2957_v0 = vpop.f32.mrf.mxu1  ;;  %3470 = vmatmul.mubr.bf16.gmra.mxu1 %v6079_v32  ;;  %v3246_v51 = vpop.f32.mrf.mxu0  ;;  %4376 = vperm.xlu0 %6423, %v4293_v15   ;;  %v6087_v32 = vcombine.low %v533_v52, %v537_v5  ;;  %v8791_v15 = vld [vmem:[#allocation29_spill] sm:$0xff]  ;;  %v4298_v52 = vld [vmem:[%s7716_s30 + $0x48] sm:$0xff] }
 0x2b3   : > { %v2958_v26 = vadd.f32 %v2957_v0, %v8787_v27  ;;  %3477 = vmatprep.mubr.bf16.mxu1 %v6088_v14  ;;  %v6096_v0 = vcombine.high %v541_v38, %v545_v48  ;;  %v4296_v14 = vld [vmem:[%s7716_s30 + $0x38] sm:$0xff] }
 0x2b4   : > { %v2959_v55 = vpop.f32.mrf.mxu1  ;;  %v3248_v34 = vpop.f32.mrf.mxu0  ;;  %4391 = vperm.xlu1 %6424, %v4296_v14  }
 0x2b5   : > { %v7735_v47 = vadd.f32 %v3246_v51, %v2958_v26  ;;  %v4295_v34 = vld [vmem:[%s7716_s30 + $0x30] sm:$0xff] }
 0x2b6   : > { %v2960_v11 = vpop.f32.mrf.mxu1  ;;  %v3249_v16 = vpop.f32.mrf.mxu0  ;;  %4386 = vperm.xlu0 %6423, %v4295_v34   ;;  %v8793_v34 = vld [vmem:[#allocation30_spill] sm:$0xff] }
 0x2b7   : > { %8788 = vst [vmem:[#allocation23_spill] sm:$0xff] %v7735_v47  ;;  %v2961_v20 = vadd.f32 %v2960_v11, %v8789_v7  ;;  %v549_v7 = vld [vmem:[%s7071_s21 + $0x498] sm:$0xff] }
 0x2b8   : > { %v2962_v27 = vpop.f32.mrf.mxu1  ;;  %v3251_v55 = vpop.f32.mrf.mxu0  ;;  %4401 = vperm.xlu1 %6424, %v4298_v52  }
 0x2b9   : > { %v7740_v6 = vadd.f32 %v3249_v16, %v2961_v20  ;;  %v553_v27 = vld [vmem:[%s7071_s21 + $0x4b8] sm:$0xff]  ;;  %v4297_v55 = vld [vmem:[%s7716_s30 + $0x40] sm:$0xff] }
 0x2ba   : > { %v2965_v51 = vpop.f32.mrf.mxu1  ;;  %3478 = vmatmul.mubr.bf16.gmra.mxu1 %v6087_v32  ;;  %v3254_v26 = vpop.f32.mrf.mxu0  ;;  %4396 = vperm.xlu0 %6423, %v4297_v55   ;;  %v6095_v32 = vcombine.low %v541_v38, %v545_v48  ;;  %v8795_v55 = vld [vmem:[#allocation31_spill] sm:$0xff] }
 0x2bb   : > { %8790 = vst [vmem:[#allocation24_spill] sm:$0xff] %v7740_v6  ;;  %v2966_v47 = vadd.f32 %v2965_v51, %v8791_v15  ;;  %3485 = vmatprep.mubr.bf16.mxu1 %v6096_v0  ;;  %v6104_v51 = vcombine.high %v549_v7, %v553_v27  ;;  %v4300_v0 = vld [vmem:[%s7716_s30 + $0x58] sm:$0xff]  ;;  %v4302_v38 = vld [vmem:[%s7716_s30 + $0x68] sm:$0xff] }
 0x2bc   : > { %v2967_v5 = vpop.f32.mrf.mxu1  ;;  %v3256_v11 = vpop.f32.mrf.mxu0  ;;  %4411 = vperm.xlu1 %6424, %v4300_v0  }
 0x2bd   : > { %v7747_v14 = vadd.f32 %v3254_v26, %v2966_v47  ;;  %v4299_v11 = vld [vmem:[%s7716_s30 + $0x50] sm:$0xff] }
 0x2be   : > { %v2968_v16 = vpop.f32.mrf.mxu1  ;;  %v3257_v20 = vpop.f32.mrf.mxu0  ;;  %4406 = vperm.xlu0 %6423, %v4299_v11   ;;  %v8797_v11 = vld [vmem:[#allocation32_spill] sm:$0xff] }
 0x2bf   : > { %8792 = vst [vmem:[#allocation25_spill] sm:$0xff] %v7747_v14  ;;  %v2969_v6 = vadd.f32 %v2968_v16, %v8793_v34  ;;  %v557_v34 = vld [vmem:[%s7071_s21 + $0x4d8] sm:$0xff] }
 0x2c0   : > { %v2970_v15 = vpop.f32.mrf.mxu1  ;;  %v3259_v5 = vpop.f32.mrf.mxu0  ;;  %4421 = vperm.xlu1 %6424, %v4302_v38  }
 0x2c1   : > { %v7752_v52 = vadd.f32 %v3257_v20, %v2969_v6  ;;  %v561_v15 = vld [vmem:[%s7071_s21 + $0x4f8] sm:$0xff]  ;;  %v4301_v5 = vld [vmem:[%s7716_s30 + $0x60] sm:$0xff] }
 0x2c2   : > { %v2973_v47 = vpop.f32.mrf.mxu1  ;;  %3486 = vmatmul.mubr.bf16.gmra.mxu1 %v6095_v32  ;;  %v3262_v26 = vpop.f32.mrf.mxu0  ;;  %4416 = vperm.xlu0 %6423, %v4301_v5   ;;  %v6103_v32 = vcombine.low %v549_v7, %v553_v27  ;;  %v8799_v5 = vld [vmem:[#allocation33_spill] sm:$0xff]  ;;  %v4306_v7 = vld [vmem:[%s7716_s30 + $0x88] sm:$0xff] }
 0x2c3   : > { %8794 = vst [vmem:[#allocation26_spill] sm:$0xff] %v7752_v52  ;;  %v2974_v14 = vadd.f32 %v2973_v47, %v8795_v55  ;;  %3493 = vmatprep.mubr.bf16.mxu1 %v6104_v51  ;;  %v6112_v47 = vcombine.high %v557_v34, %v561_v15  ;;  %v4304_v51 = vld [vmem:[%s7716_s30 + $0x78] sm:$0xff] }
 0x2c4   : > { %v2975_v48 = vpop.f32.mrf.mxu1  ;;  %v3264_v16 = vpop.f32.mrf.mxu0  ;;  %4431 = vperm.xlu1 %6424, %v4304_v51  }
 0x2c5   : > { %v7759_v0 = vadd.f32 %v3262_v26, %v2974_v14  ;;  %v4303_v16 = vld [vmem:[%s7716_s30 + $0x70] sm:$0xff] }
 0x2c6   : > { %v2976_v6 = vpop.f32.mrf.mxu1  ;;  %v3265_v20 = vpop.f32.mrf.mxu0  ;;  %4426 = vperm.xlu0 %6423, %v4303_v16   ;;  %v8801_v16 = vld [vmem:[#allocation34_spill] sm:$0xff] }
 0x2c7   : > { %8796 = vst [vmem:[#allocation27_spill] sm:$0xff] %v7759_v0  ;;  %v2977_v52 = vadd.f32 %v2976_v6, %v8797_v11  ;;  %v565_v11 = vld [vmem:[%s7071_s21 + $0x518] sm:$0xff] }
 0x2c8   : > { %v2978_v55 = vpop.f32.mrf.mxu1  ;;  %v3267_v48 = vpop.f32.mrf.mxu0  ;;  %4441 = vperm.xlu1 %6424, %v4306_v7  }
 0x2c9   : > { %v7764_v38 = vadd.f32 %v3265_v20, %v2977_v52  ;;  %v569_v55 = vld [vmem:[%s7071_s21 + $0x538] sm:$0xff]  ;;  %v4305_v48 = vld [vmem:[%s7716_s30 + $0x80] sm:$0xff] }
 0x2ca   : > { %v2981_v14 = vpop.f32.mrf.mxu1  ;;  %3494 = vmatmul.mubr.bf16.gmra.mxu1 %v6103_v32  ;;  %v3270_v26 = vpop.f32.mrf.mxu0  ;;  %4436 = vperm.xlu0 %6423, %v4305_v48   ;;  %v6111_v32 = vcombine.low %v557_v34, %v561_v15  ;;  %v8803_v48 = vld [vmem:[#allocation35_spill] sm:$0xff] }
 0x2cb   : > { %8798 = vst [vmem:[#allocation28_spill] sm:$0xff] %v7764_v38  ;;  %v2982_v0 = vadd.f32 %v2981_v14, %v8799_v5  ;;  %3501 = vmatprep.mubr.bf16.mxu1 %v6112_v47  ;;  %v6120_v14 = vcombine.high %v565_v11, %v569_v55  ;;  %v4308_v47 = vld [vmem:[%s7716_s30 + $0x98] sm:$0xff]  ;;  %v4310_v34 = vld [vmem:[%s7716_s30 + $0xa8] sm:$0xff] }
 0x2cc   : > { %v2983_v27 = vpop.f32.mrf.mxu1  ;;  %v3272_v6 = vpop.f32.mrf.mxu0  ;;  %4451 = vperm.xlu1 %6424, %v4308_v47  }
 0x2cd   : > { %v7771_v51 = vadd.f32 %v3270_v26, %v2982_v0  ;;  %v4307_v6 = vld [vmem:[%s7716_s30 + $0x90] sm:$0xff] }
 0x2ce   : > { %v2984_v52 = vpop.f32.mrf.mxu1  ;;  %v3273_v20 = vpop.f32.mrf.mxu0  ;;  %4446 = vperm.xlu0 %6423, %v4307_v6   ;;  %v8805_v6 = vld [vmem:[#allocation36_spill] sm:$0xff] }
 0x2cf   : > { %8800 = vst [vmem:[#allocation29_spill] sm:$0xff] %v7771_v51  ;;  %v2985_v38 = vadd.f32 %v2984_v52, %v8801_v16  ;;  %v573_v16 = vld [vmem:[%s7071_s21 + $0x558] sm:$0xff] }
 0x2d0   : > { %v2986_v5 = vpop.f32.mrf.mxu1  ;;  %v3275_v27 = vpop.f32.mrf.mxu0  ;;  %4461 = vperm.xlu1 %6424, %v4310_v34  }
 0x2d1   : > { %v7776_v7 = vadd.f32 %v3273_v20, %v2985_v38  ;;  %v577_v5 = vld [vmem:[%s7071_s21 + $0x578] sm:$0xff]  ;;  %v4309_v27 = vld [vmem:[%s7716_s30 + $0xa0] sm:$0xff] }
 0x2d2   : > { %v2989_v0 = vpop.f32.mrf.mxu1  ;;  %3502 = vmatmul.mubr.bf16.gmra.mxu1 %v6111_v32  ;;  %v3278_v26 = vpop.f32.mrf.mxu0  ;;  %4456 = vperm.xlu0 %6423, %v4309_v27   ;;  %v6119_v32 = vcombine.low %v565_v11, %v569_v55  ;;  %v8807_v27 = vld [vmem:[#allocation37_spill] sm:$0xff]  ;;  %v4314_v11 = vld [vmem:[%s7716_s30 + $0xc8] sm:$0xff] }
 0x2d3   : > { %8802 = vst [vmem:[#allocation30_spill] sm:$0xff] %v7776_v7  ;;  %v2990_v51 = vadd.f32 %v2989_v0, %v8803_v48  ;;  %3509 = vmatprep.mubr.bf16.mxu1 %v6120_v14  ;;  %v6128_v0 = vcombine.high %v573_v16, %v577_v5  ;;  %v4312_v14 = vld [vmem:[%s7716_s30 + $0xb8] sm:$0xff] }
 0x2d4   : > { %v2991_v15 = vpop.f32.mrf.mxu1  ;;  %v3280_v52 = vpop.f32.mrf.mxu0  ;;  %4471 = vperm.xlu1 %6424, %v4312_v14  }
 0x2d5   : > { %v7783_v47 = vadd.f32 %v3278_v26, %v2990_v51  ;;  %v4311_v52 = vld [vmem:[%s7716_s30 + $0xb0] sm:$0xff] }
 0x2d6   : > { %v2992_v38 = vpop.f32.mrf.mxu1  ;;  %v3281_v20 = vpop.f32.mrf.mxu0  ;;  %4466 = vperm.xlu0 %6423, %v4311_v52   ;;  %v8809_v52 = vld [vmem:[#allocation38_spill] sm:$0xff] }
 0x2d7   : > { %8804 = vst [vmem:[#allocation31_spill] sm:$0xff] %v7783_v47  ;;  %v2993_v7 = vadd.f32 %v2992_v38, %v8805_v6  ;;  %v581_v6 = vld [vmem:[%s7071_s21 + $0x598] sm:$0xff] }
 0x2d8   : > { %v2994_v48 = vpop.f32.mrf.mxu1  ;;  %v3283_v15 = vpop.f32.mrf.mxu0  ;;  %4481 = vperm.xlu1 %6424, %v4314_v11  }
 0x2d9   : > { %v7788_v34 = vadd.f32 %v3281_v20, %v2993_v7  ;;  %v585_v48 = vld [vmem:[%s7071_s21 + $0x5b8] sm:$0xff]  ;;  %v4313_v15 = vld [vmem:[%s7716_s30 + $0xc0] sm:$0xff] }
 0x2da   : > { %v2997_v51 = vpop.f32.mrf.mxu1  ;;  %3510 = vmatmul.mubr.bf16.gmra.mxu1 %v6119_v32  ;;  %v3286_v26 = vpop.f32.mrf.mxu0  ;;  %4476 = vperm.xlu0 %6423, %v4313_v15   ;;  %v6127_v32 = vcombine.low %v573_v16, %v577_v5  ;;  %v8811_v15 = vld [vmem:[#allocation39_spill] sm:$0xff] }
 0x2db   : > { %8806 = vst [vmem:[#allocation32_spill] sm:$0xff] %v7788_v34  ;;  %v2998_v47 = vadd.f32 %v2997_v51, %v8807_v27  ;;  %3517 = vmatprep.mubr.bf16.mxu1 %v6128_v0  ;;  %v6136_v51 = vcombine.high %v581_v6, %v585_v48  ;;  %v4316_v0 = vld [vmem:[%s7716_s30 + $0xd8] sm:$0xff]  ;;  %v4318_v16 = vld [vmem:[%s7716_s30 + $0xe8] sm:$0xff] }
 0x2dc   : > { %v2999_v55 = vpop.f32.mrf.mxu1  ;;  %v3288_v38 = vpop.f32.mrf.mxu0  ;;  %4491 = vperm.xlu1 %6424, %v4316_v0  }
 0x2dd   : > { %v7795_v14 = vadd.f32 %v3286_v26, %v2998_v47  ;;  %v4315_v38 = vld [vmem:[%s7716_s30 + $0xd0] sm:$0xff] }
 0x2de   : > { %v3000_v7 = vpop.f32.mrf.mxu1  ;;  %v3289_v20 = vpop.f32.mrf.mxu0  ;;  %4486 = vperm.xlu0 %6423, %v4315_v38   ;;  %v8813_v38 = vld [vmem:[#allocation40_spill] sm:$0xff] }
 0x2df   : > { %8808 = vst [vmem:[#allocation33_spill] sm:$0xff] %v7795_v14  ;;  %v3001_v34 = vadd.f32 %v3000_v7, %v8809_v52  ;;  %v589_v52 = vld [vmem:[%s7071_s21 + $0x5d8] sm:$0xff] }
 0x2e0   : > { %v3002_v27 = vpop.f32.mrf.mxu1  ;;  %v3291_v55 = vpop.f32.mrf.mxu0  ;;  %4501 = vperm.xlu1 %6424, %v4318_v16  }
 0x2e1   : > { %v7800_v11 = vadd.f32 %v3289_v20, %v3001_v34  ;;  %v593_v27 = vld [vmem:[%s7071_s21 + $0x5f8] sm:$0xff]  ;;  %v4317_v55 = vld [vmem:[%s7716_s30 + $0xe0] sm:$0xff] }
 0x2e2   : > { %v3005_v47 = vpop.f32.mrf.mxu1  ;;  %3518 = vmatmul.mubr.bf16.gmra.mxu1 %v6127_v32  ;;  %v3294_v26 = vpop.f32.mrf.mxu0  ;;  %4496 = vperm.xlu0 %6423, %v4317_v55   ;;  %v6135_v32 = vcombine.low %v581_v6, %v585_v48  ;;  %v8815_v55 = vld [vmem:[#allocation41_spill] sm:$0xff]  ;;  %v4322_v6 = vld [vmem:[%s7716_s30 + $0x108] sm:$0xff] }
 0x2e3   : > { %8810 = vst [vmem:[#allocation34_spill] sm:$0xff] %v7800_v11  ;;  %v3006_v14 = vadd.f32 %v3005_v47, %v8811_v15  ;;  %3525 = vmatprep.mubr.bf16.mxu1 %v6136_v51  ;;  %v6144_v47 = vcombine.high %v589_v52, %v593_v27  ;;  %v4320_v51 = vld [vmem:[%s7716_s30 + $0xf8] sm:$0xff] }
 0x2e4   : > { %v3007_v5 = vpop.f32.mrf.mxu1  ;;  %v3296_v7 = vpop.f32.mrf.mxu0  ;;  %4511 = vperm.xlu1 %6424, %v4320_v51  }
 0x2e5   : > { %v7807_v0 = vadd.f32 %v3294_v26, %v3006_v14  ;;  %v4319_v7 = vld [vmem:[%s7716_s30 + $0xf0] sm:$0xff] }
 0x2e6   : > { %v3008_v34 = vpop.f32.mrf.mxu1  ;;  %v3297_v20 = vpop.f32.mrf.mxu0  ;;  %4506 = vperm.xlu0 %6423, %v4319_v7   ;;  %v8817_v7 = vld [vmem:[#allocation42_spill] sm:$0xff] }
 0x2e7   : > { %8812 = vst [vmem:[#allocation35_spill] sm:$0xff] %v7807_v0  ;;  %v3009_v11 = vadd.f32 %v3008_v34, %v8813_v38  ;;  %v597_v38 = vld [vmem:[%s7071_s21 + $0x618] sm:$0xff] }
 0x2e8   : > { %v3010_v15 = vpop.f32.mrf.mxu1  ;;  %v3299_v5 = vpop.f32.mrf.mxu0  ;;  %4521 = vperm.xlu1 %6424, %v4322_v6  }
 0x2e9   : > { %v7812_v16 = vadd.f32 %v3297_v20, %v3009_v11  ;;  %v601_v15 = vld [vmem:[%s7071_s21 + $0x638] sm:$0xff]  ;;  %v4321_v5 = vld [vmem:[%s7716_s30 + $0x100] sm:$0xff] }
 0x2ea   : > { %v3013_v14 = vpop.f32.mrf.mxu1  ;;  %3526 = vmatmul.mubr.bf16.gmra.mxu1 %v6135_v32  ;;  %v3302_v26 = vpop.f32.mrf.mxu0  ;;  %4516 = vperm.xlu0 %6423, %v4321_v5   ;;  %v6143_v32 = vcombine.low %v589_v52, %v593_v27  ;;  %v8819_v5 = vld [vmem:[#allocation43_spill] sm:$0xff] }
 0x2eb   : > { %8814 = vst [vmem:[#allocation36_spill] sm:$0xff] %v7812_v16  ;;  %v3014_v0 = vadd.f32 %v3013_v14, %v8815_v55  ;;  %3533 = vmatprep.mubr.bf16.mxu1 %v6144_v47  ;;  %v6152_v14 = vcombine.high %v597_v38, %v601_v15  ;;  %v4324_v47 = vld [vmem:[%s7716_s30 + $0x118] sm:$0xff]  ;;  %v4326_v52 = vld [vmem:[%s7716_s30 + $0x128] sm:$0xff] }
 0x2ec   : > { %v3015_v48 = vpop.f32.mrf.mxu1  ;;  %v3304_v34 = vpop.f32.mrf.mxu0  ;;  %4531 = vperm.xlu1 %6424, %v4324_v47  }
 0x2ed   : > { %v7819_v51 = vadd.f32 %v3302_v26, %v3014_v0  ;;  %v4323_v34 = vld [vmem:[%s7716_s30 + $0x110] sm:$0xff] }
 0x2ee   : > { %v3016_v11 = vpop.f32.mrf.mxu1  ;;  %v3305_v20 = vpop.f32.mrf.mxu0  ;;  %4526 = vperm.xlu0 %6423, %v4323_v34   ;;  %v8821_v34 = vld [vmem:[#allocation44_spill] sm:$0xff] }
 0x2ef   : > { %8816 = vst [vmem:[#allocation37_spill] sm:$0xff] %v7819_v51  ;;  %v3017_v16 = vadd.f32 %v3016_v11, %v8817_v7  ;;  %v605_v7 = vld [vmem:[%s7071_s21 + $0x658] sm:$0xff] }
 0x2f0   : > { %v3018_v55 = vpop.f32.mrf.mxu1  ;;  %v3307_v48 = vpop.f32.mrf.mxu0  ;;  %4541 = vperm.xlu1 %6424, %v4326_v52  }
 0x2f1   : > { %v7824_v6 = vadd.f32 %v3305_v20, %v3017_v16  ;;  %v609_v55 = vld [vmem:[%s7071_s21 + $0x678] sm:$0xff]  ;;  %v4325_v48 = vld [vmem:[%s7716_s30 + $0x120] sm:$0xff] }
 0x2f2   : > { %v3021_v0 = vpop.f32.mrf.mxu1  ;;  %3534 = vmatmul.mubr.bf16.gmra.mxu1 %v6143_v32  ;;  %v3310_v26 = vpop.f32.mrf.mxu0  ;;  %4536 = vperm.xlu0 %6423, %v4325_v48   ;;  %v6151_v32 = vcombine.low %v597_v38, %v601_v15  ;;  %v8822_v48 = vld [vmem:[#allocation45_spill] sm:$0xff]  ;;  %v4330_v15 = vld [vmem:[%s7716_s30 + $0x148] sm:$0xff] }
 0x2f3   : > { %8818 = vst [vmem:[#allocation38_spill] sm:$0xff] %v7824_v6  ;;  %v3022_v51 = vadd.f32 %v3021_v0, %v8819_v5  ;;  %3541 = vmatprep.mubr.bf16.mxu1 %v6152_v14  ;;  %v6160_v14 = vcombine.high %v605_v7, %v609_v55  ;;  %v4328_v5 = vld [vmem:[%s7716_s30 + $0x138] sm:$0xff] }
 0x2f4   : > { %v3023_v27 = vpop.f32.mrf.mxu1  ;;  %v3312_v11 = vpop.f32.mrf.mxu0  ;;  %4551 = vperm.xlu1 %6424, %v4328_v5   ;;  %v4329_v5 = vld [vmem:[%s7716_s30 + $0x140] sm:$0xff] }
 0x2f5   : > { %v7831_v47 = vadd.f32 %v3310_v26, %v3022_v51  ;;  %v4327_v11 = vld [vmem:[%s7716_s30 + $0x130] sm:$0xff]  ;;  %v3937_v26 = vld [vmem:[%s7084_s11] sm:$0xff] }
 0x2f6   : > { %v3024_v16 = vpop.f32.mrf.mxu1  ;;  %v3313_v20 = vpop.f32.mrf.mxu0  ;;  %4546 = vperm.xlu0 %6423, %v4327_v11   ;;  %v6159_v11 = vcombine.low %v605_v7, %v609_v55 }
 0x2f7   : > { %8820 = vst [vmem:[#allocation39_spill] sm:$0xff] %v7831_v47  ;;  %v3025_v0 = vadd.f32 %v3024_v16, %v8821_v34  ;;  %v613_v34 = vld [vmem:[%s7071_s21 + $0x698] sm:$0xff] }
 0x2f8   : > { %v3026_v27 = vpop.f32.mrf.mxu1  ;;  %v3315_v52 = vpop.f32.mrf.mxu0  ;;  %4561 = vperm.xlu1 %6424, %v4330_v15  }
 0x2f9   : > { %v7836_v6 = vadd.f32 %v3313_v20, %v3025_v0  ;;  %v617_v27 = vld [vmem:[%s7071_s21 + $0x6b8] sm:$0xff]  ;;  %v3938_v0 = vld [vmem:[%s7084_s11 + $0x8] sm:$0xff] }
 0x2fa   : > { %v3351_v51 = vpop.f32.mrf.mxu1  ;;  %3542 = vmatmul.mubr.bf16.gmra.mxu1 %v6151_v32  ;;  %4556 = vperm.xlu0 %6423, %v4329_v5   ;;  %v6168_v32 = vcombine.high %v613_v34, %v617_v27  ;;  %v4333_v5 = vld [vmem:[%s7716_s30 + $0x160] sm:$0xff] }
 0x2fb   : > { %v3352_v38 = vadd.f32 %v3351_v51, %v8822_v48  ;;  %3549 = vmatprep.mubr.bf16.mxu1 %v6160_v14  ;;  %v4332_v51 = vld [vmem:[%s7716_s30 + $0x158] sm:$0xff]  ;;  %v4331_v48 = vld [vmem:[%s7716_s30 + $0x150] sm:$0xff] }
 0x2fc   : > { %v3353_v16 = vpop.f32.mrf.mxu1  ;;  %4571 = vperm.xlu1 %6424, %v4332_v51   ;;  %v3940_v51 = vld [vmem:[%s7084_s11 + $0x18] sm:$0xff] }
 0x2fd   : > { %v4001_v47 = vmul.f32 %v3937_v26, %v3352_v38  ;;  %v3939_v16 = vld [vmem:[%s7084_s11 + $0x10] sm:$0xff] }
 0x2fe   : > { %v3354_v20 = vpop.f32.mrf.mxu1  ;;  %4566 = vperm.xlu0 %6423, %v4331_v48  }
 0x2ff   : > { %v3355_v52 = vadd.f32 %v3354_v20, %v7517_v1  ;;  %4808 = vmatprep.mubr.f32.mxu0 %v4001_v47  ;;  %v4334_v1 = vld [vmem:[%s7716_s30 + $0x168] sm:$0xff]  ;;  %v621_v47 = vld [vmem:[%s7071_s21 + $0x6d8] sm:$0xff] }
 0x300   : > { %v3356_v14 = vpop.f32.mrf.mxu1  ;;  %4809 = vmatmul.mubr.f32.vlgmr.msra.gmra.mxu0 %v3352_v38  ;;  %v625_v38 = vld [vmem:[%s7071_s21 + $0x6f8] sm:$0xff]  ;;  %4581 = vperm.xlu1 %6424, %v4334_v1  }
 0x301   : > { %v4002_v15 = vmul.f32 %v3938_v0, %v3355_v52  ;;  %v6167_v14 = vcombine.low %v613_v34, %v617_v27  ;;  %v629_v1 = vld [vmem:[%s7071_s21 + $0x718] sm:$0xff] }
 0x302   : > { %v3359_v26 = vpop.f32.mrf.mxu1  ;;  %3550 = vmatmul.mubr.bf16.gmra.mxu1 %v6159_v11  ;;  %4576 = vperm.xlu0 %6423, %v4333_v5  }
 0x303   : > { %v3360_v7 = vadd.f32 %v3359_v26, %v7524_v59  ;;  %4813 = vmatprep.mubr.f32.mxu0 %v4002_v15  ;;  %3557 = vmatprep.mubr.bf16.mxu1 %v6168_v32  ;;  %v6176_v59 = vcombine.high %v621_v47, %v625_v38  ;;  %v4336_v32 = vld [vmem:[%s7716_s30 + $0x178] sm:$0xff] }
 0x304   : > { %v3361_v55 = vpop.f32.mrf.mxu1  ;;  %4814 = vmatmul.mubr.f32.gmra.mxu0 %v3355_v52  ;;  %4591 = vperm.xlu1 %6424, %v4336_v32   ;;  %v4335_v52 = vld [vmem:[%s7716_s30 + $0x170] sm:$0xff] }
 0x305   : > { %v4003_v20 = vmul.f32 %v3939_v16, %v3360_v7  ;;  %v3941_v16 = vld [vmem:[%s7084_s11 + $0x20] sm:$0xff] }
 0x306   : > { %v3362_v0 = vpop.f32.mrf.mxu1  ;;  %4586 = vperm.xlu0 %6423, %v4335_v52   ;;  %v4337_v55 = vld [vmem:[%s7716_s30 + $0x180] sm:$0xff] }
 0x307   : > { %v3363_v11 = vadd.f32 %v3362_v0, %v7528_v25  ;;  %4818 = vmatprep.mubr.f32.mxu0 %v4003_v20  ;;  %v4338_v25 = vld [vmem:[%s7716_s30 + $0x188] sm:$0xff] }
 0x308   : > { %v3364_v48 = vpop.f32.mrf.mxu1  ;;  %4819 = vmatmul.mubr.f32.gmra.mxu0 %v3360_v7  ;;  %v633_v7 = vld [vmem:[%s7071_s21 + $0x738] sm:$0xff]  ;;  %4601 = vperm.xlu1 %6424, %v4338_v25   ;;  %v3942_v0 = vld [vmem:[%s7084_s11 + $0x28] sm:$0xff] }
 0x309   : > { %v4004_v15 = vmul.f32 %v3940_v51, %v3363_v11  ;;  %v6175_v51 = vcombine.low %v621_v47, %v625_v38 }
 0x30a   : > { %v3367_v26 = vpop.f32.mrf.mxu1  ;;  %3558 = vmatmul.mubr.bf16.gmra.mxu1 %v6167_v14  ;;  %4596 = vperm.xlu0 %6423, %v4337_v55   ;;  %v3944_v55 = vld [vmem:[%s7084_s11 + $0x38] sm:$0xff] }
 0x30b   : > { %v3368_v34 = vadd.f32 %v3367_v26, %v7535_v57  ;;  %4823 = vmatprep.mubr.f32.mxu0 %v4004_v15  ;;  %3565 = vmatprep.mubr.bf16.mxu1 %v6176_v59  ;;  %v6184_v57 = vcombine.high %v629_v1, %v633_v7  ;;  %v4340_v59 = vld [vmem:[%s7716_s30 + $0x198] sm:$0xff]  ;;  %v3943_v15 = vld [vmem:[%s7084_s11 + $0x30] sm:$0xff] }
 0x30c   : > { %v3369_v27 = vpop.f32.mrf.mxu1  ;;  %4824 = vmatmul.mubr.f32.gmra.mxu0 %v3363_v11  ;;  %4611 = vperm.xlu1 %6424, %v4340_v59   ;;  %v4339_v11 = vld [vmem:[%s7716_s30 + $0x190] sm:$0xff]  ;;  %v637_v26 = vld [vmem:[%s7071_s21 + $0x758] sm:$0xff] }
 0x30d   : > { %v4005_v5 = vmul.f32 %v3941_v16, %v3368_v34  ;;  %v641_v16 = vld [vmem:[%s7071_s21 + $0x778] sm:$0xff] }
 0x30e   : > { %v3370_v20 = vpop.f32.mrf.mxu1  ;;  %4606 = vperm.xlu0 %6423, %v4339_v11   ;;  %v645_v11 = vld [vmem:[%s7071_s21 + $0x798] sm:$0xff] }
 0x30f   : > { %v3371_v14 = vadd.f32 %v3370_v20, %v7539_v43  ;;  %4828 = vmatprep.mubr.f32.mxu0 %v4005_v5  ;;  %v4342_v43 = vld [vmem:[%s7716_s30 + $0x1a8] sm:$0xff]  ;;  %v6183_v5 = vcombine.low %v629_v1, %v633_v7 }
 0x310   : > { %v3372_v32 = vpop.f32.mrf.mxu1  ;;  %4829 = vmatmul.mubr.f32.gmra.mxu0 %v3368_v34  ;;  %4621 = vperm.xlu1 %6424, %v4342_v43   ;;  %v4341_v34 = vld [vmem:[%s7716_s30 + $0x1a0] sm:$0xff]  ;;  %v3946_v43 = vld [vmem:[%s7084_s11 + $0x48] sm:$0xff] }
 0x311   : > { %v4006_v48 = vmul.f32 %v3942_v0, %v3371_v14  ;;  %v4344_v0 = vld [vmem:[%s7716_s30 + $0x1b8] sm:$0xff]  ;;  %v3945_v32 = vld [vmem:[%s7084_s11 + $0x40] sm:$0xff] }
 0x312   : > { %v3375_v52 = vpop.f32.mrf.mxu1  ;;  %3566 = vmatmul.mubr.bf16.gmra.mxu1 %v6175_v51  ;;  %4616 = vperm.xlu0 %6423, %v4341_v34  }
 0x313   : > { %v3376_v47 = vadd.f32 %v3375_v52, %v7546_v63  ;;  %4833 = vmatprep.mubr.f32.mxu0 %v4006_v48  ;;  %3573 = vmatprep.mubr.bf16.mxu1 %v6184_v57  ;;  %v6192_v63 = vcombine.high %v637_v26, %v641_v16  ;;  %v649_v48 = vld [vmem:[%s7071_s21 + $0x7b8] sm:$0xff]  ;;  %v4345_v52 = vld [vmem:[%s7716_s30 + $0x1c0] sm:$0xff] }
 0x314   : > { %v3377_v38 = vpop.f32.mrf.mxu1  ;;  %4834 = vmatmul.mubr.f32.gmra.mxu0 %v3371_v14  ;;  %4631 = vperm.xlu1 %6424, %v4344_v0   ;;  %v4343_v14 = vld [vmem:[%s7716_s30 + $0x1b0] sm:$0xff]  ;;  %v653_v0 = vld [vmem:[%s7071_s21 + $0x7d8] sm:$0xff] }
 0x315   : > { %v4007_v25 = vmul.f32 %v3943_v15, %v3376_v47  ;;  %v6191_v38 = vcombine.low %v637_v26, %v641_v16 }
 0x316   : > { %v3378_v27 = vpop.f32.mrf.mxu1  ;;  %4626 = vperm.xlu0 %6423, %v4343_v14   ;;  %v4349_v14 = vld [vmem:[%s7716_s30 + $0x1e0] sm:$0xff] }
 0x317   : > { %v3379_v20 = vadd.f32 %v3378_v27, %v7550_v61  ;;  %4838 = vmatprep.mubr.f32.mxu0 %v4007_v25  ;;  %v4346_v61 = vld [vmem:[%s7716_s30 + $0x1c8] sm:$0xff]  ;;  %v4348_v25 = vld [vmem:[%s7716_s30 + $0x1d8] sm:$0xff] }
 0x318   : > { %v3380_v51 = vpop.f32.mrf.mxu1  ;;  %4839 = vmatmul.mubr.f32.gmra.mxu0 %v3376_v47  ;;  %4641 = vperm.xlu1 %6424, %v4346_v61  }
 0x319   : > { %v4008_v57 = vmul.f32 %v3944_v55, %v3379_v20  ;;  %v4347_v55 = vld [vmem:[%s7716_s30 + $0x1d0] sm:$0xff]  ;;  %v657_v51 = vld [vmem:[%s7071_s21 + $0x7f8] sm:$0xff] }
 0x31a   : > { %v3383_v59 = vpop.f32.mrf.mxu1  ;;  %3574 = vmatmul.mubr.bf16.gmra.mxu1 %v6183_v5  ;;  %4636 = vperm.xlu0 %6423, %v4345_v52  }
 0x31b   : > { %v3384_v1 = vadd.f32 %v3383_v59, %v7557_v41  ;;  %4843 = vmatprep.mubr.f32.mxu0 %v4008_v57  ;;  %3581 = vmatprep.mubr.bf16.mxu1 %v6192_v63  ;;  %v6200_v41 = vcombine.high %v645_v11, %v649_v48  ;;  %v3947_v63 = vld [vmem:[%s7084_s11 + $0x50] sm:$0xff] }
 0x31c   : > { %v3385_v7 = vpop.f32.mrf.mxu1  ;;  %4844 = vmatmul.mubr.f32.gmra.mxu0 %v3379_v20  ;;  %4651 = vperm.xlu1 %6424, %v4348_v25   ;;  %v6207_v25 = vcombine.low %v653_v0, %v657_v51 }
 0x31d   : > { %v4009_v15 = vmul.f32 %v3945_v32, %v3384_v1  ;;  %v3948_v32 = vld [vmem:[%s7084_s11 + $0x58] sm:$0xff] }
 0x31e   : > { %v3386_v47 = vpop.f32.mrf.mxu1  ;;  %4646 = vperm.xlu0 %6423, %v4347_v55   ;;  %v4352_v7 = vld [vmem:[%s7716_s30 + $0x1f8] sm:$0xff] }
 0x31f   : > { %v3387_v34 = vadd.f32 %v3386_v47, %v7561_v17  ;;  %4848 = vmatprep.mubr.f32.mxu0 %v4009_v15  ;;  %v4350_v17 = vld [vmem:[%s7716_s30 + $0x1e8] sm:$0xff]  ;;  %v4351_v15 = vld [vmem:[%s7716_s30 + $0x1f0] sm:$0xff] }
 0x320   : > { %v3388_v27 = vpop.f32.mrf.mxu1  ;;  %4849 = vmatmul.mubr.f32.gmra.mxu0 %v3384_v1  ;;  %4661 = vperm.xlu1 %6424, %v4350_v17   ;;  %v6199_v1 = vcombine.low %v645_v11, %v649_v48 }
 0x321   : > { %v4010_v5 = vmul.f32 %v3946_v43, %v3387_v34 }
 0x322   : > { %v3391_v20 = vpop.f32.mrf.mxu1  ;;  %3582 = vmatmul.mubr.bf16.gmra.mxu1 %v6191_v38  ;;  %4656 = vperm.xlu0 %6423, %v4349_v14   ;;  %v3949_v38 = vld [vmem:[%s7084_s11 + $0x60] sm:$0xff]  ;;  %v3952_v14 = vld [vmem:[%s7084_s11 + $0x78] sm:$0xff] }
 0x323   : > { %v3392_v26 = vadd.f32 %v3391_v20, %v7568_v36  ;;  %4853 = vmatprep.mubr.f32.mxu0 %v4010_v5  ;;  %3589 = vmatprep.mubr.bf16.mxu1 %v6200_v41  ;;  %v6208_v36 = vcombine.high %v653_v0, %v657_v51  ;;  %v3950_v41 = vld [vmem:[%s7084_s11 + $0x68] sm:$0xff] }
 0x324   : > { %v3393_v16 = vpop.f32.mrf.mxu1  ;;  %4854 = vmatmul.mubr.f32.gmra.mxu0 %v3387_v34  ;;  %4671 = vperm.xlu1 %6424, %v4352_v7  }
 0x325   : > { %v4011_v57 = vmul.f32 %v3947_v63, %v3392_v26  ;;  %v3951_v63 = vld [vmem:[%s7084_s11 + $0x70] sm:$0xff] }
 0x326   : > { %v3394_v59 = vpop.f32.mrf.mxu1  ;;  %4666 = vperm.xlu0 %6423, %v4351_v15  }
 0x327   : > { %v3395_v61 = vadd.f32 %v3394_v59, %v7572_v39  ;;  %4858 = vmatprep.mubr.f32.mxu0 %v4011_v57  ;;  %v3953_v59 = vld [vmem:[%s7084_s11 + $0x80] sm:$0xff] }
 0x328   : > { %v3396_v52 = vpop.f32.mrf.mxu1  ;;  %4859 = vmatmul.mubr.f32.gmra.mxu0 %v3392_v26 }
 0x329   : > { %v4012_v47 = vmul.f32 %v3948_v32, %v3395_v61 }
 0x32a   : > { %v3399_v43 = vpop.f32.mrf.mxu1  ;;  %3590 = vmatmul.mubr.bf16.gmra.mxu1 %v6199_v1 }
 0x32b   : > { %v3400_v34 = vadd.f32 %v3399_v43, %v7577_v33  ;;  %4863 = vmatprep.mubr.f32.mxu0 %v4012_v47  ;;  %3597 = vmatprep.mubr.bf16.mxu1 %v6208_v36  ;;  %v3954_v36 = vld [vmem:[%s7084_s11 + $0x88] sm:$0xff]  ;;  %v3955_v47 = vld [vmem:[%s7084_s11 + $0x90] sm:$0xff] }
 0x32c   : > { %v3401_v11 = vpop.f32.mrf.mxu1  ;;  %4864 = vmatmul.mubr.f32.gmra.mxu0 %v3395_v61 }
 0x32d   : > { %v4013_v39 = vmul.f32 %v3949_v38, %v3400_v34  ;;  %v3956_v11 = vld [vmem:[%s7084_s11 + $0x98] sm:$0xff] }
 0x32e   : > { %v3402_v48 = vpop.f32.mrf.mxu1 }
 0x32f   : > { %v3403_v27 = vadd.f32 %v3402_v48, %v7581_v22  ;;  %4868 = vmatprep.mubr.f32.mxu0 %v4013_v39 }
 0x330   : > { %v3404_v55 = vpop.f32.mrf.mxu1  ;;  %4869 = vmatmul.mubr.f32.gmra.mxu0 %v3400_v34 }
 0x331   : > { %v4014_v5 = vmul.f32 %v3950_v41, %v3403_v27 }
 0x332   : > { %v3407_v20 = vpop.f32.mrf.mxu1  ;;  %3598 = vmatmul.mubr.bf16.gmra.mxu1 %v6207_v25  ;;  %v3957_v25 = vld [vmem:[%s7084_s11 + $0xa0] sm:$0xff] }
 0x333   : > { %v3408_v33 = vadd.f32 %v3407_v20, %v7587_v23  ;;  %4873 = vmatprep.mubr.f32.mxu0 %v4014_v5  ;;  %v3958_v20 = vld [vmem:[%s7084_s11 + $0xa8] sm:$0xff] }
 0x334   : > { %v3409_v26 = vpop.f32.mrf.mxu1  ;;  %4874 = vmatmul.mubr.f32.gmra.mxu0 %v3403_v27 }
 0x335   : > { %v4015_v17 = vmul.f32 %v3951_v63, %v3408_v33 }
 0x336   : > { %v3410_v16 = vpop.f32.mrf.mxu1 }
 0x337   : > { %v3411_v0 = vadd.f32 %v3410_v16, %v7590_v19  ;;  %4878 = vmatprep.mubr.f32.mxu0 %v4015_v17  ;;  %v3959_v17 = vld [vmem:[%s7084_s11 + $0xb0] sm:$0xff] }
 0x338   : > { %v3412_v22 = vpop.f32.mrf.mxu1  ;;  %4879 = vmatmul.mubr.f32.gmra.mxu0 %v3408_v33 }
 0x339   : > { %v4016_v51 = vmul.f32 %v3952_v14, %v3411_v0  ;;  %v3960_v22 = vld [vmem:[%s7084_s11 + $0xb8] sm:$0xff] }
 0x33a   : > { %v3415_v57 = vpop.f32.mrf.mxu1 }
 0x33b   : > { %v3416_v32 = vadd.f32 %v3415_v57, %v7596_v9  ;;  %4883 = vmatprep.mubr.f32.mxu0 %v4016_v51 }
 0x33c   : > { %v3417_v23 = vpop.f32.mrf.mxu1  ;;  %4884 = vmatmul.mubr.f32.gmra.mxu0 %v3411_v0 }
 0x33d   : > { %v4017_v1 = vmul.f32 %v3953_v59, %v3416_v32 }
 0x33e   : > { %v3418_v61 = vpop.f32.mrf.mxu1 }
 0x33f   : > { %v3419_v7 = vadd.f32 %v3418_v61, %v7599_v4  ;;  %4888 = vmatprep.mubr.f32.mxu0 %v4017_v1 }
 0x340   : > { %v3420_v19 = vpop.f32.mrf.mxu1  ;;  %4889 = vmatmul.mubr.f32.gmra.mxu0 %v3416_v32  ;;  %v3961_v32 = vld [vmem:[%s7084_s11 + $0xc0] sm:$0xff] }
 0x341   : > { %v4018_v52 = vmul.f32 %v3954_v36, %v3419_v7  ;;  %v3962_v36 = vld [vmem:[%s7084_s11 + $0xc8] sm:$0xff] }
 0x342   : > { %v3423_v15 = vpop.f32.mrf.mxu1 }
 0x343   : > { %v3424_v43 = vadd.f32 %v3423_v15, %v7605_v10  ;;  %4893 = vmatprep.mubr.f32.mxu0 %v4018_v52  ;;  %v3963_v15 = vld [vmem:[%s7084_s11 + $0xd0] sm:$0xff] }
 0x344   : > { %v3425_v9 = vpop.f32.mrf.mxu1  ;;  %4894 = vmatmul.mubr.f32.gmra.mxu0 %v3419_v7 }
 0x345   : > { %v4019_v38 = vmul.f32 %v3955_v47, %v3424_v43 }
 0x346   : > { %v3426_v34 = vpop.f32.mrf.mxu1 }
 0x347   : > { %v3427_v39 = vadd.f32 %v3426_v34, %v7608_v45  ;;  %4898 = vmatprep.mubr.f32.mxu0 %v4019_v38  ;;  %v3964_v38 = vld [vmem:[%s7084_s11 + $0xd8] sm:$0xff] }
 0x348   : > { %v3428_v4 = vpop.f32.mrf.mxu1  ;;  %4899 = vmatmul.mubr.f32.gmra.mxu0 %v3424_v43 }
 0x349   : > { %v4020_v48 = vmul.f32 %v3956_v11, %v3427_v39  ;;  %v3965_v4 = vld [vmem:[%s7084_s11 + $0xe0] sm:$0xff] }
 0x34a   : > { %v3431_v41 = vpop.f32.mrf.mxu1 }
 0x34b   : > { %v3432_v27 = vadd.f32 %v3431_v41, %v7614_v28  ;;  %4903 = vmatprep.mubr.f32.mxu0 %v4020_v48 }
 0x34c   : > { %v3433_v10 = vpop.f32.mrf.mxu1  ;;  %4904 = vmatmul.mubr.f32.gmra.mxu0 %v3427_v39 }
 0x34d   : > { %v4021_v55 = vmul.f32 %v3957_v25, %v3432_v27 }
 0x34e   : > { %v3434_v5 = vpop.f32.mrf.mxu1 }
 0x34f   : > { %v3435_v63 = vadd.f32 %v3434_v5, %v7617_v29  ;;  %4908 = vmatprep.mubr.f32.mxu0 %v4021_v55 }
 0x350   : > { %v3436_v45 = vpop.f32.mrf.mxu1  ;;  %4909 = vmatmul.mubr.f32.gmra.mxu0 %v3432_v27  ;;  %v3966_v27 = vld [vmem:[%s7084_s11 + $0xe8] sm:$0xff] }
 0x351   : > { %v4022_v33 = vmul.f32 %v3958_v20, %v3435_v63  ;;  %v3967_v20 = vld [vmem:[%s7084_s11 + $0xf0] sm:$0xff] }
 0x352   : > { %v3439_v26 = vpop.f32.mrf.mxu1 }
 0x353   : > { %v3440_v16 = vadd.f32 %v3439_v26, %v7623_v50  ;;  %4913 = vmatprep.mubr.f32.mxu0 %v4022_v33  ;;  %v3968_v26 = vld [vmem:[%s7084_s11 + $0xf8] sm:$0xff] }
 0x354   : > { %v3441_v28 = vpop.f32.mrf.mxu1  ;;  %4914 = vmatmul.mubr.f32.gmra.mxu0 %v3435_v63 }
 0x355   : > { %v4023_v14 = vmul.f32 %v3959_v17, %v3440_v16 }
 0x356   : > { %v3442_v0 = vpop.f32.mrf.mxu1 }
 0x357   : > { %v3443_v51 = vadd.f32 %v3442_v0, %v7626_v21  ;;  %4918 = vmatprep.mubr.f32.mxu0 %v4023_v14  ;;  %v3969_v14 = vld [vmem:[%s7084_s11 + $0x100] sm:$0xff] }
 0x358   : > { %v3444_v29 = vpop.f32.mrf.mxu1  ;;  %4919 = vmatmul.mubr.f32.gmra.mxu0 %v3440_v16 }
 0x359   : > { %v4024_v57 = vmul.f32 %v3960_v22, %v3443_v51  ;;  %v3970_v29 = vld [vmem:[%s7084_s11 + $0x108] sm:$0xff] }
 0x35a   : > { %v3447_v59 = vpop.f32.mrf.mxu1 }
 0x35b   : > { %v3448_v23 = vadd.f32 %v3447_v59, %v7632_v13  ;;  %4923 = vmatprep.mubr.f32.mxu0 %v4024_v57 }
 0x35c   : > { %v3449_v50 = vpop.f32.mrf.mxu1  ;;  %4924 = vmatmul.mubr.f32.gmra.mxu0 %v3443_v51 }
 0x35d   : > { %v4025_v1 = vmul.f32 %v3961_v32, %v3448_v23 }
 0x35e   : > { %v3450_v61 = vpop.f32.mrf.mxu1 }
 0x35f   : > { %v3451_v7 = vadd.f32 %v3450_v61, %v7635_v8  ;;  %4928 = vmatprep.mubr.f32.mxu0 %v4025_v1 }
 0x360   : > { %v3452_v21 = vpop.f32.mrf.mxu1  ;;  %4929 = vmatmul.mubr.f32.gmra.mxu0 %v3448_v23  ;;  %v3971_v23 = vld [vmem:[%s7084_s11 + $0x110] sm:$0xff] }
 0x361   : > { %v4026_v19 = vmul.f32 %v3962_v36, %v3451_v7  ;;  %v3972_v36 = vld [vmem:[%s7084_s11 + $0x118] sm:$0xff] }
 0x362   : > { %v3455_v52 = vpop.f32.mrf.mxu1 }
 0x363   : > { %v3456_v47 = vadd.f32 %v3455_v52, %v7641_v3  ;;  %4933 = vmatprep.mubr.f32.mxu0 %v4026_v19  ;;  %v3973_v52 = vld [vmem:[%s7084_s11 + $0x120] sm:$0xff] }
 0x364   : > { %v3457_v13 = vpop.f32.mrf.mxu1  ;;  %4934 = vmatmul.mubr.f32.gmra.mxu0 %v3451_v7 }
 0x365   : > { %v4027_v43 = vmul.f32 %v3963_v15, %v3456_v47 }
 0x366   : > { %v3458_v9 = vpop.f32.mrf.mxu1 }
 0x367   : > { %v3459_v34 = vadd.f32 %v3458_v9, %v7644_v46  ;;  %4938 = vmatprep.mubr.f32.mxu0 %v4027_v43  ;;  %v3974_v43 = vld [vmem:[%s7084_s11 + $0x128] sm:$0xff] }
 0x368   : > { %v3460_v8 = vpop.f32.mrf.mxu1  ;;  %4939 = vmatmul.mubr.f32.gmra.mxu0 %v3456_v47 }
 0x369   : > { %v4028_v11 = vmul.f32 %v3964_v38, %v3459_v34  ;;  %v3975_v8 = vld [vmem:[%s7084_s11 + $0x130] sm:$0xff] }
 0x36a   : > { %v3463_v39 = vpop.f32.mrf.mxu1 }
 0x36b   : > { %v3464_v48 = vadd.f32 %v3463_v39, %v7650_v54  ;;  %4943 = vmatprep.mubr.f32.mxu0 %v4028_v11 }
 0x36c   : > { %v3465_v3 = vpop.f32.mrf.mxu1  ;;  %4944 = vmatmul.mubr.f32.gmra.mxu0 %v3459_v34 }
 0x36d   : > { %v4029_v41 = vmul.f32 %v3965_v4, %v3464_v48  ;;  %v3976_v3 = vld [vmem:[%s7084_s11 + $0x138] sm:$0xff] }
 0x36e   : > { %v3466_v25 = vpop.f32.mrf.mxu1 }
 0x36f   : > { %v3467_v10 = vadd.f32 %v3466_v25, %v7653_v30  ;;  %4948 = vmatprep.mubr.f32.mxu0 %v4029_v41 }
 0x370   : > { %v3468_v46 = vpop.f32.mrf.mxu1  ;;  %4949 = vmatmul.mubr.f32.gmra.mxu0 %v3464_v48 }
 0x371   : > { %v4030_v55 = vmul.f32 %v3966_v27, %v3467_v10  ;;  %v3977_v46 = vld [vmem:[%s7084_s11 + $0x140] sm:$0xff] }
 0x372   : > { %v3471_v5 = vpop.f32.mrf.mxu1 }
 0x373   : > { %v3472_v63 = vadd.f32 %v3471_v5, %v7659_v18  ;;  %4953 = vmatprep.mubr.f32.mxu0 %v4030_v55 }
 0x374   : > { %v3473_v54 = vpop.f32.mrf.mxu1  ;;  %4954 = vmatmul.mubr.f32.gmra.mxu0 %v3467_v10 }
 0x375   : > { %v4031_v45 = vmul.f32 %v3967_v20, %v3472_v63  ;;  %v3978_v54 = vld [vmem:[%s7084_s11 + $0x148] sm:$0xff] }
 0x376   : > { %v3474_v33 = vpop.f32.mrf.mxu1 }
 0x377   : > { %v3475_v17 = vadd.f32 %v3474_v33, %v7662_v31  ;;  %4958 = vmatprep.mubr.f32.mxu0 %v4031_v45 }
 0x378   : > { %v3476_v30 = vpop.f32.mrf.mxu1  ;;  %4959 = vmatmul.mubr.f32.gmra.mxu0 %v3472_v63 }
 0x379   : > { %v4032_v16 = vmul.f32 %v3968_v26, %v3475_v17 }
 0x37a   : > { %v3479_v28 = vpop.f32.mrf.mxu1 }
 0x37b   : > { %v3480_v0 = vadd.f32 %v3479_v28, %v7667_v58  ;;  %4963 = vmatprep.mubr.f32.mxu0 %v4032_v16  ;;  %v3979_v16 = vld [vmem:[%s7084_s11 + $0x150] sm:$0xff] }
 0x37c   : > { %v3481_v18 = vpop.f32.mrf.mxu1  ;;  %4964 = vmatmul.mubr.f32.gmra.mxu0 %v3475_v17 }
 0x37d   : > { %v4033_v22 = vmul.f32 %v3969_v14, %v3480_v0 }
 0x37e   : > { %v3482_v51 = vpop.f32.mrf.mxu1 }
 0x37f   : > { %v3483_v57 = vadd.f32 %v3482_v51, %v7670_v49  ;;  %4968 = vmatprep.mubr.f32.mxu0 %v4033_v22  ;;  %v3980_v22 = vld [vmem:[%s7084_s11 + $0x158] sm:$0xff] }
 0x380   : > { %v3484_v31 = vpop.f32.mrf.mxu1  ;;  %4969 = vmatmul.mubr.f32.gmra.mxu0 %v3480_v0 }
 0x381   : > { %v4034_v59 = vmul.f32 %v3970_v29, %v3483_v57 }
 0x382   : > { %v3487_v32 = vpop.f32.mrf.mxu1 }
 0x383   : > { %v3488_v50 = vadd.f32 %v3487_v32, %v7675_v53  ;;  %4973 = vmatprep.mubr.f32.mxu0 %v4034_v59  ;;  %v3981_v59 = vld [vmem:[%s7084_s11 + $0x160] sm:$0xff] }
 0x384   : > { %v3489_v58 = vpop.f32.mrf.mxu1  ;;  %4974 = vmatmul.mubr.f32.gmra.mxu0 %v3483_v57 }
 0x385   : > { %v4035_v1 = vmul.f32 %v3971_v23, %v3488_v50 }
 0x386   : > { %v3490_v61 = vpop.f32.mrf.mxu1 }
 0x387   : > { %v3491_v7 = vadd.f32 %v3490_v61, %v7678_v37  ;;  %4978 = vmatprep.mubr.f32.mxu0 %v4035_v1  ;;  %v3982_v61 = vld [vmem:[%s7084_s11 + $0x168] sm:$0xff] }
 0x388   : > { %v3492_v49 = vpop.f32.mrf.mxu1  ;;  %4979 = vmatmul.mubr.f32.gmra.mxu0 %v3488_v50 }
 0x389   : > { %v4036_v21 = vmul.f32 %v3972_v36, %v3491_v7 }
 0x38a   : > { %v3495_v19 = vpop.f32.mrf.mxu1 }
 0x38b   : > { %v3496_v15 = vadd.f32 %v3495_v19, %v7683_v2  ;;  %4983 = vmatprep.mubr.f32.mxu0 %v4036_v21  ;;  %v7952_v2 = vpop.permute.xlu0 %4356  ;;  %v3983_v19 = vld [vmem:[%s7084_s11 + $0x170] sm:$0xff] }
 0x38c   : > { %v3497_v53 = vpop.f32.mrf.mxu1  ;;  %4984 = vmatmul.mubr.f32.gmra.mxu0 %v3491_v7 }
 0x38d   : > { %v4037_v47 = vmul.f32 %v3973_v52, %v3496_v15  ;;  %v8823_v52 = vld [vmem:[#allocation23_spill] sm:$0xff] }
 0x38e   : > { %v3498_v13 = vpop.f32.mrf.mxu1 }
 0x38f   : > { %v3499_v9 = vadd.f32 %v3498_v13, %v7686_v24  ;;  %4988 = vmatprep.mubr.f32.mxu0 %v4037_v47  ;;  %v7956_v24 = vpop.permute.xlu1 %4366  ;;  %v7958_v10 = vpop.permute.xlu0 %4361 }
 0x390   : > { %v3500_v37 = vpop.f32.mrf.mxu1  ;;  %4989 = vmatmul.mubr.f32.gmra.mxu0 %v3496_v15 }
 0x391   : > { %v4038_v38 = vmul.f32 %v3974_v43, %v3499_v9  ;;  %v3984_v43 = vld [vmem:[%s7084_s11 + $0x178] sm:$0xff] }
 0x392   : > { %v3503_v34 = vpop.f32.mrf.mxu1 }
 0x393   : > { %v3504_v11 = vadd.f32 %v3503_v34, %v7691_v56  ;;  %4993 = vmatprep.mubr.f32.mxu0 %v4038_v38  ;;  %v7962_v63 = vpop.permute.xlu1 %4371  ;;  %v7966_v33 = vpop.permute.xlu0 %4376 }
 0x394   : > { %v3505_v39 = vpop.f32.mrf.mxu1  ;;  %4994 = vmatmul.mubr.f32.gmra.mxu0 %v3499_v9  ;;  %v8824_v9 = vld [vmem:[#allocation24_spill] sm:$0xff] }
 0x395   : > { %v4039_v4 = vmul.f32 %v3975_v8, %v3504_v11 }
 0x396   : > { %v3506_v48 = vpop.f32.mrf.mxu1 }
 0x397   : > { %v3507_v41 = vadd.f32 %v3506_v48, %v7694_v42  ;;  %4998 = vmatprep.mubr.f32.mxu0 %v4039_v4  ;;  %v7970_v28 = vpop.permute.xlu1 %4381  ;;  %v7972_v18 = vpop.permute.xlu0 %4386  ;;  %v3985_v4 = vld [vmem:[%s7084_s11 + $0x180] sm:$0xff]  ;;  %v8825_v48 = vld [vmem:[#allocation25_spill] sm:$0xff] }
 0x398   : > { %v3508_v25 = vpop.f32.mrf.mxu1  ;;  %4999 = vmatmul.mubr.f32.gmra.mxu0 %v3504_v11  ;;  %v7996_v11 = vld [vmem:[#allocation10] ss:$0 sm:$0xff] }
 0x399   : > { %v4040_v27 = vmul.f32 %v3976_v3, %v3507_v41 }
 0x39a   : > { %v3511_v56 = vpop.f32.mrf.mxu1 }
 0x39b   : > { %v3512_v55 = vadd.f32 %v3511_v56, %v7699_v44  ;;  %5003 = vmatprep.mubr.f32.mxu0 %v4040_v27  ;;  %v7976_v31 = vpop.permute.xlu1 %4391  ;;  %v7980_v23 = vpop.permute.xlu0 %4396  ;;  %v4680_v27 = vmul.f32 %v7996_v11, %v7952_v2  ;;  %v3987_v2 = vld [vmem:[%s7084_s11 + $0x190] sm:$0xff] }
 0x39c   : > { %v3513_v5 = vpop.f32.mrf.mxu1  ;;  %5004 = vmatmul.mubr.f32.gmra.mxu0 %v3507_v41 }
 0x39d   : > { %v4041_v20 = vmul.f32 %v3977_v46, %v3512_v55  ;;  %v3986_v5 = vld [vmem:[%s7084_s11 + $0x188] sm:$0xff] }
 0x39e   : > { %v3514_v42 = vpop.f32.mrf.mxu1 }
 0x39f   : > { %v3515_v45 = vadd.f32 %v3514_v42, %v7702_v60  ;;  %5008 = vmatprep.mubr.f32.mxu0 %v4041_v20  ;;  %v7984_v36 = vpop.permute.xlu1 %4401  ;;  %v7986_v21 = vpop.permute.xlu0 %4406  ;;  %v8826_v20 = vld [vmem:[#allocation26_spill] sm:$0xff] }
 0x3a0   : > { %v3516_v26 = vpop.f32.mrf.mxu1  ;;  %5009 = vmatmul.mubr.f32.gmra.mxu0 %v3512_v55 }
 0x3a1   : > { %v4042_v17 = vmul.f32 %v3978_v54, %v3515_v45  ;;  %v4681_v26 = vmul.f32 %v7996_v11, %v7958_v10  ;;  %v4682_v10 = vmul.f32 %v7996_v11, %v7956_v24 }
 0x3a2   : > { %v3519_v30 = vpop.f32.mrf.mxu1 }
 0x3a3   : > { %v3520_v44 = vadd.f32 %v3519_v30, %v7708_v40  ;;  %5013 = vmatprep.mubr.f32.mxu0 %v4042_v17  ;;  %v7990_v13 = vpop.permute.xlu1 %4411  ;;  %v7994_v38 = vpop.permute.xlu0 %4416 }
 0x3a4   : > { %v3521_v14 = vpop.f32.mrf.mxu1  ;;  %5014 = vmatmul.mubr.f32.gmra.mxu0 %v3515_v45 }
 0x3a5   : > { %v4043_v0 = vmul.f32 %v3979_v16, %v3520_v44 }
 0x3a6   : > { %v3522_v60 = vpop.f32.mrf.mxu1 }
 0x3a7   : > { %v3523_v51 = vadd.f32 %v3522_v60, %v7711_v62  ;;  %5018 = vmatprep.mubr.f32.mxu0 %v4043_v0  ;;  %v8000_v41 = vpop.permute.xlu1 %4421  ;;  %v8004_v46 = vpop.permute.xlu0 %4426  ;;  %v8827_v60 = vld [vmem:[#allocation27_spill] sm:$0xff] }
 0x3a8   : > { %v3524_v29 = vpop.f32.mrf.mxu1  ;;  %5019 = vmatmul.mubr.f32.gmra.mxu0 %v3520_v44 }
 0x3a9   : > { %v4044_v57 = vmul.f32 %v3980_v22, %v3523_v51 }
 0x3aa   : > { %v3527_v40 = vpop.f32.mrf.mxu1 }
 0x3ab   : > { %v3528_v32 = vadd.f32 %v3527_v40, %v7723_v12  ;;  %5023 = vmatprep.mubr.f32.mxu0 %v4044_v57  ;;  %v8010_v16 = vpop.permute.xlu1 %4431 }
 0x3ac   : > { %v3529_v50 = vpop.f32.mrf.mxu1  ;;  %5024 = vmatmul.mubr.f32.gmra.mxu0 %v3523_v51  ;;  %v8014_v51 = vpop.permute.xlu0 %4436 }
 0x3ad   : > { %v4045_v58 = vmul.f32 %v3981_v59, %v3528_v32 }
 0x3ae   : > { %v3530_v1 = vpop.f32.mrf.mxu1 }
 0x3af   : > { %v3531_v62 = vadd.f32 %v3530_v1, %v7728_v35  ;;  %5028 = vmatprep.mubr.f32.mxu0 %v4045_v58  ;;  %v3988_v58 = vld [vmem:[%s7084_s11 + $0x198] sm:$0xff] }
 0x3b0   : > { %v3532_v7 = vpop.f32.mrf.mxu1  ;;  %5029 = vmatmul.mubr.f32.gmra.mxu0 %v3528_v32 }
 0x3b1   : > { %v4046_v49 = vmul.f32 %v3982_v61, %v3531_v62  ;;  %v8828_v7 = vld [vmem:[#allocation28_spill] sm:$0xff] }
 0x3b2   : > { %v3535_v12 = vpop.f32.mrf.mxu1 }
 0x3b3   : > { %v3536_v15 = vadd.f32 %v3535_v12, %v8823_v52  ;;  %5033 = vmatprep.mubr.f32.mxu0 %v4046_v49  ;;  %v8024_v12 = vpop.permute.xlu1 %4441  ;;  %v4683_v52 = vmul.f32 %v7996_v11, %v7962_v63 }
 0x3b4   : > { %v3537_v53 = vpop.f32.mrf.mxu1  ;;  %5034 = vmatmul.mubr.f32.gmra.mxu0 %v3531_v62 }
 0x3b5   : > { %v4047_v47 = vmul.f32 %v3983_v19, %v3536_v15 }
 0x3b6   : > { %v3538_v35 = vpop.f32.mrf.mxu1 }
 0x3b7   : > { %v3539_v37 = vadd.f32 %v3538_v35, %v8824_v9  ;;  %5038 = vmatprep.mubr.f32.mxu0 %v4047_v47  ;;  %v8030_v35 = vpop.permute.xlu0 %4446  ;;  %v3989_v9 = vld [vmem:[%s7084_s11 + $0x1a0] sm:$0xff] }
 0x3b8   : > { %v3540_v34 = vpop.f32.mrf.mxu1  ;;  %5039 = vmatmul.mubr.f32.gmra.mxu0 %v3536_v15 }
 0x3b9   : > { %v4048_v8 = vmul.f32 %v3984_v43, %v3539_v37 }
 0x3ba   : > { %v3543_v39 = vpop.f32.mrf.mxu1 }
 0x3bb   : > { %v3544_v3 = vadd.f32 %v3543_v39, %v8825_v48  ;;  %5043 = vmatprep.mubr.f32.mxu0 %v4048_v8  ;;  %v8829_v39 = vld [vmem:[#allocation29_spill] sm:$0xff] }
 0x3bc   : > { %v3545_v25 = vpop.f32.mrf.mxu1  ;;  %5044 = vmatmul.mubr.f32.gmra.mxu0 %v3539_v37 }
 0x3bd   : > { %v4049_v56 = vmul.f32 %v3985_v4, %v3544_v3 }
 0x3be   : > { %v3546_v55 = vpop.f32.mrf.mxu1 }
 0x3bf   : > { %v3547_v42 = vadd.f32 %v3546_v55, %v8826_v20  ;;  %5048 = vmatprep.mubr.f32.mxu0 %v4049_v56  ;;  %v8038_v56 = vpop.permute.xlu1 %4451  ;;  %v3990_v20 = vld [vmem:[%s7084_s11 + $0x1a8] sm:$0xff] }
 0x3c0   : > { %v3548_v54 = vpop.f32.mrf.mxu1  ;;  %v4810_v45 = vpop.f32.mrf.mxu0  ;;  %5049 = vmatmul.mubr.f32.gmra.mxu0 %v3544_v3  ;;  %v4684_v3 = vmul.f32 %v7996_v11, %v7966_v33 }
 0x3c1   : > { %v4050_v17 = vmul.f32 %v3986_v5, %v3547_v42  ;;  %v4811_v30 = vadd.f32 %v4810_v45, %v4680_v27 }
 0x3c2   : > { %v3551_v44 = vpop.f32.mrf.mxu1  ;;  %v4812_v14 = vpop.f32.mrf.mxu0 }
 0x3c3   : > { %v5193_v0 = vmul.f32 0.2, %v4811_v30  ;;  %v3552_v22 = vadd.f32 %v3551_v44, %v8827_v60  ;;  %5053 = vmatprep.mubr.f32.mxu0 %v4050_v17  ;;  %vm5129_vm0 = vcmp.gt.f32.partialorder %v4811_v30, 0.0 }
 0x3c4   : > { %v3553_v29 = vpop.f32.mrf.mxu1  ;;  %v4815_v57 = vpop.f32.mrf.mxu0  ;;  %5054 = vmatmul.mubr.f32.gmra.mxu0 %v3547_v42 }
 0x3c5   : > { %v4051_v40 = vmul.f32 %v3987_v2, %v3552_v22  ;;  %v4816_v59 = vadd.f32 %v4815_v57, %v4681_v26  ;;  %v8018_v32 = vsel %vm5129_vm0, %v4811_v30, %v5193_v0  ;;  %v8830_v26 = vld [vmem:[#allocation30_spill] sm:$0xff]  ;;  %v8046_v30 = vpop.permute.xlu0 %4456  ;;  %v4685_v2 = vmul.f32 %v7996_v11, %v7970_v28  ;;  %v3991_v29 = vld [vmem:[%s7084_s11 + $0x1b0] sm:$0xff] }
 0x3c6   : > { %v3554_v50 = vpop.f32.mrf.mxu1  ;;  %v4817_v1 = vpop.f32.mrf.mxu0  ;;  %v5321_v61 = vmul.f32 %v8018_v32, %v8018_v32 }
 0x3c7   : > { %v5194_v62 = vmul.f32 0.2, %v4816_v59  ;;  %v3555_v49 = vadd.f32 %v3554_v50, %v8828_v7  ;;  %5058 = vmatprep.mubr.f32.mxu0 %v4051_v40  ;;  %vm5130_vm1 = vcmp.gt.f32.partialorder %v4816_v59, 0.0 }
 0x3c8   : > { %v3556_v19 = vpop.f32.mrf.mxu1  ;;  %v4820_v24 = vpop.f32.mrf.mxu0  ;;  %5059 = vmatmul.mubr.f32.gmra.mxu0 %v3552_v22  ;;  %5385 = vadd.xlane.f32.xlu0 %v5321_v61  ;;  %v4686_v61 = vmul.f32 %v7996_v11, %v7972_v18 }
 0x3c9   : > { %v4052_v15 = vmul.f32 %v3988_v58, %v3555_v49  ;;  %v4821_v53 = vadd.f32 %v4820_v24, %v4682_v10  ;;  %v8028_v47 = vsel %vm5130_vm1, %v4816_v59, %v5194_v62  ;;  %v8831_v59 = vld [vmem:[#allocation31_spill] sm:$0xff]  ;;  %v8056_v58 = vpop.permute.xlu1 %4461 }
 0x3ca   : > { %v3559_v43 = vpop.f32.mrf.mxu1  ;;  %v4822_v37 = vpop.f32.mrf.mxu0  ;;  %v5322_v34 = vmul.f32 %v8028_v47, %v8028_v47 }
 0x3cb   : > { %v5195_v8 = vmul.f32 0.2, %v4821_v53  ;;  %v3560_v4 = vadd.f32 %v3559_v43, %v8829_v39  ;;  %5063 = vmatprep.mubr.f32.mxu0 %v4052_v15  ;;  %vm5131_vm2 = vcmp.gt.f32.partialorder %v4821_v53, 0.0 }
 0x3cc   : > { %v3561_v48 = vpop.f32.mrf.mxu1  ;;  %v4825_v63 = vpop.f32.mrf.mxu0  ;;  %5064 = vmatmul.mubr.f32.gmra.mxu0 %v3555_v49  ;;  %5387 = vadd.xlane.f32.xlu1 %v5322_v34 }
 0x3cd   : > { %v4053_v25 = vmul.f32 %v3989_v9, %v3560_v4  ;;  %v4826_v27 = vadd.f32 %v4825_v63, %v4683_v52  ;;  %v8040_v55 = vsel %vm5131_vm2, %v4821_v53, %v5195_v8  ;;  %v8060_v49 = vpop.permute.xlu0 %4466  ;;  %v3992_v52 = vld [vmem:[%s7084_s11 + $0x1b8] sm:$0xff]  ;;  %v8832_v9 = vld [vmem:[#allocation32_spill] sm:$0xff]  ;;  %v4687_v8 = vmul.f32 %v7996_v11, %v7976_v31 }
 0x3ce   : > { %v3562_v5 = vpop.f32.mrf.mxu1  ;;  %v4827_v42 = vpop.f32.mrf.mxu0  ;;  %v5323_v54 = vmul.f32 %v8040_v55, %v8040_v55 }
 0x3cf   : > { %v5196_v45 = vmul.f32 0.2, %v4826_v27  ;;  %v3563_v17 = vadd.f32 %v3562_v5, %v8830_v26  ;;  %5068 = vmatprep.mubr.f32.mxu0 %v4053_v25  ;;  %vm5132_vm3 = vcmp.gt.f32.partialorder %v4826_v27, 0.0  ;;  %v3993_v25 = vld [vmem:[%s7084_s11 + $0x1c0] sm:$0xff] }
 0x3d0   : > { %v3564_v33 = vpop.f32.mrf.mxu1  ;;  %v4830_v44 = vpop.f32.mrf.mxu0  ;;  %5069 = vmatmul.mubr.f32.gmra.mxu0 %v3560_v4  ;;  %5389 = vadd.xlane.f32.xlu0 %v5323_v54  ;;  %v8833_v54 = vld [vmem:[#allocation33_spill] sm:$0xff] }
 0x3d1   : > { %v4054_v14 = vmul.f32 %v3990_v20, %v3563_v17  ;;  %v4831_v0 = vadd.f32 %v4830_v44, %v4684_v3  ;;  %v8050_v60 = vsel %vm5132_vm3, %v4826_v27, %v5196_v45  ;;  %v8070_v4 = vpop.permute.xlu1 %4471  ;;  %v8077_v42 = vpop.permute.xlu0 %4476 }
 0x3d2   : > { %v3567_v22 = vpop.f32.mrf.mxu1  ;;  %v4832_v57 = vpop.f32.mrf.mxu0  ;;  %v5324_v10 = vmul.f32 %v8050_v60, %v8050_v60 }
 0x3d3   : > { %v5197_v40 = vmul.f32 0.2, %v4831_v0  ;;  %v3568_v50 = vadd.f32 %v3567_v22, %v8831_v59  ;;  %5073 = vmatprep.mubr.f32.mxu0 %v4054_v14  ;;  %vm5133_vm4 = vcmp.gt.f32.partialorder %v4831_v0, 0.0 }
 0x3d4   : > { %v3569_v1 = vpop.f32.mrf.mxu1  ;;  %v4835_v28 = vpop.f32.mrf.mxu0  ;;  %5074 = vmatmul.mubr.f32.gmra.mxu0 %v3563_v17  ;;  %5391 = vadd.xlane.f32.xlu0 %v5324_v10  ;;  %v4688_v17 = vmul.f32 %v7996_v11, %v7980_v23 }
 0x3d5   : > { %v4055_v62 = vmul.f32 %v3991_v29, %v3568_v50  ;;  %v4836_v7 = vadd.f32 %v4835_v28, %v4685_v2  ;;  %v8062_v19 = vsel %vm5133_vm4, %v4831_v0, %v5197_v40  ;;  %v3994_v0 = vld [vmem:[%s7084_s11 + $0x1c8] sm:$0xff]  ;;  %v8087_v57 = vpop.permute.xlu1 %4481  ;;  %v8834_v40 = vld [vmem:[#allocation34_spill] sm:$0xff]  ;;  %v4689_v1 = vmul.f32 %v7996_v11, %v7984_v36  ;;  %v8092_v28 = vpop.permute.xlu0 %4486 }
 0x3d6   : > { %v3570_v24 = vpop.f32.mrf.mxu1  ;;  %v4837_v15 = vpop.f32.mrf.mxu0  ;;  %v5325_v53 = vmul.f32 %v8062_v19, %v8062_v19 }
 0x3d7   : > { %v5198_v43 = vmul.f32 0.2, %v4836_v7  ;;  %v3571_v37 = vadd.f32 %v3570_v24, %v8832_v9  ;;  %5078 = vmatprep.mubr.f32.mxu0 %v4055_v62  ;;  %vm5134_vm5 = vcmp.gt.f32.partialorder %v4836_v7, 0.0  ;;  %v8835_v9 = vld [vmem:[#allocation35_spill] sm:$0xff] }
 0x3d8   : > { %v3572_v34 = vpop.f32.mrf.mxu1  ;;  %v4840_v18 = vpop.f32.mrf.mxu0  ;;  %5079 = vmatmul.mubr.f32.gmra.mxu0 %v3568_v50  ;;  %5393 = vadd.xlane.f32.xlu1 %v5325_v53 }
 0x3d9   : > { %v4056_v39 = vmul.f32 %v3992_v52, %v3571_v37  ;;  %v4841_v48 = vadd.f32 %v4840_v18, %v4686_v61  ;;  %v8072_v63 = vsel %vm5134_vm5, %v4836_v7, %v5198_v43  ;;  %v3995_v52 = vld [vmem:[%s7084_s11 + $0x1d0] sm:$0xff]  ;;  %v4690_v18 = vmul.f32 %v7996_v11, %v7986_v21 }
 0x3da   : > { %v3575_v3 = vpop.f32.mrf.mxu1  ;;  %v4842_v27 = vpop.f32.mrf.mxu0  ;;  %v5326_v5 = vmul.f32 %v8072_v63, %v8072_v63 }
 0x3db   : > { %v5199_v20 = vmul.f32 0.2, %v4841_v48  ;;  %v3576_v45 = vadd.f32 %v3575_v3, %v8833_v54  ;;  %5083 = vmatprep.mubr.f32.mxu0 %v4056_v39  ;;  %vm5135_vm6 = vcmp.gt.f32.partialorder %v4841_v48, 0.0  ;;  %v3996_v27 = vld [vmem:[%s7084_s11 + $0x1d8] sm:$0xff]  ;;  %v8109_v54 = vpop.permute.xlu0 %4496 }
 0x3dc   : > { %v3577_v31 = vpop.f32.mrf.mxu1  ;;  %v4845_v26 = vpop.f32.mrf.mxu0  ;;  %5084 = vmatmul.mubr.f32.gmra.mxu0 %v3571_v37  ;;  %5395 = vadd.xlane.f32.xlu0 %v5326_v5 }
 0x3dd   : > { %v4057_v33 = vmul.f32 %v3993_v25, %v3576_v45  ;;  %v4846_v44 = vadd.f32 %v4845_v26, %v4687_v8  ;;  %v8082_v2 = vsel %vm5135_vm6, %v4841_v48, %v5199_v20  ;;  %v8102_v8 = vpop.permute.xlu1 %4491  ;;  %v8836_v31 = vld [vmem:[#allocation36_spill] sm:$0xff] }
 0x3de   : > { %v3578_v14 = vpop.f32.mrf.mxu1  ;;  %v4847_v22 = vpop.f32.mrf.mxu0  ;;  %v5327_v29 = vmul.f32 %v8082_v2, %v8082_v2 }
 0x3df   : > { %v5200_v10 = vmul.f32 0.2, %v4846_v44  ;;  %v3579_v59 = vadd.f32 %v3578_v14, %v8834_v40  ;;  %5088 = vmatprep.mubr.f32.mxu0 %v4057_v33  ;;  %vm5136_vm7 = vcmp.gt.f32.partialorder %v4846_v44, 0.0  ;;  %v4691_v33 = vmul.f32 %v7996_v11, %v7990_v13 }
 0x3e0   : > { %v3580_v50 = vpop.f32.mrf.mxu1  ;;  %v4850_v23 = vpop.f32.mrf.mxu0  ;;  %5089 = vmatmul.mubr.f32.gmra.mxu0 %v3576_v45  ;;  %5397 = vadd.xlane.f32.xlu1 %v5327_v29  ;;  %v3997_v29 = vld [vmem:[%s7084_s11 + $0x1e0] sm:$0xff] }
 0x3e1   : > { %v4058_v61 = vmul.f32 %v3994_v0, %v3579_v59  ;;  %v4851_v62 = vadd.f32 %v4850_v23, %v4688_v17  ;;  %v8094_v7 = vsel %vm5136_vm7, %v4846_v44, %v5200_v10  ;;  %v8837_v23 = vld [vmem:[#allocation37_spill] sm:$0xff] }
 0x3e2   : > { %v3583_v24 = vpop.f32.mrf.mxu1  ;;  %v4852_v15 = vpop.f32.mrf.mxu0  ;;  %v5328_v53 = vmul.f32 %v8094_v7, %v8094_v7 }
 0x3e3   : > { %v5201_v43 = vmul.f32 0.2, %v4851_v62  ;;  %v3584_v37 = vadd.f32 %v3583_v24, %v8835_v9  ;;  %5093 = vmatprep.mubr.f32.mxu0 %v4058_v61  ;;  %vm5137_vm8 = vcmp.gt.f32.partialorder %v4851_v62, 0.0  ;;  %v8124_v24 = vpop.permute.xlu0 %4506  ;;  %v3998_v9 = vld [vmem:[%s7084_s11 + $0x1e8] sm:$0xff] }
 0x3e4   : > { %v3585_v34 = vpop.f32.mrf.mxu1  ;;  %v4855_v36 = vpop.f32.mrf.mxu0  ;;  %5094 = vmatmul.mubr.f32.gmra.mxu0 %v3579_v59  ;;  %5399 = vadd.xlane.f32.xlu0 %v5328_v53 }
 0x3e5   : > { %v4059_v39 = vmul.f32 %v3995_v52, %v3584_v37  ;;  %v4856_v48 = vadd.f32 %v4855_v36, %v4689_v1  ;;  %v8104_v3 = vsel %vm5137_vm8, %v4851_v62, %v5201_v43  ;;  %v8119_v59 = vpop.permute.xlu1 %4501  ;;  %v4692_v62 = vmul.f32 %v7996_v11, %v7994_v38 }
 0x3e6   : > { %v3586_v25 = vpop.f32.mrf.mxu1  ;;  %v4857_v5 = vpop.f32.mrf.mxu0  ;;  %v5329_v20 = vmul.f32 %v8104_v3, %v8104_v3 }
 0x3e7   : > { %v5202_v45 = vmul.f32 0.2, %v4856_v48  ;;  %v3587_v26 = vadd.f32 %v3586_v25, %v8836_v31  ;;  %5098 = vmatprep.mubr.f32.mxu0 %v4059_v39  ;;  %vm5138_vm9 = vcmp.gt.f32.partialorder %v4856_v48, 0.0  ;;  %v4693_v25 = vmul.f32 %v7996_v11, %v8000_v41 }
 0x3e8   : > { %v3588_v21 = vpop.f32.mrf.mxu1  ;;  %v4860_v17 = vpop.f32.mrf.mxu0  ;;  %5099 = vmatmul.mubr.f32.gmra.mxu0 %v3584_v37  ;;  %5401 = vadd.xlane.f32.xlu1 %v5329_v20 }
 0x3e9   : > { %v4060_v44 = vmul.f32 %v3996_v27, %v3587_v26  ;;  %v4861_v14 = vadd.f32 %v4860_v17, %v4690_v18  ;;  %v8114_v0 = vsel %vm5138_vm9, %v4856_v48, %v5202_v45  ;;  %v8838_v18 = vld [vmem:[#allocation38_spill] sm:$0xff]  ;;  %v8134_v27 = vpop.permute.xlu1 %4511 }
 0x3ea   : > { %v3591_v22 = vpop.f32.mrf.mxu1  ;;  %v4862_v10 = vpop.f32.mrf.mxu0  ;;  %v5330_v40 = vmul.f32 %v8114_v0, %v8114_v0 }
 0x3eb   : > { %v5203_v50 = vmul.f32 0.2, %v4861_v14  ;;  %v3592_v1 = vadd.f32 %v3591_v22, %v8837_v23  ;;  %5103 = vmatprep.mubr.f32.mxu0 %v4060_v44  ;;  %vm5139_vm10 = vcmp.gt.f32.partialorder %v4861_v14, 0.0  ;;  %v4694_v10 = vmul.f32 %v7996_v11, %v8004_v46 }
 0x3ec   : > { %v3593_v61 = vpop.f32.mrf.mxu1  ;;  %v4865_v13 = vpop.f32.mrf.mxu0  ;;  %5104 = vmatmul.mubr.f32.gmra.mxu0 %v3587_v26  ;;  %5403 = vadd.xlane.f32.xlu0 %v5330_v40  ;;  %v3999_v26 = vld [vmem:[%s7084_s11 + $0x1f0] sm:$0xff]  ;;  %v4695_v46 = vmul.f32 %v7996_v11, %v8010_v16 }
 0x3ed   : > { %v4061_v52 = vmul.f32 %v3997_v29, %v3592_v1  ;;  %v4866_v15 = vadd.f32 %v4865_v13, %v4691_v33  ;;  %v8126_v53 = vsel %vm5139_vm10, %v4861_v14, %v5203_v50  ;;  %v8141_v33 = vpop.permute.xlu0 %4516  ;;  %v8839_v14 = vld [vmem:[#allocation39_spill] sm:$0xff]  ;;  %v4000_v61 = vld [vmem:[%s7084_s11 + $0x1f8] sm:$0xff] }
 0x3ee   : > { %v3594_v43 = vpop.f32.mrf.mxu1  ;;  %v4867_v37 = vpop.f32.mrf.mxu0  ;;  %v5331_v34 = vmul.f32 %v8126_v53, %v8126_v53 }
 0x3ef   : > { %v5204_v36 = vmul.f32 0.2, %v4866_v15  ;;  %v3595_v39 = vadd.f32 %v3594_v43, %v8838_v18  ;;  %5108 = vmatprep.mubr.f32.mxu0 %v4061_v52  ;;  %vm5140_vm11 = vcmp.gt.f32.partialorder %v4866_v15, 0.0  ;;  %v8151_v52 = vpop.permute.xlu1 %4521 }
 0x3f0   : > { %v3596_v48 = vpop.f32.mrf.mxu1  ;;  %v4870_v38 = vpop.f32.mrf.mxu0  ;;  %5109 = vmatmul.mubr.f32.gmra.mxu0 %v3592_v1  ;;  %5405 = vadd.xlane.f32.xlu1 %v5331_v34 }
 0x3f1   : > { %v4062_v5 = vmul.f32 %v3998_v9, %v3595_v39  ;;  %v4871_v20 = vadd.f32 %v4870_v38, %v4692_v62  ;;  %v8136_v45 = vsel %vm5140_vm11, %v4866_v15, %v5204_v36  ;;  %v8156_v34 = vpop.permute.xlu0 %4526 }
 0x3f2   : > { %v3599_v31 = vpop.f32.mrf.mxu1  ;;  %v4872_v21 = vpop.f32.mrf.mxu0  ;;  %v5332_v17 = vmul.f32 %v8136_v45, %v8136_v45 }
 0x3f3   : > { %v5205_v44 = vmul.f32 0.2, %v4871_v20  ;;  %v3600_v22 = vadd.f32 %v3599_v31, %v8839_v14  ;;  %5113 = vmatprep.mubr.f32.mxu0 %v4062_v5  ;;  %vm5141_vm12 = vcmp.gt.f32.partialorder %v4871_v20, 0.0  ;;  %v4696_v5 = vmul.f32 %v7996_v11, %v8014_v51  ;;  %v8164_v16 = vpop.permute.xlu1 %4531 }
 0x3f4   : > { %v3601_v41 = vpop.f32.mrf.mxu1  ;;  %v4875_v29 = vpop.f32.mrf.mxu0  ;;  %5114 = vmatmul.mubr.f32.gmra.mxu0 %v3595_v39  ;;  %5407 = vadd.xlane.f32.xlu0 %v5332_v17 }
 0x3f5   : > { %v4063_v40 = vmul.f32 %v3999_v26, %v3600_v22  ;;  %v4876_v50 = vadd.f32 %v4875_v29, %v4693_v25  ;;  %v8146_v23 = vsel %vm5141_vm12, %v4871_v20, %v5205_v44  ;;  %v8170_v17 = vpop.permute.xlu0 %4536 }
 0x3f6   : > { %v3602_v1 = vpop.f32.mrf.mxu1  ;;  %v4877_v13 = vpop.f32.mrf.mxu0  ;;  %v5333_v62 = vmul.f32 %v8146_v23, %v8146_v23 }
 0x3f7   : > { %v5206_v15 = vmul.f32 0.2, %v4876_v50  ;;  %v3603_v43 = vadd.f32 %v3602_v1, %v7836_v6  ;;  %5118 = vmatprep.mubr.f32.mxu0 %v4063_v40  ;;  %vm5142_vm13 = vcmp.gt.f32.partialorder %v4876_v50, 0.0  ;;  %v8178_v40 = vpop.permute.xlu1 %4541 }
 0x3f8   : > { %v3604_v9 = vpop.f32.mrf.mxu1  ;;  %v4880_v37 = vpop.f32.mrf.mxu0  ;;  %5119 = vmatmul.mubr.f32.gmra.mxu0 %v3600_v22  ;;  %5409 = vadd.xlane.f32.xlu1 %v5333_v62  ;;  %v4697_v22 = vmul.f32 %v7996_v11, %v8024_v12 }
 0x3f9   : > { %v4064_v36 = vmul.f32 %v4000_v61, %v3603_v43  ;;  %v4881_v18 = vadd.f32 %v4880_v37, %v4694_v10  ;;  %v8158_v39 = vsel %vm5142_vm13, %v4876_v50, %v5206_v15  ;;  %v4698_v61 = vmul.f32 %v7996_v11, %v8030_v35  ;;  %v8182_v13 = vpop.permute.xlu0 %4546 }
 0x3fa   : > { %v4882_v48 = vpop.f32.mrf.mxu0  ;;  %v5334_v38 = vmul.f32 %v8158_v39, %v8158_v39 }
 0x3fb   : > { %v5207_v6 = vmul.f32 0.2, %v4881_v18  ;;  %5123 = vmatprep.mubr.f32.mxu0 %v4064_v36  ;;  %vm5143_vm14 = vcmp.gt.f32.partialorder %v4881_v18, 0.0  ;;  %v8190_v36 = vpop.permute.xlu1 %4551 }
 0x3fc   : > { %v4885_v25 = vpop.f32.mrf.mxu0  ;;  %5124 = vmatmul.mubr.f32.gmra.mxu0 %v3603_v43  ;;  %5411 = vadd.xlane.f32.xlu0 %v5334_v38 }
 0x3fd   : > { %v4886_v20 = vadd.f32 %v4885_v25, %v4695_v46  ;;  %v8166_v31 = vsel %vm5143_vm14, %v4881_v18, %v5207_v6  ;;  %v4699_v46 = vmul.f32 %v7996_v11, %v8038_v56  ;;  %v8196_v6 = vpop.permute.xlu0 %4556 }
 0x3fe   : > { %v4887_v26 = vpop.f32.mrf.mxu0  ;;  %v5335_v21 = vmul.f32 %v8166_v31, %v8166_v31 }
 0x3ff   : > { %v5208_v44 = vmul.f32 0.2, %v4886_v20  ;;  %vm5144_vm15 = vcmp.gt.f32.partialorder %v4886_v20, 0.0 }
 0x400   : > { %v4890_v14 = vpop.f32.mrf.mxu0  ;;  %5413 = vadd.xlane.f32.xlu1 %v5335_v21 }
 0x401   : > { %v4891_v41 = vadd.f32 %v4890_v14, %v4696_v5  ;;  %v8174_v51 = vsel %vm5144_vm15, %v4886_v20, %v5208_v44  ;;  %v4700_v20 = vmul.f32 %v7996_v11, %v8046_v30  ;;  %v8204_v14 = vpop.permute.xlu1 %4561 }
 0x402   : > { %v4892_v29 = vpop.f32.mrf.mxu0  ;;  %v5336_v10 = vmul.f32 %v8174_v51, %v8174_v51 }
 0x403   : > { %v5209_v50 = vmul.f32 0.2, %v4891_v41  ;;  %vm5145_vm0 = vcmp.gt.f32.partialorder %v4891_v41, 0.0  ;;  %v4701_v29 = vmul.f32 %v7996_v11, %v8056_v58 }
 0x404   : > { %v4895_v1 = vpop.f32.mrf.mxu0  ;;  %5415 = vadd.xlane.f32.xlu0 %v5336_v10  ;;  %v8208_v10 = vpop.permute.xlu0 %4566 }
 0x405   : > { %v4896_v62 = vadd.f32 %v4895_v1, %v4697_v22  ;;  %v8184_v12 = vsel %vm5145_vm0, %v4891_v41, %v5209_v50 }
 0x406   : > { %v4897_v15 = vpop.f32.mrf.mxu0  ;;  %v5337_v43 = vmul.f32 %v8184_v12, %v8184_v12 }
 0x407   : > { %v5210_v9 = vmul.f32 0.2, %v4896_v62  ;;  %vm5146_vm1 = vcmp.gt.f32.partialorder %v4896_v62, 0.0 }
 0x408   : > { %v4900_v37 = vpop.f32.mrf.mxu0  ;;  %5417 = vadd.xlane.f32.xlu1 %v5337_v43  ;;  %v4702_v43 = vmul.f32 %v7996_v11, %v8060_v49 }
 0x409   : > { %v4901_v18 = vadd.f32 %v4900_v37, %v4698_v61  ;;  %v8192_v35 = vsel %vm5146_vm1, %v4896_v62, %v5210_v9  ;;  %v8216_v9 = vpop.permute.xlu1 %4571 }
 0x40a   : > { %v4902_v48 = vpop.f32.mrf.mxu0  ;;  %v5338_v38 = vmul.f32 %v8192_v35, %v8192_v35 }
 0x40b   : > { %v5211_v25 = vmul.f32 0.2, %v4901_v18  ;;  %vm5147_vm2 = vcmp.gt.f32.partialorder %v4901_v18, 0.0  ;;  %v8222_v48 = vpop.permute.xlu0 %4576 }
 0x40c   : > { %v4905_v5 = vpop.f32.mrf.mxu0  ;;  %5419 = vadd.xlane.f32.xlu0 %v5338_v38 }
 0x40d   : > { %v4906_v26 = vadd.f32 %v4905_v5, %v4699_v46  ;;  %v8200_v56 = vsel %vm5147_vm2, %v4901_v18, %v5211_v25  ;;  %v4703_v5 = vmul.f32 %v7996_v11, %v8070_v4 }
 0x40e   : > { %v4907_v21 = vpop.f32.mrf.mxu0  ;;  %v5339_v44 = vmul.f32 %v8200_v56, %v8200_v56 }
 0x40f   : > { %v5212_v22 = vmul.f32 0.2, %v4906_v26  ;;  %vm5148_vm3 = vcmp.gt.f32.partialorder %v4906_v26, 0.0 }
 0x410   : > { %v4910_v41 = vpop.f32.mrf.mxu0  ;;  %5421 = vadd.xlane.f32.xlu1 %v5339_v44  ;;  %v8230_v44 = vpop.permute.xlu1 %4581 }
 0x411   : > { %v4911_v50 = vadd.f32 %v4910_v41, %v4700_v20  ;;  %v8210_v30 = vsel %vm5148_vm3, %v4906_v26, %v5212_v22 }
 0x412   : > { %v4912_v1 = vpop.f32.mrf.mxu0  ;;  %v5340_v61 = vmul.f32 %v8210_v30, %v8210_v30 }
 0x413   : > { %v5213_v62 = vmul.f32 0.2, %v4911_v50  ;;  %vm5149_vm4 = vcmp.gt.f32.partialorder %v4911_v50, 0.0 }
 0x414   : > { %v4915_v15 = vpop.f32.mrf.mxu0  ;;  %5423 = vadd.xlane.f32.xlu0 %v5340_v61 }
 0x415   : > { %v4916_v37 = vadd.f32 %v4915_v15, %v4701_v29  ;;  %v8218_v58 = vsel %vm5149_vm4, %v4911_v50, %v5213_v62  ;;  %v4704_v29 = vmul.f32 %v7996_v11, %v8077_v42  ;;  %v8234_v50 = vpop.permute.xlu0 %4586 }
 0x416   : > { %v4917_v46 = vpop.f32.mrf.mxu0  ;;  %v5341_v18 = vmul.f32 %v8218_v58, %v8218_v58 }
 0x417   : > { %v5214_v38 = vmul.f32 0.2, %v4916_v37  ;;  %vm5150_vm5 = vcmp.gt.f32.partialorder %v4916_v37, 0.0  ;;  %v8242_v46 = vpop.permute.xlu1 %4591 }
 0x418   : > { %v4920_v25 = vpop.f32.mrf.mxu0  ;;  %5425 = vadd.xlane.f32.xlu1 %v5341_v18 }
 0x419   : > { %v4921_v20 = vadd.f32 %v4920_v25, %v4702_v43  ;;  %v8226_v49 = vsel %vm5150_vm5, %v4916_v37, %v5214_v38  ;;  %v4705_v37 = vmul.f32 %v7996_v11, %v8087_v57 }
 0x41a   : > { %8840 = vst [vmem:[#allocation40_spill] sm:$0xff] %v8226_v49  ;;  %v4922_v26 = vpop.f32.mrf.mxu0  ;;  %v5342_v21 = vmul.f32 %v8226_v49, %v8226_v49 }
 0x41b   : > { %v5215_v22 = vmul.f32 0.2, %v4921_v20  ;;  %vm5151_vm6 = vcmp.gt.f32.partialorder %v4921_v20, 0.0 }
 0x41c   : > { %v4925_v41 = vpop.f32.mrf.mxu0  ;;  %5427 = vadd.xlane.f32.xlu0 %v5342_v21 }
 0x41d   : > { %v4926_v1 = vadd.f32 %v4925_v41, %v4703_v5  ;;  %v8236_v4 = vsel %vm5151_vm6, %v4921_v20, %v5215_v22  ;;  %v8248_v5 = vpop.permute.xlu0 %4596 }
 0x41e   : > { %8841 = vst [vmem:[#allocation41_spill] sm:$0xff] %v8236_v4  ;;  %v4927_v61 = vpop.f32.mrf.mxu0  ;;  %v5343_v62 = vmul.f32 %v8236_v4, %v8236_v4 }
 0x41f   : > { %v5216_v15 = vmul.f32 0.2, %v4926_v1  ;;  %vm5152_vm7 = vcmp.gt.f32.partialorder %v4926_v1, 0.0 }
 0x420   : > { %v4930_v43 = vpop.f32.mrf.mxu0  ;;  %5429 = vadd.xlane.f32.xlu1 %v5343_v62 }
 0x421   : > { %v4931_v18 = vadd.f32 %v4930_v43, %v4704_v29  ;;  %v8244_v42 = vsel %vm5152_vm7, %v4926_v1, %v5216_v15  ;;  %v4706_v29 = vmul.f32 %v7996_v11, %v8092_v28  ;;  %v8256_v1 = vpop.permute.xlu1 %4601  ;;  %v8258_v15 = vpop.permute.xlu0 %4606 }
 0x422   : > { %8842 = vst [vmem:[#allocation42_spill] sm:$0xff] %v8244_v42  ;;  %v4932_v38 = vpop.f32.mrf.mxu0  ;;  %v5344_v25 = vmul.f32 %v8244_v42, %v8244_v42 }
 0x423   : > { %v5217_v20 = vmul.f32 0.2, %v4931_v18  ;;  %vm5153_vm8 = vcmp.gt.f32.partialorder %v4931_v18, 0.0 }
 0x424   : > { %v4935_v26 = vpop.f32.mrf.mxu0  ;;  %5431 = vadd.xlane.f32.xlu0 %v5344_v25  ;;  %v4707_v25 = vmul.f32 %v7996_v11, %v8102_v8 }
 0x425   : > { %v4936_v21 = vadd.f32 %v4935_v26, %v4705_v37  ;;  %v8250_v22 = vsel %vm5153_vm8, %v4931_v18, %v5217_v20  ;;  %v8266_v26 = vpop.permute.xlu1 %4611 }
 0x426   : > { %8843 = vst [vmem:[#allocation43_spill] sm:$0xff] %v8250_v22  ;;  %v4937_v41 = vpop.f32.mrf.mxu0  ;;  %v5345_v57 = vmul.f32 %v8250_v22, %v8250_v22 }
 0x427   : > { %v5218_v61 = vmul.f32 0.2, %v4936_v21  ;;  %vm5154_vm9 = vcmp.gt.f32.partialorder %v4936_v21, 0.0 }
 0x428   : > { %v4940_v62 = vpop.f32.mrf.mxu0  ;;  %5433 = vadd.xlane.f32.xlu1 %v5345_v57 }
 0x429   : > { %v4941_v43 = vadd.f32 %v4940_v62, %v4706_v29  ;;  %v8260_v38 = vsel %vm5154_vm9, %v4936_v21, %v5218_v61  ;;  %v4708_v29 = vmul.f32 %v7996_v11, %v8109_v54  ;;  %v8274_v61 = vpop.permute.xlu0 %4616 }
 0x42a   : > { %8844 = vst [vmem:[#allocation44_spill] sm:$0xff] %v8260_v38  ;;  %v4942_v37 = vpop.f32.mrf.mxu0  ;;  %v5346_v18 = vmul.f32 %v8260_v38, %v8260_v38 }
 0x42b   : > { %v5219_v20 = vmul.f32 0.2, %v4941_v43  ;;  %vm5155_vm10 = vcmp.gt.f32.partialorder %v4941_v43, 0.0 }
 0x42c   : > { %v4945_v28 = vpop.f32.mrf.mxu0  ;;  %5435 = vadd.xlane.f32.xlu0 %v5346_v18 }
 0x42d   : > { %v4946_v41 = vadd.f32 %v4945_v28, %v4707_v25  ;;  %v8268_v57 = vsel %vm5155_vm10, %v4941_v43, %v5219_v20  ;;  %v8282_v25 = vpop.permute.xlu1 %4621  ;;  %v8284_v28 = vpop.permute.xlu0 %4626 }
 0x42e   : > { %8845 = vst [vmem:[#allocation45_spill] sm:$0xff] %v8268_v57  ;;  %v4947_v22 = vpop.f32.mrf.mxu0  ;;  %v5347_v21 = vmul.f32 %v8268_v57, %v8268_v57 }
 0x42f   : > { %v5220_v62 = vmul.f32 0.2, %v4946_v41  ;;  %vm5156_vm11 = vcmp.gt.f32.partialorder %v4946_v41, 0.0  ;;  %v4709_v22 = vmul.f32 %v7996_v11, %v8119_v59 }
 0x430   : > { %v4950_v8 = vpop.f32.mrf.mxu0  ;;  %5437 = vadd.xlane.f32.xlu1 %v5347_v21 }
 0x431   : > { %v4951_v37 = vadd.f32 %v4950_v8, %v4708_v29  ;;  %v8276_v18 = vsel %vm5156_vm11, %v4946_v41, %v5220_v62  ;;  %v4710_v29 = vmul.f32 %v7996_v11, %v8124_v24  ;;  %v8292_v8 = vpop.permute.xlu1 %4631 }
 0x432   : > { %8846 = vst [vmem:[#allocation23_spill] sm:$0xff] %v8276_v18  ;;  %v4952_v38 = vpop.f32.mrf.mxu0  ;;  %v5348_v43 = vmul.f32 %v8276_v18, %v8276_v18 }
 0x433   : > { %v5221_v20 = vmul.f32 0.2, %v4951_v37  ;;  %vm5157_vm12 = vcmp.gt.f32.partialorder %v4951_v37, 0.0 }
 0x434   : > { %v4955_v54 = vpop.f32.mrf.mxu0  ;;  %5439 = vadd.xlane.f32.xlu0 %v5348_v43 }
 0x435   : > { %v4956_v57 = vadd.f32 %v4955_v54, %v4709_v22  ;;  %v8286_v21 = vsel %vm5157_vm12, %v4951_v37, %v5221_v20  ;;  %v4711_v22 = vmul.f32 %v7996_v11, %v8134_v27  ;;  %v8300_v20 = vpop.permute.xlu0 %4636 }
 0x436   : > { %8847 = vst [vmem:[#allocation24_spill] sm:$0xff] %v8286_v21  ;;  %v4957_v41 = vpop.f32.mrf.mxu0  ;;  %v5349_v38 = vmul.f32 %v8286_v21, %v8286_v21 }
 0x437   : > { %v5222_v62 = vmul.f32 0.2, %v4956_v57  ;;  %vm5158_vm13 = vcmp.gt.f32.partialorder %v4956_v57, 0.0 }
 0x438   : > { %v4960_v59 = vpop.f32.mrf.mxu0  ;;  %5441 = vadd.xlane.f32.xlu1 %v5349_v38 }
 0x439   : > { %v4961_v18 = vadd.f32 %v4960_v59, %v4710_v29  ;;  %v8294_v43 = vsel %vm5158_vm13, %v4956_v57, %v5222_v62  ;;  %v8308_v29 = vpop.permute.xlu1 %4641  ;;  %v8310_v59 = vpop.permute.xlu0 %4646 }
 0x43a   : > { %8848 = vst [vmem:[#allocation25_spill] sm:$0xff] %v8294_v43  ;;  %v4962_v42 = vpop.f32.mrf.mxu0  ;;  %v5350_v37 = vmul.f32 %v8294_v43, %v8294_v43 }
 0x43b   : > { %v5223_v54 = vmul.f32 0.2, %v4961_v18  ;;  %vm5159_vm14 = vcmp.gt.f32.partialorder %v4961_v18, 0.0  ;;  %v4712_v42 = vmul.f32 %v7996_v11, %v8141_v33 }
 0x43c   : > { %v4965_v24 = vpop.f32.mrf.mxu0  ;;  %5443 = vadd.xlane.f32.xlu0 %v5350_v37 }
 0x43d   : > { %v4966_v41 = vadd.f32 %v4965_v24, %v4711_v22  ;;  %v8302_v38 = vsel %vm5159_vm14, %v4961_v18, %v5223_v54  ;;  %v4713_v22 = vmul.f32 %v7996_v11, %v8151_v52  ;;  %v8318_v24 = vpop.permute.xlu1 %4651 }
 0x43e   : > { %8849 = vst [vmem:[#allocation26_spill] sm:$0xff] %v8302_v38  ;;  %v4967_v21 = vpop.f32.mrf.mxu0  ;;  %v5351_v57 = vmul.f32 %v8302_v38, %v8302_v38 }
 0x43f   : > { %v5224_v62 = vmul.f32 0.2, %v4966_v41  ;;  %vm5160_vm15 = vcmp.gt.f32.partialorder %v4966_v41, 0.0 }
 0x440   : > { %v4970_v27 = vpop.f32.mrf.mxu0  ;;  %5445 = vadd.xlane.f32.xlu1 %v5351_v57 }
 0x441   : > { %v4971_v43 = vadd.f32 %v4970_v27, %v4712_v42  ;;  %v8312_v37 = vsel %vm5160_vm15, %v4966_v41, %v5224_v62  ;;  %v4714_v42 = vmul.f32 %v7996_v11, %v8156_v34  ;;  %v8326_v62 = vpop.permute.xlu0 %4656 }
 0x442   : > { %8850 = vst [vmem:[#allocation27_spill] sm:$0xff] %v8312_v37  ;;  %v4972_v18 = vpop.f32.mrf.mxu0  ;;  %v5352_v21 = vmul.f32 %v8312_v37, %v8312_v37 }
 0x443   : > { %v5225_v54 = vmul.f32 0.2, %v4971_v43  ;;  %vm5161_vm0 = vcmp.gt.f32.partialorder %v4971_v43, 0.0 }
 0x444   : > { %v4975_v33 = vpop.f32.mrf.mxu0  ;;  %5447 = vadd.xlane.f32.xlu0 %v5352_v21 }
 0x445   : > { %v4976_v38 = vadd.f32 %v4975_v33, %v4713_v22  ;;  %v8320_v57 = vsel %vm5161_vm0, %v4971_v43, %v5225_v54  ;;  %v8334_v22 = vpop.permute.xlu1 %4661  ;;  %v8336_v33 = vpop.permute.xlu0 %4666 }
 0x446   : > { %8851 = vst [vmem:[#allocation28_spill] sm:$0xff] %v8320_v57  ;;  %v4977_v4 = vpop.f32.mrf.mxu0  ;;  %v5353_v41 = vmul.f32 %v8320_v57, %v8320_v57 }
 0x447   : > { %vm5162_vm1 = vcmp.gt.f32.partialorder %v4976_v38, 0.0  ;;  %v5226_v52 = vmul.f32 0.2, %v4976_v38  ;;  %v4715_v4 = vmul.f32 %v7996_v11, %v8164_v16 }
 0x448   : > { %v4980_v27 = vpop.f32.mrf.mxu0  ;;  %5449 = vadd.xlane.f32.xlu1 %v5353_v41 }
 0x449   : > { %v4981_v18 = vadd.f32 %v4980_v27, %v4714_v42  ;;  %v8328_v21 = vsel %vm5162_vm1, %v4976_v38, %v5226_v52  ;;  %v4716_v42 = vmul.f32 %v7996_v11, %v8170_v17  ;;  %v8344_v27 = vpop.permute.xlu1 %4671 }
 0x44a   : > { %8852 = vst [vmem:[#allocation29_spill] sm:$0xff] %v8328_v21  ;;  %v4982_v37 = vpop.f32.mrf.mxu0  ;;  %v5354_v43 = vmul.f32 %v8328_v21, %v8328_v21  ;;  %8854 = vst [vmem:[#allocation31_spill] sm:$0xff] %v8344_v27 }
 0x44b   : > { %v5227_v54 = vmul.f32 0.2, %v4981_v18  ;;  %vm5163_vm2 = vcmp.gt.f32.partialorder %v4981_v18, 0.0 }
 0x44c   : > { %v4985_v34 = vpop.f32.mrf.mxu0  ;;  %5451 = vadd.xlane.f32.xlu0 %v5354_v43 }
 0x44d   : > { %v4986_v57 = vadd.f32 %v4985_v34, %v4715_v4  ;;  %v8338_v41 = vsel %vm5163_vm2, %v4981_v18, %v5227_v54  ;;  %v4717_v34 = vmul.f32 %v7996_v11, %v8178_v40 }
 0x44e   : > { %8853 = vst [vmem:[#allocation30_spill] sm:$0xff] %v8338_v41  ;;  %v4987_v38 = vpop.f32.mrf.mxu0  ;;  %v5355_v37 = vmul.f32 %v8338_v41, %v8338_v41 }
 0x44f   : > { %vm5164_vm3 = vcmp.gt.f32.partialorder %v4986_v57, 0.0  ;;  %v5228_v16 = vmul.f32 0.2, %v4986_v57 }
 0x450   : > { %v4990_v52 = vpop.f32.mrf.mxu0  ;;  %5453 = vadd.xlane.f32.xlu1 %v5355_v37 }
 0x451   : > { %v4991_v21 = vadd.f32 %v4990_v52, %v4716_v42  ;;  %v5386_v43 = vpop.xlane.xlu0 %5385  ;;  %v8346_v49 = vsel %vm5164_vm3, %v4986_v57, %v5228_v16  ;;  %v4718_v52 = vmul.f32 %v7996_v11, %v8182_v13 }
 0x452   : > { %v5513_v4 = vmax.f32 %v5386_v43, 1e-24  ;;  %v4992_v18 = vpop.f32.mrf.mxu0  ;;  %v5356_v54 = vmul.f32 %v8346_v49, %v8346_v49 }
 0x453   : > { %vm5165_vm4 = vcmp.gt.f32.partialorder %v4991_v21, 0.0  ;;  %v5229_v17 = vmul.f32 0.2, %v4991_v21 }
 0x454   : > { %6489 = vrsqrt.f32 %v5513_v4  ;;  %v4995_v38 = vpop.f32.mrf.mxu0  ;;  %5455 = vadd.xlane.f32.xlu0 %v5356_v54 }
 0x455   : > { %v4996_v37 = vadd.f32 %v4995_v38, %v4717_v34  ;;  %v5388_v41 = vpop.xlane.xlu1 %5387  ;;  %v8352_v27 = vsel %vm5165_vm4, %v4991_v21, %v5229_v17  ;;  %v8362_v17 = vld [vmem:[#allocation10] ss:$0 sm:$0xff] }
 0x456   : > { %v5514_v42 = vmax.f32 %v5388_v41, 1e-24  ;;  %v4997_v57 = vpop.f32.mrf.mxu0  ;;  %v5357_v16 = vmul.f32 %v8352_v27, %v8352_v27  ;;  %v4719_v38 = vmul.f32 %v8362_v17, %v8190_v36 }
 0x457   : > { %vm5166_vm5 = vcmp.gt.f32.partialorder %v4996_v37, 0.0  ;;  %v5230_v43 = vmul.f32 0.2, %v4996_v37 }
 0x458   : > { %6491 = vrsqrt.f32 %v5514_v42  ;;  %v5000_v40 = vpop.f32.mrf.mxu0  ;;  %5457 = vadd.xlane.f32.xlu1 %v5357_v16 }
 0x459   : > { %v5001_v4 = vadd.f32 %v5000_v40, %v4718_v52  ;;  %v5390_v18 = vpop.xlane.xlu0 %5389  ;;  %v8358_v54 = vsel %vm5166_vm5, %v4996_v37, %v5230_v43  ;;  %v4720_v40 = vmul.f32 %v8362_v17, %v8196_v6  ;;  %v4721_v6 = vmul.f32 %v8362_v17, %v8204_v14 }
 0x45a   : > { %v5515_v34 = vmax.f32 %v5390_v18, 1e-24  ;;  %v5002_v21 = vpop.f32.mrf.mxu0  ;;  %v5358_v41 = vmul.f32 %v8358_v54, %v8358_v54 }
 0x45b   : > { %vm5167_vm6 = vcmp.gt.f32.partialorder %v5001_v4, 0.0  ;;  %v5231_v11 = vmul.f32 0.2, %v5001_v4 }
 0x45c   : > { %6493 = vrsqrt.f32 %v5515_v34  ;;  %v5005_v13 = vpop.f32.mrf.mxu0  ;;  %5459 = vadd.xlane.f32.xlu0 %v5358_v41 }
 0x45d   : > { %v5006_v42 = vadd.f32 %v5005_v13, %v4719_v38  ;;  %v5392_v57 = vpop.xlane.xlu0 %5391  ;;  %v8366_v16 = vsel %vm5167_vm6, %v5001_v4, %v5231_v11 }
 0x45e   : > { %v5516_v37 = vmax.f32 %v5392_v57, 1e-24  ;;  %v5007_v52 = vpop.f32.mrf.mxu0  ;;  %v5359_v43 = vmul.f32 %v8366_v16, %v8366_v16 }
 0x45f   : > { %vm5168_vm7 = vcmp.gt.f32.partialorder %v5006_v42, 0.0  ;;  %v5232_v36 = vmul.f32 0.2, %v5006_v42 }
 0x460   : > { %6495 = vrsqrt.f32 %v5516_v37  ;;  %v5010_v18 = vpop.f32.mrf.mxu0  ;;  %5461 = vadd.xlane.f32.xlu1 %v5359_v43 }
 0x461   : > { %v6490_v34 = vpop.eup %6489  ;;  %v5011_v21 = vadd.f32 %v5010_v18, %v4720_v40  ;;  %v5394_v41 = vpop.xlane.xlu1 %5393  ;;  %v8372_v38 = vsel %vm5168_vm7, %v5006_v42, %v5232_v36 }
 0x462   : > { %v5641_v4 = vmul.f32 %v6490_v34, %v8018_v32  ;;  %v5517_v11 = vmax.f32 %v5394_v41, 1e-24  ;;  %v5012_v13 = vpop.f32.mrf.mxu0  ;;  %v5360_v57 = vmul.f32 %v8372_v38, %v8372_v38  ;;  %v4722_v41 = vmul.f32 %v8362_v17, %v8208_v10 }
 0x463   : > { %vm5169_vm8 = vcmp.gt.f32.partialorder %v5011_v21, 0.0  ;;  %v5233_v52 = vmul.f32 0.2, %v5011_v21  ;;  %v4723_v10 = vmul.f32 %v8362_v17, %v8216_v9  ;;  %v4724_v9 = vmul.f32 %v8362_v17, %v8222_v48 }
 0x464   : > { %5705 = vst [vmem:[%s8381_s12] sm:$0xff] %v5641_v4  ;;  %6497 = vrsqrt.f32 %v5517_v11  ;;  %v5015_v42 = vpop.f32.mrf.mxu0  ;;  %5463 = vadd.xlane.f32.xlu0 %v5360_v57  ;;  %v4725_v48 = vmul.f32 %v8362_v17, %v8230_v44  ;;  %v4726_v44 = vmul.f32 %v8362_v17, %v8234_v50  ;;  %v4727_v50 = vmul.f32 %v8362_v17, %v8242_v46 }
 0x465   : > { %v6492_v32 = vpop.eup %6491  ;;  %v5016_v37 = vadd.f32 %v5015_v42, %v4721_v6  ;;  %v5396_v43 = vpop.xlane.xlu0 %5395  ;;  %v8384_v40 = vsel %vm5169_vm8, %v5011_v21, %v5233_v52  ;;  %v4728_v46 = vmul.f32 %v8362_v17, %v8248_v5  ;;  %v4729_v5 = vmul.f32 %v8362_v17, %v8256_v1 }
 0x466   : > { %v5642_v36 = vmul.f32 %v6492_v32, %v8028_v47  ;;  %v5518_v18 = vmax.f32 %v5396_v43, 1e-24  ;;  %v5017_v14 = vpop.f32.mrf.mxu0  ;;  %v5361_v34 = vmul.f32 %v8384_v40, %v8384_v40  ;;  %v4730_v1 = vmul.f32 %v8362_v17, %v8258_v15 }
 0x467   : > { %vm5170_vm9 = vcmp.gt.f32.partialorder %v5016_v37, 0.0  ;;  %v5234_v4 = vmul.f32 0.2, %v5016_v37  ;;  %v4731_v15 = vmul.f32 %v8362_v17, %v8266_v26  ;;  %v4732_v26 = vmul.f32 %v8362_v17, %v8274_v61 }
 0x468   : > { %5706 = vst [vmem:[%s8381_s12 + $0x8] sm:$0xff] %v5642_v36  ;;  %6499 = vrsqrt.f32 %v5518_v18  ;;  %v5020_v11 = vpop.f32.mrf.mxu0  ;;  %5465 = vadd.xlane.f32.xlu1 %v5361_v34  ;;  %v4733_v61 = vmul.f32 %v8362_v17, %v8282_v25  ;;  %v4734_v25 = vmul.f32 %v8362_v17, %v8284_v28  ;;  %v4735_v28 = vmul.f32 %v8362_v17, %v8292_v8 }
 0x469   : > { %v6494_v13 = vpop.eup %6493  ;;  %v5021_v21 = vadd.f32 %v5020_v11, %v4722_v41  ;;  %v5398_v57 = vpop.xlane.xlu1 %5397  ;;  %v8392_v6 = vsel %vm5170_vm9, %v5016_v37, %v5234_v4  ;;  %v4736_v8 = vmul.f32 %v8362_v17, %v8300_v20  ;;  %v4737_v20 = vmul.f32 %v8362_v17, %v8308_v29 }
 0x46a   : > { %v5643_v47 = vmul.f32 %v6494_v13, %v8040_v55  ;;  %v5519_v52 = vmax.f32 %v5398_v57, 1e-24  ;;  %v5022_v42 = vpop.f32.mrf.mxu0  ;;  %v5362_v32 = vmul.f32 %v8392_v6, %v8392_v6  ;;  %v4738_v29 = vmul.f32 %v8362_v17, %v8310_v59 }
 0x46b   : > { %vm5171_vm10 = vcmp.gt.f32.partialorder %v5021_v21, 0.0  ;;  %v5235_v43 = vmul.f32 0.2, %v5021_v21  ;;  %v4739_v59 = vmul.f32 %v8362_v17, %v8318_v24  ;;  %v4740_v24 = vmul.f32 %v8362_v17, %v8326_v62 }
 0x46c   : > { %5707 = vst [vmem:[%s8381_s12 + $0x10] sm:$0xff] %v5643_v47  ;;  %6501 = vrsqrt.f32 %v5519_v52  ;;  %v5025_v36 = vpop.f32.mrf.mxu0  ;;  %5467 = vadd.xlane.f32.xlu0 %v5362_v32  ;;  %v4741_v62 = vmul.f32 %v8362_v17, %v8334_v22  ;;  %v4742_v22 = vmul.f32 %v8362_v17, %v8336_v33  ;;  %v8857_v33 = vld [vmem:[#allocation31_spill] sm:$0xff] }
 0x46d   : > { %v6496_v18 = vpop.eup %6495  ;;  %v5026_v37 = vadd.f32 %v5025_v36, %v4723_v10  ;;  %v5400_v14 = vpop.xlane.xlu0 %5399  ;;  %v8400_v34 = vsel %vm5171_vm10, %v5021_v21, %v5235_v43 }
 0x46e   : > { %v5644_v55 = vmul.f32 %v6496_v18, %v8050_v60  ;;  %v5520_v41 = vmax.f32 %v5400_v14, 1e-24  ;;  %v5027_v4 = vpop.f32.mrf.mxu0  ;;  %v5363_v11 = vmul.f32 %v8400_v34, %v8400_v34 }
 0x46f   : > { %vm5172_vm11 = vcmp.gt.f32.partialorder %v5026_v37, 0.0  ;;  %v5236_v13 = vmul.f32 0.2, %v5026_v37 }
 0x470   : > { %5708 = vst [vmem:[%s8381_s12 + $0x18] sm:$0xff] %v5644_v55  ;;  %6503 = vrsqrt.f32 %v5520_v41  ;;  %v5030_v57 = vpop.f32.mrf.mxu0  ;;  %5469 = vadd.xlane.f32.xlu1 %v5363_v11 }
 0x471   : > { %v6498_v47 = vpop.eup %6497  ;;  %v5031_v21 = vadd.f32 %v5030_v57, %v4724_v9  ;;  %v5402_v52 = vpop.xlane.xlu1 %5401  ;;  %v8408_v42 = vsel %vm5172_vm11, %v5026_v37, %v5236_v13 }
 0x472   : > { %v5645_v60 = vmul.f32 %v6498_v47, %v8062_v19  ;;  %v5521_v32 = vmax.f32 %v5402_v52, 1e-24  ;;  %v5032_v10 = vpop.f32.mrf.mxu0  ;;  %v5364_v43 = vmul.f32 %v8408_v42, %v8408_v42 }
 0x473   : > { %vm5173_vm12 = vcmp.gt.f32.partialorder %v5031_v21, 0.0  ;;  %v5237_v36 = vmul.f32 0.2, %v5031_v21 }
 0x474   : > { %5709 = vst [vmem:[%s8381_s12 + $0x20] sm:$0xff] %v5645_v60  ;;  %6505 = vrsqrt.f32 %v5521_v32  ;;  %v5035_v18 = vpop.f32.mrf.mxu0  ;;  %5471 = vadd.xlane.f32.xlu0 %v5364_v43 }
 0x475   : > { %v6500_v14 = vpop.eup %6499  ;;  %v5036_v37 = vadd.f32 %v5035_v18, %v4725_v48  ;;  %v5404_v55 = vpop.xlane.xlu0 %5403  ;;  %v8416_v41 = vsel %vm5173_vm12, %v5031_v21, %v5237_v36 }
 0x476   : > { %v5646_v19 = vmul.f32 %v6500_v14, %v8072_v63  ;;  %v5522_v4 = vmax.f32 %v5404_v55, 1e-24  ;;  %v5037_v11 = vpop.f32.mrf.mxu0  ;;  %v5365_v9 = vmul.f32 %v8416_v41, %v8416_v41 }
 0x477   : > { %vm5174_vm13 = vcmp.gt.f32.partialorder %v5036_v37, 0.0  ;;  %v5238_v13 = vmul.f32 0.2, %v5036_v37 }
 0x478   : > { %5710 = vst [vmem:[%s8381_s12 + $0x28] sm:$0xff] %v5646_v19  ;;  %6507 = vrsqrt.f32 %v5522_v4  ;;  %v5040_v57 = vpop.f32.mrf.mxu0  ;;  %5473 = vadd.xlane.f32.xlu1 %v5365_v9 }
 0x479   : > { %v6502_v47 = vpop.eup %6501  ;;  %v5041_v21 = vadd.f32 %v5040_v57, %v4726_v44  ;;  %v5406_v52 = vpop.xlane.xlu1 %5405  ;;  %v8424_v60 = vsel %vm5174_vm13, %v5036_v37, %v5238_v13 }
 0x47a   : > { %v5647_v63 = vmul.f32 %v6502_v47, %v8082_v2  ;;  %v5523_v32 = vmax.f32 %v5406_v52, 1e-24  ;;  %v5042_v10 = vpop.f32.mrf.mxu0  ;;  %v5366_v43 = vmul.f32 %v8424_v60, %v8424_v60 }
 0x47b   : > { %vm5175_vm14 = vcmp.gt.f32.partialorder %v5041_v21, 0.0  ;;  %v5239_v48 = vmul.f32 0.2, %v5041_v21 }
 0x47c   : > { %5711 = vst [vmem:[%s8381_s12 + $0x30] sm:$0xff] %v5647_v63  ;;  %6509 = vrsqrt.f32 %v5523_v32  ;;  %v5045_v36 = vpop.f32.mrf.mxu0  ;;  %5475 = vadd.xlane.f32.xlu0 %v5366_v43 }
 0x47d   : > { %v6504_v18 = vpop.eup %6503  ;;  %v5046_v14 = vadd.f32 %v5045_v36, %v4727_v50  ;;  %v5408_v37 = vpop.xlane.xlu0 %5407  ;;  %v8432_v55 = vsel %vm5175_vm14, %v5041_v21, %v5239_v48 }
 0x47e   : > { %v5648_v2 = vmul.f32 %v6504_v18, %v8094_v7  ;;  %v5524_v19 = vmax.f32 %v5408_v37, 1e-24  ;;  %v5047_v4 = vpop.f32.mrf.mxu0  ;;  %v5367_v11 = vmul.f32 %v8432_v55, %v8432_v55 }
 0x47f   : > { %vm5176_vm15 = vcmp.gt.f32.partialorder %v5046_v14, 0.0  ;;  %v5240_v9 = vmul.f32 0.2, %v5046_v14 }
 0x480   : > { %5712 = vst [vmem:[%s8381_s12 + $0x38] sm:$0xff] %v5648_v2  ;;  %6511 = vrsqrt.f32 %v5524_v19  ;;  %v5050_v44 = vpop.f32.mrf.mxu0  ;;  %5477 = vadd.xlane.f32.xlu1 %v5367_v11 }
 0x481   : > { %v6506_v13 = vpop.eup %6505  ;;  %v5051_v57 = vadd.f32 %v5050_v44, %v4728_v46  ;;  %v5410_v47 = vpop.xlane.xlu1 %5409  ;;  %v8440_v21 = vsel %vm5176_vm15, %v5046_v14, %v5240_v9 }
 0x482   : > { %v5649_v7 = vmul.f32 %v6506_v13, %v8104_v3  ;;  %v5525_v52 = vmax.f32 %v5410_v47, 1e-24  ;;  %v5052_v63 = vpop.f32.mrf.mxu0  ;;  %v5368_v32 = vmul.f32 %v8440_v21, %v8440_v21 }
 0x483   : > { %vm5177_vm0 = vcmp.gt.f32.partialorder %v5051_v57, 0.0  ;;  %v5241_v10 = vmul.f32 0.2, %v5051_v57 }
 0x484   : > { %5713 = vst [vmem:[%s8381_s12 + $0x40] sm:$0xff] %v5649_v7  ;;  %6513 = vrsqrt.f32 %v5525_v52  ;;  %v5055_v43 = vpop.f32.mrf.mxu0  ;;  %5479 = vadd.xlane.f32.xlu0 %v5368_v32 }
 0x485   : > { %v6508_v50 = vpop.eup %6507  ;;  %v5056_v48 = vadd.f32 %v5055_v43, %v4729_v5  ;;  %v5412_v36 = vpop.xlane.xlu0 %5411  ;;  %v8448_v18 = vsel %vm5177_vm0, %v5051_v57, %v5241_v10 }
 0x486   : > { %v5650_v3 = vmul.f32 %v6508_v50, %v8114_v0  ;;  %v5526_v14 = vmax.f32 %v5412_v36, 1e-24  ;;  %v5057_v37 = vpop.f32.mrf.mxu0  ;;  %v5369_v2 = vmul.f32 %v8448_v18, %v8448_v18 }
 0x487   : > { %vm5178_vm1 = vcmp.gt.f32.partialorder %v5056_v48, 0.0  ;;  %v5242_v19 = vmul.f32 0.2, %v5056_v48 }
 0x488   : > { %5714 = vst [vmem:[%s8381_s12 + $0x48] sm:$0xff] %v5650_v3  ;;  %6515 = vrsqrt.f32 %v5526_v14  ;;  %v5060_v4 = vpop.f32.mrf.mxu0  ;;  %5481 = vadd.xlane.f32.xlu1 %v5369_v2 }
 0x489   : > { %v6510_v11 = vpop.eup %6509  ;;  %v5061_v46 = vadd.f32 %v5060_v4, %v4730_v1  ;;  %v5414_v9 = vpop.xlane.xlu1 %5413  ;;  %v8456_v44 = vsel %vm5178_vm1, %v5056_v48, %v5242_v19 }
 0x48a   : > { %v5651_v0 = vmul.f32 %v6510_v11, %v8126_v53  ;;  %v5527_v13 = vmax.f32 %v5414_v9, 1e-24  ;;  %v5062_v57 = vpop.f32.mrf.mxu0  ;;  %v5370_v47 = vmul.f32 %v8456_v44, %v8456_v44 }
 0x48b   : > { %vm5179_vm2 = vcmp.gt.f32.partialorder %v5061_v46, 0.0  ;;  %v5243_v7 = vmul.f32 0.2, %v5061_v46 }
 0x48c   : > { %5715 = vst [vmem:[%s8381_s12 + $0x50] sm:$0xff] %v5651_v0  ;;  %6517 = vrsqrt.f32 %v5527_v13  ;;  %v5065_v52 = vpop.f32.mrf.mxu0  ;;  %5483 = vadd.xlane.f32.xlu0 %v5370_v47 }
 0x48d   : > { %v6512_v63 = vpop.eup %6511  ;;  %v5066_v32 = vadd.f32 %v5065_v52, %v4731_v15  ;;  %v5416_v5 = vpop.xlane.xlu0 %5415  ;;  %v8464_v10 = vsel %vm5179_vm2, %v5061_v46, %v5243_v7 }
 0x48e   : > { %v5652_v53 = vmul.f32 %v6512_v63, %v8136_v45  ;;  %v5528_v43 = vmax.f32 %v5416_v5, 1e-24  ;;  %v5067_v50 = vpop.f32.mrf.mxu0  ;;  %v5371_v48 = vmul.f32 %v8464_v10, %v8464_v10 }
 0x48f   : > { %vm5180_vm3 = vcmp.gt.f32.partialorder %v5066_v32, 0.0  ;;  %v5244_v36 = vmul.f32 0.2, %v5066_v32 }
 0x490   : > { %5716 = vst [vmem:[%s8381_s12 + $0x58] sm:$0xff] %v5652_v53  ;;  %6519 = vrsqrt.f32 %v5528_v43  ;;  %v5070_v3 = vpop.f32.mrf.mxu0  ;;  %5485 = vadd.xlane.f32.xlu1 %v5371_v48 }
 0x491   : > { %v6514_v14 = vpop.eup %6513  ;;  %v5071_v37 = vadd.f32 %v5070_v3, %v4732_v26  ;;  %v5418_v2 = vpop.xlane.xlu1 %5417  ;;  %v8472_v1 = vsel %vm5180_vm3, %v5066_v32, %v5244_v36 }
 0x492   : > { %v5653_v45 = vmul.f32 %v6514_v14, %v8146_v23  ;;  %v5529_v19 = vmax.f32 %v5418_v2, 1e-24  ;;  %v5072_v4 = vpop.f32.mrf.mxu0  ;;  %v5372_v11 = vmul.f32 %v8472_v1, %v8472_v1 }
 0x493   : > { %vm5181_vm4 = vcmp.gt.f32.partialorder %v5071_v37, 0.0  ;;  %v5245_v46 = vmul.f32 0.2, %v5071_v37 }
 0x494   : > { %5717 = vst [vmem:[%s8381_s12 + $0x60] sm:$0xff] %v5653_v45  ;;  %6521 = vrsqrt.f32 %v5529_v19  ;;  %v5075_v9 = vpop.f32.mrf.mxu0  ;;  %5487 = vadd.xlane.f32.xlu0 %v5372_v11 }
 0x495   : > { %v6516_v0 = vpop.eup %6515  ;;  %v5076_v13 = vadd.f32 %v5075_v9, %v4733_v61  ;;  %v5420_v57 = vpop.xlane.xlu0 %5419  ;;  %v8480_v47 = vsel %vm5181_vm4, %v5071_v37, %v5245_v46 }
 0x496   : > { %v5654_v23 = vmul.f32 %v6516_v0, %v8158_v39  ;;  %v5530_v15 = vmax.f32 %v5420_v57, 1e-24  ;;  %v5077_v7 = vpop.f32.mrf.mxu0  ;;  %v5373_v52 = vmul.f32 %v8480_v47, %v8480_v47 }
 0x497   : > { %vm5182_vm5 = vcmp.gt.f32.partialorder %v5076_v13, 0.0  ;;  %v5246_v63 = vmul.f32 0.2, %v5076_v13 }
 0x498   : > { %5718 = vst [vmem:[%s8381_s12 + $0x68] sm:$0xff] %v5654_v23  ;;  %6523 = vrsqrt.f32 %v5530_v15  ;;  %v5080_v32 = vpop.f32.mrf.mxu0  ;;  %5489 = vadd.xlane.f32.xlu1 %v5373_v52 }
 0x499   : > { %v6518_v5 = vpop.eup %6517  ;;  %v5081_v53 = vadd.f32 %v5080_v32, %v4734_v25  ;;  %v5422_v43 = vpop.xlane.xlu1 %5421  ;;  %v8488_v50 = vsel %vm5182_vm5, %v5076_v13, %v5246_v63 }
 0x49a   : > { %v5655_v39 = vmul.f32 %v6518_v5, %v8166_v31  ;;  %v5531_v48 = vmax.f32 %v5422_v43, 1e-24  ;;  %v5082_v26 = vpop.f32.mrf.mxu0  ;;  %v5374_v36 = vmul.f32 %v8488_v50, %v8488_v50 }
 0x49b   : > { %vm5183_vm6 = vcmp.gt.f32.partialorder %v5081_v53, 0.0  ;;  %v5247_v3 = vmul.f32 0.2, %v5081_v53 }
 0x49c   : > { %5719 = vst [vmem:[%s8381_s12 + $0x70] sm:$0xff] %v5655_v39  ;;  %6525 = vrsqrt.f32 %v5531_v48  ;;  %v5085_v14 = vpop.f32.mrf.mxu0  ;;  %5491 = vadd.xlane.f32.xlu0 %v5374_v36 }
 0x49d   : > { %v6520_v37 = vpop.eup %6519  ;;  %v5086_v2 = vadd.f32 %v5085_v14, %v4735_v28  ;;  %v5424_v45 = vpop.xlane.xlu0 %5423  ;;  %v8496_v19 = vsel %vm5183_vm6, %v5081_v53, %v5247_v3 }
 0x49e   : > { %v5656_v31 = vmul.f32 %v6520_v37, %v8174_v51  ;;  %v5532_v4 = vmax.f32 %v5424_v45, 1e-24  ;;  %v5087_v11 = vpop.f32.mrf.mxu0  ;;  %v5375_v61 = vmul.f32 %v8496_v19, %v8496_v19 }
 0x49f   : > { %vm5184_vm7 = vcmp.gt.f32.partialorder %v5086_v2, 0.0  ;;  %v5248_v46 = vmul.f32 0.2, %v5086_v2 }
 0x4a0   : > { %5720 = vst [vmem:[%s8381_s12 + $0x78] sm:$0xff] %v5656_v31  ;;  %6527 = vrsqrt.f32 %v5532_v4  ;;  %v5090_v9 = vpop.f32.mrf.mxu0  ;;  %5493 = vadd.xlane.f32.xlu1 %v5375_v61 }
 0x4a1   : > { %v6522_v0 = vpop.eup %6521  ;;  %v5091_v13 = vadd.f32 %v5090_v9, %v4736_v8  ;;  %v5426_v57 = vpop.xlane.xlu1 %5425  ;;  %v8504_v23 = vsel %vm5184_vm7, %v5086_v2, %v5248_v46 }
 0x4a2   : > { %v5657_v51 = vmul.f32 %v6522_v0, %v8184_v12  ;;  %v5533_v15 = vmax.f32 %v5426_v57, 1e-24  ;;  %v5092_v7 = vpop.f32.mrf.mxu0  ;;  %v5376_v52 = vmul.f32 %v8504_v23, %v8504_v23 }
 0x4a3   : > { %vm5185_vm8 = vcmp.gt.f32.partialorder %v5091_v13, 0.0  ;;  %v5249_v25 = vmul.f32 0.2, %v5091_v13 }
 0x4a4   : > { %5721 = vst [vmem:[%s8381_s12 + $0x80] sm:$0xff] %v5657_v51  ;;  %6529 = vrsqrt.f32 %v5533_v15  ;;  %v5095_v63 = vpop.f32.mrf.mxu0  ;;  %5495 = vadd.xlane.f32.xlu0 %v5376_v52 }
 0x4a5   : > { %v6524_v32 = vpop.eup %6523  ;;  %v5096_v5 = vadd.f32 %v5095_v63, %v4737_v20  ;;  %v5428_v53 = vpop.xlane.xlu0 %5427  ;;  %v8512_v43 = vsel %vm5185_vm8, %v5091_v13, %v5249_v25 }
 0x4a6   : > { %v5658_v12 = vmul.f32 %v6524_v32, %v8192_v35  ;;  %v5534_v39 = vmax.f32 %v5428_v53, 1e-24  ;;  %v5097_v48 = vpop.f32.mrf.mxu0  ;;  %v5377_v26 = vmul.f32 %v8512_v43, %v8512_v43 }
 0x4a7   : > { %vm5186_vm9 = vcmp.gt.f32.partialorder %v5096_v5, 0.0  ;;  %v5250_v36 = vmul.f32 0.2, %v5096_v5 }
 0x4a8   : > { %5722 = vst [vmem:[%s8381_s12 + $0x88] sm:$0xff] %v5658_v12  ;;  %6531 = vrsqrt.f32 %v5534_v39  ;;  %v5100_v28 = vpop.f32.mrf.mxu0  ;;  %5497 = vadd.xlane.f32.xlu1 %v5377_v26 }
 0x4a9   : > { %v6526_v3 = vpop.eup %6525  ;;  %v5101_v14 = vadd.f32 %v5100_v28, %v4738_v29  ;;  %v5430_v37 = vpop.xlane.xlu1 %5429  ;;  %v8520_v2 = vsel %vm5186_vm9, %v5096_v5, %v5250_v36 }
 0x4aa   : > { %v5659_v35 = vmul.f32 %v6526_v3, %v8200_v56  ;;  %v5535_v45 = vmax.f32 %v5430_v37, 1e-24  ;;  %v5102_v31 = vpop.f32.mrf.mxu0  ;;  %v5378_v4 = vmul.f32 %v8520_v2, %v8520_v2 }
 0x4ab   : > { %vm5187_vm10 = vcmp.gt.f32.partialorder %v5101_v14, 0.0  ;;  %v5251_v11 = vmul.f32 0.2, %v5101_v14 }
 0x4ac   : > { %5723 = vst [vmem:[%s8381_s12 + $0x90] sm:$0xff] %v5659_v35  ;;  %6533 = vrsqrt.f32 %v5535_v45  ;;  %v5105_v61 = vpop.f32.mrf.mxu0  ;;  %5499 = vadd.xlane.f32.xlu0 %v5378_v4 }
 0x4ad   : > { %v6528_v8 = vpop.eup %6527  ;;  %v5106_v46 = vadd.f32 %v5105_v61, %v4739_v59  ;;  %v5432_v9 = vpop.xlane.xlu0 %5431  ;;  %v8528_v0 = vsel %vm5187_vm10, %v5101_v14, %v5251_v11  ;;  %v8856_v61 = vld [vmem:[#allocation41_spill] sm:$0xff] }
 0x4ae   : > { %v5660_v56 = vmul.f32 %v6528_v8, %v8210_v30  ;;  %v5536_v13 = vmax.f32 %v5432_v9, 1e-24  ;;  %v5107_v57 = vpop.f32.mrf.mxu0  ;;  %v5379_v51 = vmul.f32 %v8528_v0, %v8528_v0 }
 0x4af   : > { %vm5188_vm11 = vcmp.gt.f32.partialorder %v5106_v46, 0.0  ;;  %v5252_v15 = vmul.f32 0.2, %v5106_v46 }
 0x4b0   : > { %5724 = vst [vmem:[%s8381_s12 + $0x98] sm:$0xff] %v5660_v56  ;;  %6535 = vrsqrt.f32 %v5536_v13  ;;  %v5110_v7 = vpop.f32.mrf.mxu0  ;;  %5501 = vadd.xlane.f32.xlu1 %v5379_v51  ;;  %v4743_v13 = vmul.f32 %v8362_v17, %v8857_v33 }
 0x4b1   : > { %v6530_v52 = vpop.eup %6529  ;;  %v5111_v20 = vadd.f32 %v5110_v7, %v4740_v24  ;;  %v5434_v25 = vpop.xlane.xlu1 %5433  ;;  %v8536_v63 = vsel %vm5188_vm11, %v5106_v46, %v5252_v15 }
 0x4b2   : > { %v5661_v30 = vmul.f32 %v6530_v52, %v8218_v58  ;;  %v5537_v32 = vmax.f32 %v5434_v25, 1e-24  ;;  %v5112_v5 = vpop.f32.mrf.mxu0  ;;  %v5380_v53 = vmul.f32 %v8536_v63, %v8536_v63  ;;  %v8855_v58 = vld [vmem:[#allocation40_spill] sm:$0xff] }
 0x4b3   : > { %vm5189_vm12 = vcmp.gt.f32.partialorder %v5111_v20, 0.0  ;;  %v5253_v12 = vmul.f32 0.2, %v5111_v20 }
 0x4b4   : > { %5725 = vst [vmem:[%s8381_s12 + $0xa0] sm:$0xff] %v5661_v30  ;;  %6537 = vrsqrt.f32 %v5537_v32  ;;  %v5115_v39 = vpop.f32.mrf.mxu0  ;;  %5503 = vadd.xlane.f32.xlu0 %v5380_v53 }
 0x4b5   : > { %v6532_v48 = vpop.eup %6531  ;;  %v5116_v26 = vadd.f32 %v5115_v39, %v4741_v62  ;;  %v5436_v29 = vpop.xlane.xlu0 %5435  ;;  %v8544_v36 = vsel %vm5189_vm12, %v5111_v20, %v5253_v12  ;;  %v8858_v20 = vld [vmem:[#allocation42_spill] sm:$0xff]  ;;  %v8859_v39 = vld [vmem:[#allocation43_spill] sm:$0xff] }
 0x4b6   : > { %v5662_v28 = vmul.f32 %v6532_v48, %v8855_v58  ;;  %v5538_v3 = vmax.f32 %v5436_v29, 1e-24  ;;  %v5117_v14 = vpop.f32.mrf.mxu0  ;;  %v5381_v37 = vmul.f32 %v8544_v36, %v8544_v36 }
 0x4b7   : > { %vm5190_vm13 = vcmp.gt.f32.partialorder %v5116_v26, 0.0  ;;  %v5254_v35 = vmul.f32 0.2, %v5116_v26 }
 0x4b8   : > { %5726 = vst [vmem:[%s8381_s12 + $0xa8] sm:$0xff] %v5662_v28  ;;  %6539 = vrsqrt.f32 %v5538_v3  ;;  %v5120_v45 = vpop.f32.mrf.mxu0  ;;  %5505 = vadd.xlane.f32.xlu1 %v5381_v37  ;;  %v8860_v3 = vld [vmem:[#allocation44_spill] sm:$0xff] }
 0x4b9   : > { %v6534_v31 = vpop.eup %6533  ;;  %v5121_v4 = vadd.f32 %v5120_v45, %v4742_v22  ;;  %v5438_v59 = vpop.xlane.xlu1 %5437  ;;  %v8552_v11 = vsel %vm5190_vm13, %v5116_v26, %v5254_v35  ;;  %v8861_v45 = vld [vmem:[#allocation45_spill] sm:$0xff] }
 0x4ba   : > { %v5663_v8 = vmul.f32 %v6534_v31, %v8856_v61  ;;  %v5539_v46 = vmax.f32 %v5438_v59, 1e-24  ;;  %v5122_v9 = vpop.f32.mrf.mxu0  ;;  %v5382_v56 = vmul.f32 %v8552_v11, %v8552_v11 }
 0x4bb   : > { %vm5191_vm14 = vcmp.gt.f32.partialorder %v5121_v4, 0.0  ;;  %v5255_v57 = vmul.f32 0.2, %v5121_v4 }
 0x4bc   : > { %5727 = vst [vmem:[%s8381_s12 + $0xb0] sm:$0xff] %v5663_v8  ;;  %6541 = vrsqrt.f32 %v5539_v46  ;;  %v5125_v51 = vpop.f32.mrf.mxu0  ;;  %5507 = vadd.xlane.f32.xlu0 %v5382_v56  ;;  %v8862_v8 = vld [vmem:[#allocation23_spill] sm:$0xff] }
 0x4bd   : > { %v6536_v24 = vpop.eup %6535  ;;  %v5126_v15 = vadd.f32 %v5125_v51, %v4743_v13  ;;  %v5440_v7 = vpop.xlane.xlu0 %5439  ;;  %v8560_v52 = vsel %vm5191_vm14, %v5121_v4, %v5255_v57  ;;  %v8863_v13 = vld [vmem:[#allocation24_spill] sm:$0xff] }
 0x4be   : > { %v5664_v25 = vmul.f32 %v6536_v24, %v8858_v20  ;;  %v5540_v30 = vmax.f32 %v5440_v7, 1e-24  ;;  %v5127_v32 = vpop.f32.mrf.mxu0  ;;  %v5383_v17 = vmul.f32 %v8560_v52, %v8560_v52  ;;  %v8864_v7 = vld [vmem:[#allocation25_spill] sm:$0xff] }
 0x4bf   : > { %vm5192_vm15 = vcmp.gt.f32.partialorder %v5126_v15, 0.0  ;;  %v5256_v5 = vmul.f32 0.2, %v5126_v15 }
 0x4c0   : > { %5728 = vst [vmem:[%s8381_s12 + $0xb8] sm:$0xff] %v5664_v25  ;;  %6543 = vrsqrt.f32 %v5540_v30  ;;  %5509 = vadd.xlane.f32.xlu1 %v5383_v17  ;;  %v8865_v17 = vld [vmem:[#allocation26_spill] sm:$0xff] }
 0x4c1   : > { %v6538_v53 = vpop.eup %6537  ;;  %v5442_v62 = vpop.xlane.xlu1 %5441  ;;  %v8566_v12 = vsel %vm5192_vm15, %v5126_v15, %v5256_v5 }
 0x4c2   : > { %v5665_v48 = vmul.f32 %v6538_v53, %v8859_v39  ;;  %v5541_v26 = vmax.f32 %v5442_v62, 1e-24  ;;  %v5384_v29 = vmul.f32 %v8566_v12, %v8566_v12 }
 0x4c4   : > { %5729 = vst [vmem:[%s8381_s12 + $0xc0] sm:$0xff] %v5665_v48  ;;  %6545 = vrsqrt.f32 %v5541_v26  ;;  %5511 = vadd.xlane.f32.xlu0 %v5384_v29  ;;  %v8866_v48 = vld [vmem:[#allocation27_spill] sm:$0xff] }
 0x4c5   : > { %v6540_v58 = vpop.eup %6539  ;;  %v5444_v28 = vpop.xlane.xlu0 %5443 }
 0x4c6   : > { %v5666_v14 = vmul.f32 %v6540_v58, %v8860_v3  ;;  %v5542_v37 = vmax.f32 %v5444_v28, 1e-24  ;;  %v8867_v3 = vld [vmem:[#allocation28_spill] sm:$0xff] }
 0x4c8   : > { %5730 = vst [vmem:[%s8381_s12 + $0xc8] sm:$0xff] %v5666_v14  ;;  %6547 = vrsqrt.f32 %v5542_v37 }
 0x4c9   : > { %v6542_v22 = vpop.eup %6541  ;;  %v5446_v35 = vpop.xlane.xlu1 %5445 }
 0x4ca   : > { %v5667_v31 = vmul.f32 %v6542_v22, %v8861_v45  ;;  %v5543_v4 = vmax.f32 %v5446_v35, 1e-24  ;;  %v8868_v45 = vld [vmem:[#allocation29_spill] sm:$0xff] }
 0x4cc   : > { %5731 = vst [vmem:[%s8381_s12 + $0xd0] sm:$0xff] %v5667_v31  ;;  %6549 = vrsqrt.f32 %v5543_v4 }
 0x4cd   : > { %v6544_v59 = vpop.eup %6543  ;;  %v5448_v61 = vpop.xlane.xlu0 %5447 }
 0x4ce   : > { %v5668_v46 = vmul.f32 %v6544_v59, %v8862_v8  ;;  %v5544_v9 = vmax.f32 %v5448_v61, 1e-24  ;;  %v8869_v8 = vld [vmem:[#allocation30_spill] sm:$0xff] }
 0x4d0   : > { %5732 = vst [vmem:[%s8381_s12 + $0xd8] sm:$0xff] %v5668_v46  ;;  %6551 = vrsqrt.f32 %v5544_v9 }
 0x4d1   : > { %v6546_v56 = vpop.eup %6545  ;;  %v5450_v33 = vpop.xlane.xlu1 %5449 }
 0x4d2   : > { %v5669_v57 = vmul.f32 %v6546_v56, %v8863_v13  ;;  %v5545_v51 = vmax.f32 %v5450_v33, 1e-24 }
 0x4d4   : > { %5733 = vst [vmem:[%s8381_s12 + $0xe0] sm:$0xff] %v5669_v57  ;;  %6553 = vrsqrt.f32 %v5545_v51 }
 0x4d5   : > { %v6548_v24 = vpop.eup %6547  ;;  %v5452_v15 = vpop.xlane.xlu0 %5451 }
 0x4d6   : > { %v5670_v20 = vmul.f32 %v6548_v24, %v8864_v7  ;;  %v5546_v25 = vmax.f32 %v5452_v15, 1e-24 }
 0x4d8   : > { %5734 = vst [vmem:[%s8381_s12 + $0xe8] sm:$0xff] %v5670_v20  ;;  %6555 = vrsqrt.f32 %v5546_v25 }
 0x4d9   : > { %v6550_v30 = vpop.eup %6549  ;;  %v5454_v32 = vpop.xlane.xlu1 %5453 }
 0x4da   : > { %v5671_v5 = vmul.f32 %v6550_v30, %v8865_v17  ;;  %v5547_v53 = vmax.f32 %v5454_v32, 1e-24 }
 0x4dc   : > { %5735 = vst [vmem:[%s8381_s12 + $0xf0] sm:$0xff] %v5671_v5  ;;  %6557 = vrsqrt.f32 %v5547_v53 }
 0x4dd   : > { %v6552_v62 = vpop.eup %6551  ;;  %v5456_v39 = vpop.xlane.xlu0 %5455 }
 0x4de   : > { %v5672_v26 = vmul.f32 %v6552_v62, %v8866_v48  ;;  %v5548_v29 = vmax.f32 %v5456_v39, 1e-24 }
 0x4e0   : > { %5736 = vst [vmem:[%s8381_s12 + $0xf8] sm:$0xff] %v5672_v26  ;;  %6559 = vrsqrt.f32 %v5548_v29 }
 0x4e1   : > { %v6554_v58 = vpop.eup %6553  ;;  %v5458_v28 = vpop.xlane.xlu1 %5457 }
 0x4e2   : > { %v5673_v14 = vmul.f32 %v6554_v58, %v8867_v3  ;;  %v5549_v37 = vmax.f32 %v5458_v28, 1e-24 }
 0x4e4   : > { %5737 = vst [vmem:[%s8381_s12 + $0x100] sm:$0xff] %v5673_v14  ;;  %6561 = vrsqrt.f32 %v5549_v37 }
 0x4e5   : > { %v6556_v22 = vpop.eup %6555  ;;  %v5460_v35 = vpop.xlane.xlu0 %5459 }
 0x4e6   : > { %v5674_v31 = vmul.f32 %v6556_v22, %v8868_v45  ;;  %v5550_v4 = vmax.f32 %v5460_v35, 1e-24 }
 0x4e8   : > { %5738 = vst [vmem:[%s8381_s12 + $0x108] sm:$0xff] %v5674_v31  ;;  %6563 = vrsqrt.f32 %v5550_v4 }
 0x4e9   : > { %v6558_v59 = vpop.eup %6557  ;;  %v5462_v61 = vpop.xlane.xlu1 %5461 }
 0x4ea   : > { %v5675_v46 = vmul.f32 %v6558_v59, %v8869_v8  ;;  %v5551_v9 = vmax.f32 %v5462_v61, 1e-24 }
 0x4ec   : > { %5739 = vst [vmem:[%s8381_s12 + $0x110] sm:$0xff] %v5675_v46  ;;  %6565 = vrsqrt.f32 %v5551_v9 }
 0x4ed   : > { %v6560_v56 = vpop.eup %6559  ;;  %v5464_v33 = vpop.xlane.xlu0 %5463 }
 0x4ee   : > { %v5676_v13 = vmul.f32 %v6560_v56, %v8346_v49  ;;  %v5552_v57 = vmax.f32 %v5464_v33, 1e-24 }
 0x4f0   : > { %5740 = vst [vmem:[%s8381_s12 + $0x118] sm:$0xff] %v5676_v13  ;;  %6567 = vrsqrt.f32 %v5552_v57 }
 0x4f1   : > { %v6562_v51 = vpop.eup %6561  ;;  %v5466_v24 = vpop.xlane.xlu1 %5465 }
 0x4f2   : > { %v5677_v15 = vmul.f32 %v6562_v51, %v8352_v27  ;;  %v5553_v7 = vmax.f32 %v5466_v24, 1e-24 }
 0x4f4   : > { %5741 = vst [vmem:[%s8381_s12 + $0x120] sm:$0xff] %v5677_v15  ;;  %6569 = vrsqrt.f32 %v5553_v7 }
 0x4f5   : > { %v6564_v20 = vpop.eup %6563  ;;  %v5468_v25 = vpop.xlane.xlu0 %5467 }
 0x4f6   : > { %v5678_v30 = vmul.f32 %v6564_v20, %v8358_v54  ;;  %v5554_v32 = vmax.f32 %v5468_v25, 1e-24 }
 0x4f8   : > { %5742 = vst [vmem:[%s8381_s12 + $0x128] sm:$0xff] %v5678_v30  ;;  %6571 = vrsqrt.f32 %v5554_v32 }
 0x4f9   : > { %v6566_v49 = vpop.eup %6565  ;;  %v5470_v17 = vpop.xlane.xlu1 %5469 }
 0x4fa   : > { %v5679_v5 = vmul.f32 %v6566_v49, %v8366_v16  ;;  %v5555_v53 = vmax.f32 %v5470_v17, 1e-24 }
 0x4fc   : > { %5743 = vst [vmem:[%s8381_s12 + $0x130] sm:$0xff] %v5679_v5  ;;  %6573 = vrsqrt.f32 %v5555_v53 }
 0x4fd   : > { %v6568_v27 = vpop.eup %6567  ;;  %v5472_v62 = vpop.xlane.xlu0 %5471 }
 0x4fe   : > { %v5680_v39 = vmul.f32 %v6568_v27, %v8372_v38  ;;  %v5556_v48 = vmax.f32 %v5472_v62, 1e-24 }
 0x500   : > { %5744 = vst [vmem:[%s8381_s12 + $0x138] sm:$0xff] %v5680_v39  ;;  %6575 = vrsqrt.f32 %v5556_v48 }
 0x501   : > { %v6570_v54 = vpop.eup %6569  ;;  %v5474_v26 = vpop.xlane.xlu1 %5473 }
 0x502   : > { %v5681_v29 = vmul.f32 %v6570_v54, %v8384_v40  ;;  %v5557_v58 = vmax.f32 %v5474_v26, 1e-24 }
 0x504   : > { %5745 = vst [vmem:[%s8381_s12 + $0x140] sm:$0xff] %v5681_v29  ;;  %6577 = vrsqrt.f32 %v5557_v58 }
 0x505   : > { %v6572_v16 = vpop.eup %6571  ;;  %v5476_v28 = vpop.xlane.xlu0 %5475 }
 0x506   : > { %v5682_v3 = vmul.f32 %v6572_v16, %v8392_v6  ;;  %v5558_v14 = vmax.f32 %v5476_v28, 1e-24 }
 0x508   : > { %5746 = vst [vmem:[%s8381_s12 + $0x148] sm:$0xff] %v5682_v3  ;;  %6579 = vrsqrt.f32 %v5558_v14 }
 0x509   : > { %v6574_v38 = vpop.eup %6573  ;;  %v5478_v37 = vpop.xlane.xlu1 %5477 }
 0x50a   : > { %v5683_v22 = vmul.f32 %v6574_v38, %v8400_v34  ;;  %v5559_v35 = vmax.f32 %v5478_v37, 1e-24 }
 0x50c   : > { %5747 = vst [vmem:[%s8381_s12 + $0x150] sm:$0xff] %v5683_v22  ;;  %6581 = vrsqrt.f32 %v5559_v35 }
 0x50d   : > { %v6576_v40 = vpop.eup %6575  ;;  %v5480_v45 = vpop.xlane.xlu0 %5479 }
 0x50e   : > { %v5684_v31 = vmul.f32 %v6576_v40, %v8408_v42  ;;  %v5560_v4 = vmax.f32 %v5480_v45, 1e-24 }
 0x510   : > { %5748 = vst [vmem:[%s8381_s12 + $0x158] sm:$0xff] %v5684_v31  ;;  %6583 = vrsqrt.f32 %v5560_v4 }
 0x511   : > { %v6578_v6 = vpop.eup %6577  ;;  %v5482_v59 = vpop.xlane.xlu1 %5481 }
 0x512   : > { %v5685_v61 = vmul.f32 %v6578_v6, %v8416_v41  ;;  %v5561_v8 = vmax.f32 %v5482_v59, 1e-24 }
 0x514   : > { %5749 = vst [vmem:[%s8381_s12 + $0x160] sm:$0xff] %v5685_v61  ;;  %6585 = vrsqrt.f32 %v5561_v8 }
 0x515   : > { %v6580_v34 = vpop.eup %6579  ;;  %v5484_v46 = vpop.xlane.xlu0 %5483 }
 0x516   : > { %v5686_v9 = vmul.f32 %v6580_v34, %v8424_v60  ;;  %v5562_v56 = vmax.f32 %v5484_v46, 1e-24 }
 0x518   : > { %5750 = vst [vmem:[%s8381_s12 + $0x168] sm:$0xff] %v5686_v9  ;;  %6587 = vrsqrt.f32 %v5562_v56 }
 0x519   : > { %v6582_v42 = vpop.eup %6581  ;;  %v5486_v33 = vpop.xlane.xlu1 %5485 }
 0x51a   : > { %v5687_v13 = vmul.f32 %v6582_v42, %v8432_v55  ;;  %v5563_v57 = vmax.f32 %v5486_v33, 1e-24 }
 0x51c   : > { %5751 = vst [vmem:[%s8381_s12 + $0x170] sm:$0xff] %v5687_v13  ;;  %6589 = vrsqrt.f32 %v5563_v57 }
 0x51d   : > { %v6584_v41 = vpop.eup %6583  ;;  %v5488_v51 = vpop.xlane.xlu0 %5487 }
 0x51e   : > { %v5688_v24 = vmul.f32 %v6584_v41, %v8440_v21  ;;  %v5564_v15 = vmax.f32 %v5488_v51, 1e-24 }
 0x520   : > { %5752 = vst [vmem:[%s8381_s12 + $0x178] sm:$0xff] %v5688_v24  ;;  %6591 = vrsqrt.f32 %v5564_v15 }
 0x521   : > { %v6586_v60 = vpop.eup %6585  ;;  %v5490_v7 = vpop.xlane.xlu1 %5489 }
 0x522   : > { %v5689_v20 = vmul.f32 %v6586_v60, %v8448_v18  ;;  %v5565_v25 = vmax.f32 %v5490_v7, 1e-24 }
 0x524   : > { %5753 = vst [vmem:[%s8381_s12 + $0x180] sm:$0xff] %v5689_v20  ;;  %6593 = vrsqrt.f32 %v5565_v25 }
 0x525   : > { %v6588_v55 = vpop.eup %6587  ;;  %v5492_v30 = vpop.xlane.xlu0 %5491 }
 0x526   : > { %v5690_v32 = vmul.f32 %v6588_v55, %v8456_v44  ;;  %v5566_v49 = vmax.f32 %v5492_v30, 1e-24 }
 0x528   : > { %5754 = vst [vmem:[%s8381_s12 + $0x188] sm:$0xff] %v5690_v32  ;;  %6595 = vrsqrt.f32 %v5566_v49 }
 0x529   : > { %v6590_v21 = vpop.eup %6589  ;;  %v5494_v17 = vpop.xlane.xlu1 %5493 }
 0x52a   : > { %v5691_v5 = vmul.f32 %v6590_v21, %v8464_v10  ;;  %v5567_v53 = vmax.f32 %v5494_v17, 1e-24 }
 0x52c   : > { %5755 = vst [vmem:[%s8381_s12 + $0x190] sm:$0xff] %v5691_v5  ;;  %6597 = vrsqrt.f32 %v5567_v53 }
 0x52d   : > { %v6592_v18 = vpop.eup %6591  ;;  %v5496_v27 = vpop.xlane.xlu0 %5495 }
 0x52e   : > { %v5692_v62 = vmul.f32 %v6592_v18, %v8472_v1  ;;  %v5568_v39 = vmax.f32 %v5496_v27, 1e-24 }
 0x530   : > { %5756 = vst [vmem:[%s8381_s12 + $0x198] sm:$0xff] %v5692_v62  ;;  %6599 = vrsqrt.f32 %v5568_v39 }
 0x531   : > { %v6594_v44 = vpop.eup %6593  ;;  %v5498_v48 = vpop.xlane.xlu1 %5497 }
 0x532   : > { %v5693_v54 = vmul.f32 %v6594_v44, %v8480_v47  ;;  %v5569_v26 = vmax.f32 %v5498_v48, 1e-24 }
 0x534   : > { %5757 = vst [vmem:[%s8381_s12 + $0x1a0] sm:$0xff] %v5693_v54  ;;  %6601 = vrsqrt.f32 %v5569_v26 }
 0x535   : > { %v6596_v10 = vpop.eup %6595  ;;  %v5500_v29 = vpop.xlane.xlu0 %5499 }
 0x536   : > { %v5694_v58 = vmul.f32 %v6596_v10, %v8488_v50  ;;  %v5570_v16 = vmax.f32 %v5500_v29, 1e-24 }
 0x538   : > { %5758 = vst [vmem:[%s8381_s12 + $0x1a8] sm:$0xff] %v5694_v58  ;;  %6603 = vrsqrt.f32 %v5570_v16 }
 0x539   : > { %v6598_v1 = vpop.eup %6597  ;;  %v5502_v28 = vpop.xlane.xlu1 %5501 }
 0x53a   : > { %v5695_v3 = vmul.f32 %v6598_v1, %v8496_v19  ;;  %v5571_v14 = vmax.f32 %v5502_v28, 1e-24 }
 0x53c   : > { %5759 = vst [vmem:[%s8381_s12 + $0x1b0] sm:$0xff] %v5695_v3  ;;  %6605 = vrsqrt.f32 %v5571_v14 }
 0x53d   : > { %v6600_v47 = vpop.eup %6599  ;;  %v5504_v38 = vpop.xlane.xlu0 %5503 }
 0x53e   : > { %v5696_v37 = vmul.f32 %v6600_v47, %v8504_v23  ;;  %v5572_v22 = vmax.f32 %v5504_v38, 1e-24 }
 0x540   : > { %5760 = vst [vmem:[%s8381_s12 + $0x1b8] sm:$0xff] %v5696_v37  ;;  %6607 = vrsqrt.f32 %v5572_v22 }
 0x541   : > { %v6602_v50 = vpop.eup %6601  ;;  %v5506_v35 = vpop.xlane.xlu1 %5505 }
 0x542   : > { %v5697_v40 = vmul.f32 %v6602_v50, %v8512_v43  ;;  %v5573_v45 = vmax.f32 %v5506_v35, 1e-24 }
 0x544   : > { %5761 = vst [vmem:[%s8381_s12 + $0x1c0] sm:$0xff] %v5697_v40  ;;  %6609 = vrsqrt.f32 %v5573_v45 }
 0x545   : > { %v6604_v19 = vpop.eup %6603  ;;  %v5508_v31 = vpop.xlane.xlu0 %5507 }
 0x546   : > { %v5698_v4 = vmul.f32 %v6604_v19, %v8520_v2  ;;  %v5574_v6 = vmax.f32 %v5508_v31, 1e-24 }
 0x548   : > { %5762 = vst [vmem:[%s8381_s12 + $0x1c8] sm:$0xff] %v5698_v4  ;;  %6611 = vrsqrt.f32 %v5574_v6 }
 0x549   : > { %v6606_v23 = vpop.eup %6605  ;;  %v5510_v59 = vpop.xlane.xlu1 %5509 }
 0x54a   : > { %v5699_v61 = vmul.f32 %v6606_v23, %v8528_v0  ;;  %v5575_v8 = vmax.f32 %v5510_v59, 1e-24 }
 0x54c   : > { %5763 = vst [vmem:[%s8381_s12 + $0x1d0] sm:$0xff] %v5699_v61  ;;  %6613 = vrsqrt.f32 %v5575_v8 }
 0x54d   : > { %v6608_v43 = vpop.eup %6607  ;;  %v5512_v34 = vpop.xlane.xlu0 %5511 }
 0x54e   : > { %v5700_v46 = vmul.f32 %v6608_v43, %v8536_v63  ;;  %v5576_v2 = vmax.f32 %v5512_v34, 1e-24 }
 0x550   : > { %5764 = vst [vmem:[%s8381_s12 + $0x1d8] sm:$0xff] %v5700_v46  ;;  %6615 = vrsqrt.f32 %v5576_v2 }
 0x551   : > { %v6610_v9 = vpop.eup %6609 }
 0x552   : > { %v5701_v56 = vmul.f32 %v6610_v9, %v8544_v36 }
 0x554   : > { %5765 = vst [vmem:[%s8381_s12 + $0x1e0] sm:$0xff] %v5701_v56 }
 0x555   : > { %v6612_v0 = vpop.eup %6611 }
 0x556   : > { %v5702_v42 = vmul.f32 %v6612_v0, %v8552_v11 }
 0x558   : > { %5766 = vst [vmem:[%s8381_s12 + $0x1e8] sm:$0xff] %v5702_v42 }
 0x559   : > { %v6614_v33 = vpop.eup %6613 }
 0x55a   : > { %v5703_v13 = vmul.f32 %v6614_v33, %v8560_v52 }
 0x55c   : > { %5767 = vst [vmem:[%s8381_s12 + $0x1f0] sm:$0xff] %v5703_v13 }
 0x55d   : > { %v6616_v63 = vpop.eup %6615 }
 0x55e   : > { %v5704_v36 = vmul.f32 %v6616_v63, %v8566_v12 }
 0x560   : > { %5768 = vst [vmem:[%s8381_s12 + $0x1f8] sm:$0xff] %v5704_v36 }
 0x561   : > { %6765 = shalt.err (!%p6762_p6)
}
 0x562   : > { %s6766_s15 = scalar_lea.hbm %s8653_s9, 8192  ;;  %s6770_s11 = scalar_lea.hbm %s8711_s6, 16384 }
 0x563   : > { %p6767_p8 = scmp.ne.s32.totalorder %s8653_s9, %s6766_s15  ;;  %p6771_p5 = scmp.lt.s32.totalorder %s8653_s9, %s8711_s6 }
 0x564   : > { %p6772_p9 = scmp.lt.s32.totalorder %s6770_s11, %s6766_s15 }
 0x565   : > { %p6768_p11 = pnand %p6767_p8, %p6987_p3 }
 0x566   : > { %p6773_p4 = por %p6772_p9, %p6771_p5 }
 0x567   : > { %p6769_p2 = pneg %p6768_p11 }
 0x569   : > { %p6774_p10 = pnand %p6773_p4, %p6769_p2 }
 0x56b   : > { %6777 = shalt.err (!%p6774_p10)
}
 0x56c   : > { %s6864_s20 = smov 128   ;;  %s6865_s17 = smov 8  }
 0x56d   : > { %6331 = dma.vmem_to_hbm [thread:$0]  (%p6987_p3), %s8655_s0, 8192, %s8653_s9, %s5770_s18, %s6864_s20, %s6864_s20, %s6865_s17  }
 0x56e PF: > { %s8870_s30 = sld [smem:[#allocation19_spill]]  ;;  %p8873_p12 = scmp.ge.s32.totalorder %s6848_s26, 2 }
 0x56f   : > { %s8871_s12 = sld [smem:[#allocation20_spill]] }
 0x574   : > { %s5798_s1 = sand.u32 1, %s8870_s30  }
 0x575   : > { %p8872_p1 = scmp.ne.s32.totalorder %s8871_s12, 0  ;;  %s5799_s8 = scalar_lea.sflag [#allocation5], %s5798_s1 }
 0x577   : > { %p6351_p0 = pnand %p8873_p12, %p8872_p1 }
 0x579   : > { %p6352_p7 = pneg %p6351_p0 }
 0x57b   : > { %6823 = dma.done.wait (%p6352_p7), %s5799_s8, 8192  }
 0x57c   : > { %6825 = vsyncadd (%p6352_p7), %s5799_s8, 4294959104  ;;  %s24_s26 = sadd.s32 1, %s6848_s26   ;;  %s8874_s19 = sld [smem:[#allocation22_spill]] }
 0x57d   : > { %p21_p13 = scmp.ge.s32.totalorder %s24_s26, 4   ;;  %s8875_s28 = sld [smem:[#allocation21_spill]] }
 0x57e   : > { %s8876_s21 = smov %s6832_s22  ;;  %s8877_s22 = smov %s6836_s23 }
 0x57f   : > { %s8879_s24 = smov %s6844_s25  ;;  %23 = sbr.rel (!%p21_p13) target bundleno = 11 (0xb), region = 128 }
 0x582   : > { %s8878_s23 = smov %s8874_s19 }
 0x583   : > { %s8880_s25 = smov %s8875_s28 }
 0x584   :  { %5804 = vsyncpa [#allocation4], 1 }
 0x585   :  { %5806 = vsyncpa [#allocation4 + $0x1], 1 }
 0x586   :  { %5807 = vsyncpa [#allocation7], 1 }
 0x587   :  { %5808 = vsyncpa [#allocation11], 1 }
 0x588   :  { %5809 = vsyncpa [#allocation5], 1 }
 0x589   :  { %5811 = vsyncpa [#allocation5 + $0x1], 1 }

</bundles_post_ra>
